<compile_context>
chip_gen: v7x
topology: tpu7x:2x2x1
jax: 0.10.0
libtpu: 0.0.40
codegen_flags: <defaults>
</compile_context>

<pallas_src>
import jax
import jax.numpy as jnp
from jax.experimental import pallas as pl
from jax.experimental.pallas import tpu as pltpu

_PI = 3.14159265359


def _fourier_kernel(x_ref, b_ref, o_ref):
    # x_ref: (TM, 2) f32, b_ref: (2, nmb) f32, o_ref: (TM, 2*nmb) f32
    nmb = b_ref.shape[1]
    two_pi = 2.0 * _PI
    x0 = x_ref[:, 0:1] * two_pi            # (TM, 1)
    x1 = x_ref[:, 1:2] * two_pi            # (TM, 1)
    b0 = b_ref[0:1, :]                     # (1, nmb)
    b1 = b_ref[1:2, :]                     # (1, nmb)
    # Contraction depth is 2 -> pure VPU broadcast multiply-add, no MXU.
    phase = x0 * b0 + x1 * b1              # (TM, nmb)
    # sin/cos go to the EUP; both halves are lane-dense (nmb multiple of 128).
    o_ref[:, :nmb] = jnp.sin(phase)
    o_ref[:, nmb:] = jnp.cos(phase)


def fourier_features(x, b, *, tm=128):
    """x: (..., 2) float32, b: (2, nmb) float32 -> (..., 2*nmb) float32."""
    assert x.shape[-1] == 2
    lead = x.shape[:-1]
    nmb = b.shape[1]

    m = 1
    for d in lead:
        m *= int(d)
    xf = x.reshape(m, 2).astype(jnp.float32)

    # Pad the row count up to a multiple of the row tile.
    mp = ((m + tm - 1) // tm) * tm
    if mp != m:
        xf = jnp.pad(xf, ((0, mp - m), (0, 0)))

    out = pl.pallas_call(
        _fourier_kernel,
        out_shape=jax.ShapeDtypeStruct((mp, 2 * nmb), jnp.float32),
        grid=(mp // tm,),
        in_specs=[
            pl.BlockSpec((tm, 2), lambda i: (i, 0)),     # row tile of coords
            pl.BlockSpec((2, nmb), lambda i: (0, 0)),    # b resident (tiny)
        ],
        out_specs=pl.BlockSpec((tm, 2 * nmb), lambda i: (i, 0)),
        compiler_params=pltpu.CompilerParams(dimension_semantics=("parallel",)),
    )(xf, b.astype(jnp.float32))

    if mp != m:
        out = out[:m]
    return out.reshape(*lead, 2 * nmb)


class Fourier:
    """JAX/Pallas port of the PyTorch `Fourier` feature-embedding module."""

    def __init__(self, nmb=256, scale=10, *, key):
        self.pi = _PI
        self.nmb = nmb
        # torch.randn(2, nmb) * scale
        self.b = jax.random.normal(key, (2, nmb), dtype=jnp.float32) * float(scale)

    def __call__(self, x):
        return fourier_features(x, self.b)


def _reference_forward(layer, x):
    """Pure-JAX reference mirroring the PyTorch forward."""
    xb = jnp.matmul(2.0 * layer.pi * x, layer.b)
    return jnp.concatenate([jnp.sin(xb), jnp.cos(xb)], axis=-1)


if __name__ == "__main__":
    key = jax.random.PRNGKey(0)
    k_b, k_x = jax.random.split(key)

    B, N, nmb, scale = 2, 128, 256, 10
    layer = Fourier(nmb=nmb, scale=scale, key=k_b)
    x = jax.random.normal(k_x, (B, N, 2), dtype=jnp.float32)

    y = jax.block_until_ready(layer(x))
    y_ref = jax.block_until_ready(_reference_forward(layer, x))

    assert y.shape == (B, N, 2 * nmb)
    max_err = float(jnp.max(jnp.abs(y - y_ref)))
    assert jnp.allclose(y, y_ref, atol=2e-3, rtol=2e-3), max_err

    print("KERNEL_OK")
</pallas_src>

<mosaic_0001>
module attributes {stable_mosaic.version = 11 : i64} {
  func.func @_fourier_kernel(%arg0: i32, %arg1: memref<128x2xf32, #tpu.memory_space<vmem>>, %arg2: memref<2x256xf32, #tpu.memory_space<vmem>>, %arg3: memref<128x512xf32, #tpu.memory_space<vmem>>) attributes {dimension_semantics = [#tpu.dimension_semantics<parallel>], iteration_bounds = array<i64: 2>, scalar_prefetch = 0 : i64, scratch_operands = 0 : i64, tpu.core_type = #tpu.core_type<tc>, window_params = [{transform_indices = @transform_0, window_bounds = array<i64: 128, 2>}, {pipeline_mode = #tpu.pipeline_mode<synchronous>, transform_indices = @transform_1, window_bounds = array<i64: 2, 256>}, {transform_indices = @transform_2, window_bounds = array<i64: 128, 512>}]} {
    %c0 = arith.constant 0 : index
    %c0_0 = arith.constant 0 : index
    %0 = vector.load %arg1[%c0, %c0_0] : memref<128x2xf32, #tpu.memory_space<vmem>>, vector<128x1xf32>
    %cst = arith.constant 6.28318548 : f32
    %1 = vector.broadcast %cst : f32 to vector<128x1xf32>
    %2 = arith.mulf %0, %1 : vector<128x1xf32>
    %c0_1 = arith.constant 0 : index
    %c1 = arith.constant 1 : index
    %3 = vector.load %arg1[%c0_1, %c1] : memref<128x2xf32, #tpu.memory_space<vmem>>, vector<128x1xf32>
    %cst_2 = arith.constant 6.28318548 : f32
    %4 = vector.broadcast %cst_2 : f32 to vector<128x1xf32>
    %5 = arith.mulf %3, %4 : vector<128x1xf32>
    %c0_3 = arith.constant 0 : index
    %c0_4 = arith.constant 0 : index
    %6 = vector.load %arg2[%c0_3, %c0_4] : memref<2x256xf32, #tpu.memory_space<vmem>>, vector<1x256xf32>
    %c1_5 = arith.constant 1 : index
    %c0_6 = arith.constant 0 : index
    %7 = vector.load %arg2[%c1_5, %c0_6] : memref<2x256xf32, #tpu.memory_space<vmem>>, vector<1x256xf32>
    %8 = vector.broadcast %2 : vector<128x1xf32> to vector<128x256xf32>
    %9 = vector.broadcast %6 : vector<1x256xf32> to vector<128x256xf32>
    %10 = arith.mulf %8, %9 : vector<128x256xf32>
    %11 = vector.broadcast %5 : vector<128x1xf32> to vector<128x256xf32>
    %12 = vector.broadcast %7 : vector<1x256xf32> to vector<128x256xf32>
    %13 = arith.mulf %11, %12 : vector<128x256xf32>
    %14 = arith.addf %10, %13 : vector<128x256xf32>
    %15 = math.sin %14 : vector<128x256xf32>
    %c0_7 = arith.constant 0 : index
    %c0_8 = arith.constant 0 : index
    %16 = vector.load %arg3[%c0_7, %c0_8] : memref<128x512xf32, #tpu.memory_space<vmem>>, vector<128x256xf32>
    tpu.vector_store %arg3[%c0_7, %c0_8], %15 {strides = array<i32>} : memref<128x512xf32, #tpu.memory_space<vmem>>, vector<128x256xf32>,
    %17 = math.cos %14 : vector<128x256xf32>
    %c0_9 = arith.constant 0 : index
    %c256 = arith.constant 256 : index
    %18 = vector.load %arg3[%c0_9, %c256] : memref<128x512xf32, #tpu.memory_space<vmem>>, vector<128x256xf32>
    tpu.vector_store %arg3[%c0_9, %c256], %17 {strides = array<i32>} : memref<128x512xf32, #tpu.memory_space<vmem>>, vector<128x256xf32>,
    return
  }
  func.func @transform_0(%arg0: i32) -> (i32, i32) {
    %c0_i32 = arith.constant 0 : i32
    %c0_i32_0 = arith.constant 0 : i32
    return %arg0, %c0_i32 : i32, i32
  }
  func.func @transform_1(%arg0: i32) -> (i32, i32) {
    %c0_i32 = arith.constant 0 : i32
    %c0_i32_0 = arith.constant 0 : i32
    %c0_i32_1 = arith.constant 0 : i32
    return %c0_i32, %c0_i32_0 : i32, i32
  }
  func.func @transform_2(%arg0: i32) -> (i32, i32) {
    %c0_i32 = arith.constant 0 : i32
    %c0_i32_0 = arith.constant 0 : i32
    return %arg0, %c0_i32 : i32, i32
  }
}

</mosaic_0001>

<bundles_post_ra>
// kernel: tpu_custom_call.1
= control target key start
LH: loop header
LB: loop body
LE: loop exit
PB: predicated region body
PF: predicated region fallthrough
CT: control target
= control target key end

     0   :  { %7 = vsyncpa [#allocation3], 0  ;;  %s11475_s0 = inlined_call_operand.vmem [shape: f32[256,2], index: 0, kind: input, shape index: {}]   ;;  %s11476_s1 = inlined_call_operand.vmem [shape: f32[2,256], index: 1, kind: input, shape index: {}]   ;;  %s11477_s2 = inlined_call_operand.hbm [shape: f32[256,512], index: 2, kind: output, shape index: {}]  }
   0x1   :  { %9 = vsyncpa [#allocation3 + $0x1], 0  ;;  %s7878_s9 = smov 0   ;;  %s7880_s10 = smov 0  }
   0x2   :  { %s7882_s11 = smov 0   ;;  %s7884_s12 = smov 0  }
   0x3 LB: > { %s7899_s13 = sadd.s32 4294967295, %s7850_s12   ;;  %s7207_s14 = sadd.s32 4294967294, %s7850_s12   ;;  %s7850_s12 = sphi %s7884_s12, %s11597_s12   ;;  %s7846_s11 = sphi %s7882_s11, %s11596_s11   ;;  %s7842_s10 = sphi %s7880_s10, %s11595_s10   ;;  %s7838_s9 = sphi %s7878_s9, %s11594_s9  }
   0x4   : > { %s7903_s15 = sadd.s32 1, %s7850_s12   ;;  %s69_s16 = sadd.s32 1, %s7846_s11 }
   0x5   : > { %s66_s17 = ssub.s32 %s7850_s12, %s7903_s15  ;;  %p79_p0 = scmp.ne.s32.totalorder %s7846_s11, %s7842_s10 }
   0x6   : > { %p67_p1 = scmp.eq.s32.totalorder %s66_s17, 0  ;;  %p80_p2 = scmp.eq.s32.totalorder %s7899_s13, 1 }
   0x7   : > { %p85_p3 = scmp.ne.s32.totalorder %s7842_s10, %s7838_s9  ;;  %p86_p4 = scmp.eq.s32.totalorder %s7207_s14, 1 }
   0x8   : > { %s7914_s18 = scalar_select %p67_p1, %s7846_s11, %s69_s16  }
   0x9   : > { %p7916_p5 = por %p80_p2, %p79_p0  ;;  %p7920_p6 = por %p86_p4, %p85_p3 }
   0xa   : > { %p7210_p7 = scmp.ge.s32.totalorder %s7850_s12, 1  ;;  %p116_p8 = scmp.lt.s32.totalorder %s7850_s12, 3 }
   0xc   : > { %p117_p9 = pnand %p7210_p7, %p116_p8 }
   0xe   : > { %120 = sbr.rel (%p117_p9) target bundleno = 1110 (0x456), region = 28 }
  0x15   : > { %s7212_s21 = sshll.u32 %s7899_s13, 4  ;;  %v7852_v0 = vmov 0   ;;  %v7853_v33 = vmov 1   ;;  %v261_v34 = vlaneseq  ;;  %v177_v38 = vld [vmem:[%s11476_s1] ss:$2 sm:$0x3] }
  0x16   : > { %7657 = vset.pattern.permute.xlu1 %v7852_v0  ;;  %7656 = vset.pattern.permute.xlu0 %v7852_v0  ;;  %p139_p10 = scmp.lt.s32.totalorder %s7212_s21, 31  ;;  %s135_s30 = sand.u32 1, %s7842_s10  }
  0x17   : > { %v262_v35 = vshrl.u32 %v261_v34, 7  ;;  %s8301_s3 = sshll.u32 %s135_s30, 9  ;;  %s7478_s5 = sshll.u32 %s7899_s13, 13 }
  0x18   : > { %s11599_s21 = smov (!%p139_p10, %s7212_s21), 31  ;;  %s8347_s4 = scalar_lea.vmem [#allocation2], %s8301_s3 }
  0x19   : > { %s7213_s22 = sshll.u32 %s11599_s21, 3  ;;  %v263_v36 = vsub.s32 0, %v262_v35  ;;  %v267_v37 = vsub.s32 1, %v262_v35  ;;  %s7145_s6 = sshll.u32 %s8347_s4, 4  ;;  %s11427_s6 = int_to_ptr.vmem [resolvable:$true] %s7145_s6 }
  0x1a   : > { %s7930_s25 = scalar_lea.vmem %s11475_s0, %s7213_s22  ;;  %s11425_s13 = scalar_lea.hbm %s11477_s2, %s7478_s5 }
  0x1b   : > { %v147_v1 = vld [vmem:[%s7930_s25 + $0x10] sm:$0xff]  ;;  %v145_v2 = vld [vmem:[%s7930_s25] sm:$0xff]  ;;  %v148_v3 = vld [vmem:[%s7930_s25 + $0x18] sm:$0xff]  ;;  %v264_v39 = vrot.slane %v177_v38, %v263_v36  ;;  %v7951_v40 = vrot.slane %v177_v38, %v267_v37  ;;  %s11434_s14 = scalar_lea.sflag [#allocation3], %s135_s30  ;;  %s7788_s16 = scalar_lea.vmem %s11427_s6, 8192 }
  0x1c   : > { %v163_v4 = vmul.f32 6.2831855, %v147_v1  ;;  %v161_v5 = vmul.f32 6.2831855, %v145_v2  ;;  %v146_v6 = vld [vmem:[%s7930_s25 + $0x8] sm:$0xff]  ;;  %v149_v10 = vld [vmem:[%s7930_s25 + $0x20] sm:$0xff]  ;;  %p7789_p11 = scmp.ne.s32.totalorder %s11427_s6, %s7788_s16 }
  0x1d   : > { %v164_v7 = vmul.f32 6.2831855, %v148_v3  ;;  %v162_v8 = vmul.f32 6.2831855, %v146_v6  ;;  %v150_v9 = vld [vmem:[%s7930_s25 + $0x28] sm:$0xff]  ;;  %v152_v13 = vld [vmem:[%s7930_s25 + $0x38] sm:$0xff] }
  0x1e   : > { %192 = vperm.xlu1 %7657, %v163_v4   ;;  %182 = vperm.xlu0 %7656, %v161_v5   ;;  %v166_v11 = vmul.f32 6.2831855, %v150_v9  ;;  %v165_v12 = vmul.f32 6.2831855, %v149_v10  ;;  %v151_v14 = vld [vmem:[%s7930_s25 + $0x30] sm:$0xff]  ;;  %v154_v17 = vld [vmem:[%s7930_s25 + $0x48] sm:$0xff]  ;;  %p7790_p12 = pnand %p7789_p11, %p7916_p5 }
  0x1f   : > { %v168_v15 = vmul.f32 6.2831855, %v152_v13  ;;  %v167_v16 = vmul.f32 6.2831855, %v151_v14  ;;  %v153_v18 = vld [vmem:[%s7930_s25 + $0x40] sm:$0xff]  ;;  %v156_v21 = vld [vmem:[%s7930_s25 + $0x58] sm:$0xff] }
  0x20   : > { %v170_v19 = vmul.f32 6.2831855, %v154_v17  ;;  %v169_v20 = vmul.f32 6.2831855, %v153_v18  ;;  %v155_v22 = vld [vmem:[%s7930_s25 + $0x50] sm:$0xff]  ;;  %v158_v25 = vld [vmem:[%s7930_s25 + $0x68] sm:$0xff]  ;;  %p7791_p13 = pneg %p7790_p12 }
  0x21   : > { %v172_v23 = vmul.f32 6.2831855, %v156_v21  ;;  %v171_v24 = vmul.f32 6.2831855, %v155_v22  ;;  %v157_v26 = vld [vmem:[%s7930_s25 + $0x60] sm:$0xff]  ;;  %v160_v29 = vld [vmem:[%s7930_s25 + $0x78] sm:$0xff] }
  0x22   : > { %197 = vperm.xlu1 %7657, %v164_v7   ;;  %187 = vperm.xlu0 %7656, %v162_v8   ;;  %v174_v27 = vmul.f32 6.2831855, %v158_v25  ;;  %v173_v28 = vmul.f32 6.2831855, %v157_v26  ;;  %v159_v30 = vld [vmem:[%s7930_s25 + $0x70] sm:$0xff]  ;;  %s7860_s17 = smov [#allocation2]  }
  0x23   : > { %v176_v31 = vmul.f32 6.2831855, %v160_v29  ;;  %v175_v32 = vmul.f32 6.2831855, %v159_v30  ;;  %s7792_s21 = sshll.u32 %s7860_s17, 4  ;;  %s7793_s21 = int_to_ptr.vmem [resolvable:$false] %s7792_s21 }
  0x24   : > { %s7794_s22 = scalar_lea.vmem %s7793_s21, 16384  ;;  %p7795_p0 = scmp.lt.s32.totalorder %s11427_s6, %s7793_s21 }
  0x25   : > { %p7796_p1 = scmp.lt.s32.totalorder %s7794_s22, %s7788_s16 }
  0x26   : > { %207 = vperm.xlu1 %7657, %v166_v11   ;;  %202 = vperm.xlu0 %7656, %v165_v12  }
  0x27   : > { %p7797_p2 = por %p7796_p1, %p7795_p0 }
  0x29   : > { %p7798_p3 = pnand %p7797_p2, %p7791_p13 }
  0x2a   : > { %217 = vperm.xlu1 %7657, %v168_v15   ;;  %212 = vperm.xlu0 %7656, %v167_v16  }
  0x2e   : > { %227 = vperm.xlu1 %7657, %v170_v19   ;;  %222 = vperm.xlu0 %7656, %v169_v20  }
  0x32   : > { %237 = vperm.xlu1 %7657, %v172_v23   ;;  %232 = vperm.xlu0 %7656, %v171_v24  }
  0x36   : > { %247 = vperm.xlu1 %7657, %v174_v27   ;;  %242 = vperm.xlu0 %7656, %v173_v28  }
  0x3a   : > { %257 = vperm.xlu1 %7657, %v176_v31   ;;  %252 = vperm.xlu0 %7656, %v175_v32  }
  0x3e   : > { %7659 = vset.pattern.permute.xlu1 %v7853_v33  ;;  %7658 = vset.pattern.permute.xlu0 %v7853_v33 }
  0x3f   : > { %308 = vperm.xlu1 %7659, %v162_v8   ;;  %304 = vperm.xlu0 %7658, %v161_v5  }
  0x43   : > { %312 = vperm.xlu1 %7659, %v163_v4   ;;  %316 = vperm.xlu0 %7658, %v164_v7  }
  0x47   : > { %320 = vperm.xlu1 %7659, %v165_v12   ;;  %324 = vperm.xlu0 %7658, %v166_v11  }
  0x4b   : > { %328 = vperm.xlu1 %7659, %v167_v16   ;;  %332 = vperm.xlu0 %7658, %v168_v15   ;;  %v7214_v15 = vld [vmem:[%s11476_s1 + $0x1] ss:$2 sm:$0x3] }
  0x4c   : > { %v8028_v22 = vrot.slane %v7214_v15, %v263_v36 }
  0x4f   : > { %336 = vperm.xlu1 %7659, %v169_v20   ;;  %340 = vperm.xlu0 %7658, %v170_v19  }
  0x53   : > { %344 = vperm.xlu1 %7659, %v171_v24   ;;  %348 = vperm.xlu0 %7658, %v172_v23   ;;  %v8030_v23 = vrot.slane %v7214_v15, %v267_v37 }
  0x57   : > { %352 = vperm.xlu1 %7659, %v173_v28   ;;  %356 = vperm.xlu0 %7658, %v174_v27  }
  0x5b   : > { %360 = vperm.xlu1 %7659, %v175_v32   ;;  %364 = vperm.xlu0 %7658, %v176_v31  }
  0x9d   : > { %v193_v41 = vpop.permute.xlu1 %192  ;;  %v7953_v42 = vpop.permute.xlu0 %182 }
  0x9e   : > { %v7955_v43 = vmul.f32 %v264_v39, %v193_v41  ;;  %v7958_v44 = vmul.f32 %v7951_v40, %v193_v41  ;;  %v271_v31 = vmul.f32 %v264_v39, %v7953_v42  ;;  %v272_v15 = vmul.f32 %v7951_v40, %v7953_v42 }
  0xa1   : > { %v198_v45 = vpop.permute.xlu1 %197  ;;  %v188_v46 = vpop.permute.xlu0 %187 }
  0xa2   : > { %v7960_v47 = vmul.f32 %v264_v39, %v198_v45  ;;  %v7963_v48 = vmul.f32 %v7951_v40, %v198_v45  ;;  %v273_v24 = vmul.f32 %v264_v39, %v188_v46  ;;  %v274_v27 = vmul.f32 %v7951_v40, %v188_v46 }
  0xa5   : > { %v208_v49 = vpop.permute.xlu1 %207  ;;  %v203_v50 = vpop.permute.xlu0 %202 }
  0xa6   : > { %v7965_v51 = vmul.f32 %v264_v39, %v208_v49  ;;  %v7968_v52 = vmul.f32 %v7951_v40, %v208_v49  ;;  %v7970_v53 = vmul.f32 %v264_v39, %v203_v50  ;;  %v7973_v54 = vmul.f32 %v7951_v40, %v203_v50 }
  0xa9   : > { %v218_v55 = vpop.permute.xlu1 %217  ;;  %v213_v56 = vpop.permute.xlu0 %212 }
  0xaa   : > { %v7975_v57 = vmul.f32 %v264_v39, %v218_v55  ;;  %v7978_v58 = vmul.f32 %v7951_v40, %v218_v55  ;;  %v7980_v59 = vmul.f32 %v264_v39, %v213_v56  ;;  %v7983_v60 = vmul.f32 %v7951_v40, %v213_v56 }
  0xad   : > { %v228_v61 = vpop.permute.xlu1 %227  ;;  %v223_v62 = vpop.permute.xlu0 %222 }
  0xae   : > { %v7985_v63 = vmul.f32 %v264_v39, %v228_v61  ;;  %v7988_v0 = vmul.f32 %v7951_v40, %v228_v61  ;;  %v7990_v1 = vmul.f32 %v264_v39, %v223_v62  ;;  %v7993_v2 = vmul.f32 %v7951_v40, %v223_v62 }
  0xb0   : > { %11496 = vst [vmem:[#allocation5_spill] sm:$0xff] %v7988_v0 }
  0xb1   : > { %v238_v3 = vpop.permute.xlu1 %237  ;;  %v233_v4 = vpop.permute.xlu0 %232 }
  0xb2   : > { %v7995_v5 = vmul.f32 %v264_v39, %v238_v3  ;;  %v7998_v6 = vmul.f32 %v7951_v40, %v238_v3  ;;  %v8000_v7 = vmul.f32 %v264_v39, %v233_v4  ;;  %v8003_v8 = vmul.f32 %v7951_v40, %v233_v4 }
  0xb4   : > { %11497 = vst [vmem:[#allocation6_spill] sm:$0xff] %v7995_v5  ;;  %11498 = vst [vmem:[#allocation7_spill] sm:$0xff] %v7998_v6 }
  0xb5   : > { %11499 = vst [vmem:[#allocation8_spill] sm:$0xff] %v8000_v7  ;;  %11500 = vst [vmem:[#allocation9_spill] sm:$0xff] %v8003_v8  ;;  %v248_v9 = vpop.permute.xlu1 %247  ;;  %v243_v10 = vpop.permute.xlu0 %242 }
  0xb6   : > { %v8005_v11 = vmul.f32 %v264_v39, %v248_v9  ;;  %v8008_v12 = vmul.f32 %v7951_v40, %v248_v9  ;;  %v8010_v13 = vmul.f32 %v264_v39, %v243_v10  ;;  %v8013_v14 = vmul.f32 %v7951_v40, %v243_v10 }
  0xb8   : > { %11501 = vst [vmem:[#allocation10_spill] sm:$0xff] %v8005_v11  ;;  %11502 = vst [vmem:[#allocation11_spill] sm:$0xff] %v8008_v12 }
  0xb9   : > { %11503 = vst [vmem:[#allocation12_spill] sm:$0xff] %v8010_v13  ;;  %11504 = vst [vmem:[#allocation13_spill] sm:$0xff] %v8013_v14  ;;  %v258_v16 = vpop.permute.xlu1 %257  ;;  %v253_v17 = vpop.permute.xlu0 %252 }
  0xba   : > { %v8018_v18 = vmul.f32 %v264_v39, %v258_v16  ;;  %v8021_v19 = vmul.f32 %v7951_v40, %v258_v16  ;;  %v8023_v20 = vmul.f32 %v264_v39, %v253_v17  ;;  %v8026_v21 = vmul.f32 %v7951_v40, %v253_v17 }
  0xbc   : > { %11505 = vst [vmem:[#allocation14_spill] sm:$0xff] %v8018_v18  ;;  %11506 = vst [vmem:[#allocation15_spill] sm:$0xff] %v8021_v19 }
  0xbd   : > { %11507 = vst [vmem:[#allocation16_spill] sm:$0xff] %v8023_v20  ;;  %11508 = vst [vmem:[#allocation17_spill] sm:$0xff] %v8026_v21 }
  0xbe   : > { %v309_v25 = vpop.permute.xlu1 %308  ;;  %v305_v26 = vpop.permute.xlu0 %304 }
  0xbf   : > { %v380_v28 = vmul.f32 %v8028_v22, %v309_v25  ;;  %v381_v29 = vmul.f32 %v8030_v23, %v309_v25  ;;  %v378_v30 = vmul.f32 %v8028_v22, %v305_v26  ;;  %v379_v62 = vmul.f32 %v8030_v23, %v305_v26 }
  0xc1   : > { %v8037_v32 = vadd.f32 %v380_v28, %v273_v24  ;;  %v8039_v33 = vadd.f32 %v381_v29, %v274_v27  ;;  %v8041_v34 = vadd.f32 %v378_v30, %v271_v31  ;;  %v8055_v27 = vadd.f32 %v379_v62, %v272_v15 }
  0xc3   : > { %v11479_v35 = vand.u32 2147483647, %v8037_v32  ;;  %v653_v36 = vand.u32 2139095040, %v8037_v32  ;;  %v11478_v37 = vand.u32 2147483647, %v8039_v33  ;;  %v757_v38 = vand.u32 2139095040, %v8039_v33 }
  0xc4   : > { %v445_v49 = vand.u32 2139095040, %v8041_v34  ;;  %vm652_vm13 = vcmp.lt.s32.totalorder %v8037_v32, 0 }
  0xc5   : > { %v654_v41 = vshrl.u32 %v653_v36, 23  ;;  %v657_v45 = vand.u32 8388607, %v11479_v35  ;;  %v758_v46 = vshrl.u32 %v757_v38, 23  ;;  %v761_v39 = vand.u32 8388607, %v11478_v37 }
  0xc6   : > { %v446_v56 = vshrl.u32 %v445_v49, 23  ;;  %v11486_v36 = vmov 683565275   ;;  %v11482_v49 = vmov 2102212464  }
  0xc7   : > { %v7223_v50 = vadd.s32 4294967169, %v654_v41  ;;  %v7227_v55 = vadd.s32 4294967169, %v758_v46  ;;  %v658_v3 = vor.u32 8388608, %v657_v45  ;;  %v762_v4 = vor.u32 8388608, %v761_v39 }
  0xc8   : > { %v7215_v10 = vadd.s32 4294967169, %v446_v56  ;;  %v11484_v41 = vmov 2475754826   ;;  %v11480_v46 = vmov 2131351028  }
  0xc9   : > { %v660_v61 = vadd.s32 1, %v7223_v50  ;;  %v764_v9 = vadd.s32 1, %v7227_v55  ;;  %v8057_v28 = vshll.u32 %v658_v3, 8  ;;  %v8059_v29 = vshll.u32 %v762_v4, 8 }
  0xca   : > { %v8062_v30 = vadd.s32 1, %v7215_v10  ;;  %v11488_v55 = vmov 920167782   ;;  %v11490_v10 = vmov 1326507024  }
  0xcb   : > { %vm661_vm0 = vcmp.gt.s32.totalorder %v660_v61, 0  ;;  %vm765_vm1 = vcmp.gt.s32.totalorder %v764_v9, 0 }
  0xcc   : > { %v662_v16 = vsel %vm661_vm0, %v660_v61, 0  ;;  %v766_v25 = vsel %vm765_vm1, %v764_v9, 0  ;;  %vm453_vm6 = vcmp.gt.s32.totalorder %v8062_v30, 0 }
  0xcd   : > { %v663_v17 = vshrl.u32 %v662_v16, 5  ;;  %v664_v24 = vand.u32 31, %v662_v16  ;;  %v8065_v42 = vshrl.u32 %v766_v25, 5  ;;  %v768_v38 = vand.u32 31, %v766_v25 }
  0xcf   : > { %v665_v31 = vsub.s32 32, %v664_v24  ;;  %v667_v40 = vshll.u32 %v11486_v36, %v664_v24  ;;  %v670_v45 = vshll.u32 %v11484_v41, %v664_v24  ;;  %v673_v39 = vshll.u32 %v11480_v46, %v664_v24 }
  0xd0   : > { %v676_v50 = vshll.u32 %v11482_v49, %v664_v24  ;;  %v679_v56 = vshll.u32 %v11488_v55, %v664_v24  ;;  %vm682_vm2 = vcmp.lt.s32.totalorder %v663_v17, 1  ;;  %vm683_vm3 = vcmp.lt.s32.totalorder %v663_v17, 2 }
  0xd1   : > { %v668_v61 = vshrl.u32 %v11484_v41, %v665_v31  ;;  %v671_v62 = vshrl.u32 %v11480_v46, %v665_v31  ;;  %v674_v3 = vshrl.u32 %v11482_v49, %v665_v31  ;;  %v666_v4 = vshrl.u32 %v11486_v36, %v665_v31 }
  0xd2   : > { %v677_v9 = vshrl.u32 %v11488_v55, %v665_v31  ;;  %v680_v15 = vshrl.u32 %v11490_v10, %v665_v31  ;;  %v769_v35 = vsub.s32 32, %v768_v38  ;;  %vm684_vm4 = vcmp.lt.s32.totalorder %v663_v17, 3 }
  0xd3   : > { %v669_v16 = vor.u32 %v668_v61, %v667_v40  ;;  %v672_v25 = vor.u32 %v671_v62, %v670_v45  ;;  %v675_v37 = vor.u32 %v674_v3, %v673_v39  ;;  %vm685_vm5 = vcmp.lt.s32.totalorder %v663_v17, 4 }
  0xd4   : > { %v678_v24 = vor.u32 %v677_v9, %v676_v50  ;;  %v681_v26 = vor.u32 %v680_v15, %v679_v56  ;;  %v11509_v31 = vmov 683565275   ;;  %v11510_v39 = vmov 2475754826  }
  0xd5   : > { %v686_v46 = vsel %vm682_vm2, %v666_v4, %v669_v16  ;;  %v687_v49 = vsel %vm685_vm5, %v675_v37, 2102212464  ;;  %v690_v41 = vsel %vm682_vm2, %v669_v16, %v672_v25  ;;  %v694_v36 = vsel %vm682_vm2, %v672_v25, %v675_v37 }
  0xd6   : > { %v688_v55 = vsel %vm684_vm4, %v672_v25, %v687_v49  ;;  %v691_v19 = vsel %vm685_vm5, %v678_v24, 920167782  ;;  %v695_v18 = vsel %vm685_vm5, %v681_v26, 1326507024  ;;  %v771_v10 = vshll.u32 %v11509_v31, %v768_v38 }
  0xd7   : > { %v692_v40 = vsel %vm684_vm4, %v675_v37, %v691_v19  ;;  %v696_v45 = vsel %vm684_vm4, %v678_v24, %v695_v18  ;;  %v772_v50 = vshrl.u32 %v11510_v39, %v769_v35  ;;  %v774_v56 = vshll.u32 %v11510_v39, %v768_v38 }
  0xd8   : > { %v689_v61 = vsel %vm683_vm3, %v686_v46, %v688_v55  ;;  %v693_v62 = vsel %vm683_vm3, %v690_v41, %v692_v40  ;;  %v697_v3 = vsel %vm683_vm3, %v694_v36, %v696_v45  ;;  %v11511_v4 = vmov 2131351028  }
  0xd9   : > { %v775_v49 = vshrl.u32 %v11511_v4, %v769_v35  ;;  %v8089_v26 = vmul.u32.u64.low %v8057_v28, %v697_v3  ;;  %v8090_v9 = vmul.u32.u64.high %v8057_v28, %v697_v3, %v8089_v26  ;;  %v773_v18 = vor.u32 %v772_v50, %v771_v10 }
  0xda   : > { %v8093_v15 = vmul.u32.u64.low %v8057_v28, %v693_v62  ;;  %v8094_v19 = vmul.u32.u64.high %v8057_v28, %v693_v62, %v8093_v15  ;;  %v777_v16 = vshll.u32 %v11511_v4, %v768_v38  ;;  %v11512_v46 = vmov 2102212464  }
  0xdb   : > { %v776_v37 = vor.u32 %v775_v49, %v774_v56  ;;  %v778_v55 = vshrl.u32 %v11512_v46, %v769_v35  ;;  %v770_v17 = vshrl.u32 %v11509_v31, %v769_v35  ;;  %v780_v36 = vshll.u32 %v11512_v46, %v768_v38 }
  0xdc   : > { %v11513_v41 = vmov 920167782   ;;  %v11514_v24 = vmov 1326507024   ;;  %v705_v45 = vmul.u32 %v8057_v28, %v689_v61  ;;  %vm786_vm7 = vcmp.lt.s32.totalorder %v8065_v42, 1 }
  0xdd   : > { %v781_v25 = vshrl.u32 %v11513_v41, %v769_v35  ;;  %v784_v40 = vshrl.u32 %v11514_v24, %v769_v35  ;;  %v779_v3 = vor.u32 %v778_v55, %v777_v16  ;;  %v783_v62 = vshll.u32 %v11513_v41, %v768_v38 }
  0xde   : > { %vm707_vm8 = vc.u32 %v8090_v9, %v8093_v15  ;;  %v708_v10 = vadd.s32 1, %v8094_v19  ;;  %vm787_vm9 = vcmp.lt.s32.totalorder %v8065_v42, 2  ;;  %vm788_vm10 = vcmp.lt.s32.totalorder %v8065_v42, 3 }
  0xdf   : > { %v782_v50 = vor.u32 %v781_v25, %v780_v36  ;;  %v785_v56 = vor.u32 %v784_v40, %v783_v62  ;;  %vm789_vm11 = vcmp.lt.s32.totalorder %v8065_v42, 4  ;;  %v794_v35 = vsel %vm786_vm7, %v773_v18, %v776_v37 }
  0xe0   : > { %v709_v28 = vsel %vm707_vm8, %v708_v10, %v8094_v19  ;;  %v791_v61 = vsel %vm789_vm11, %v779_v3, 2102212464  ;;  %v798_v49 = vsel %vm786_vm7, %v776_v37, %v779_v3  ;;  %v790_v16 = vsel %vm786_vm7, %v770_v17, %v773_v18 }
  0xe1   : > { %v795_v38 = vsel %vm789_vm11, %v782_v50, 920167782  ;;  %v710_v26 = vadd.s32 %v709_v28, %v705_v45  ;;  %v799_v21 = vsel %vm789_vm11, %v785_v56, 1326507024  ;;  %v792_v20 = vsel %vm788_vm10, %v776_v37, %v791_v61 }
  0xe2   : > { %v796_v55 = vsel %vm788_vm10, %v779_v3, %v795_v38  ;;  %v800_v25 = vsel %vm788_vm10, %v782_v50, %v799_v21  ;;  %v454_v40 = vsel %vm453_vm6, %v8062_v30, 0  ;;  %v793_v21 = vsel %vm787_vm9, %v790_v16, %v792_v20 }
  0xe3   : > { %v797_v36 = vsel %vm787_vm9, %v794_v35, %v796_v55  ;;  %v711_v62 = vadd.s32 536870912, %v710_v26  ;;  %v801_v19 = vsel %vm787_vm9, %v798_v49, %v800_v25  ;;  %v11515_v45 = vand.u32 2147483647, %v8041_v34 }
  0xe4   : > { %v8121_v10 = vmul.u32.u64.low %v8059_v29, %v797_v36  ;;  %v8122_v12 = vmul.u32.u64.high %v8059_v29, %v797_v36, %v8121_v10  ;;  %v8125_v18 = vmul.u32.u64.low %v8059_v29, %v801_v19  ;;  %v8126_v17 = vmul.u32.u64.high %v8059_v29, %v801_v19, %v8125_v18 }
  0xe5   : > { %v712_v37 = vshrl.u32 %v711_v62, 30  ;;  %v449_v3 = vand.u32 8388607, %v11515_v45  ;;  %v456_v30 = vand.u32 31, %v454_v40  ;;  %v549_v50 = vand.u32 2139095040, %v8055_v27 }
  0xe6   : > { %v812_v35 = vadd.s32 1, %v8122_v12  ;;  %v809_v28 = vmul.u32 %v8059_v29, %v793_v21  ;;  %vm811_vm12 = vc.u32 %v8126_v17, %v8121_v10  ;;  %v11492_v20 = vand.u32 2147483647, %v8055_v27 }
  0xe7   : > { %v713_v56 = vshll.u32 %v712_v37, 30  ;;  %v450_v49 = vor.u32 8388608, %v449_v3  ;;  %v457_v16 = vsub.s32 32, %v456_v30  ;;  %v550_v55 = vshrl.u32 %v549_v50, 23 }
  0xe8   : > { %v813_v38 = vsel %vm811_vm12, %v812_v35, %v8122_v12  ;;  %v8141_v25 = vshrl.u32 %v454_v40, 5  ;;  %v8149_v12 = vand.u32 8388607, %v11492_v20  ;;  %v11516_v45 = vand.u32 2147483647, %v8037_v32 }
  0xe9   : > { %v8136_v61 = vsub.s32 %v710_v26, %v713_v56  ;;  %v814_v42 = vadd.s32 %v813_v38, %v809_v28  ;;  %v8145_v19 = vshll.u32 %v450_v49, 8  ;;  %v706_v26 = vadd.s32 %v8093_v15, %v8090_v9 }
  0xea   : > { %v466_v21 = vshrl.u32 %v11512_v46, %v457_v16  ;;  %v7219_v40 = vadd.s32 4294967169, %v550_v55  ;;  %vm8158_vm14 = vcmp.le.f32.partialorder %v11516_v45, 0.7853982  ;;  %v460_v56 = vshrl.u32 %v11510_v39, %v457_v16 }
  0xeb   : > { %v716_v36 = vsub.s32 0, %v8136_v61  ;;  %v815_v62 = vadd.s32 536870912, %v814_v42  ;;  %v463_v35 = vshrl.u32 %v11511_v4, %v457_v16  ;;  %vm474_vm15 = vcmp.lt.s32.totalorder %v8141_v25, 1 }
  0xec   : > { %v736_v28 = vsub.s32 4, %v712_v37  ;;  %v465_v15 = vshll.u32 %v11511_v4, %v456_v30  ;;  %v469_v38 = vshrl.u32 %v11513_v41, %v457_v16  ;;  %vm476_vm0 = vcmp.lt.s32.totalorder %v8141_v25, 3 }
  0xed   : > { %v7224_v29 = vmin.u32 %v716_v36, %v8136_v61  ;;  %v8153_v18 = vshrl.u32 %v815_v62, 30  ;;  %v459_v55 = vshll.u32 %v11509_v31, %v456_v30  ;;  %v462_v36 = vshll.u32 %v11510_v39, %v456_v30 }
  0xee   : > { %v468_v62 = vshll.u32 %v11512_v46, %v456_v30  ;;  %vm475_vm1 = vcmp.lt.s32.totalorder %v8141_v25, 2  ;;  %v467_v45 = vor.u32 %v466_v21, %v465_v15  ;;  %v472_v20 = vshrl.u32 %v11514_v24, %v457_v16 }
  0xef   : > { %v718_v50 = vclz %v7224_v29  ;;  %v817_v9 = vshll.u32 %v8153_v18, 30  ;;  %vm477_vm2 = vcmp.lt.s32.totalorder %v8141_v25, 4  ;;  %v461_v11 = vor.u32 %v460_v56, %v459_v55 }
  0xf0   : > { %v464_v14 = vor.u32 %v463_v35, %v462_v36  ;;  %v470_v13 = vor.u32 %v469_v38, %v468_v62  ;;  %v810_v6 = vadd.s32 %v8121_v10, %v8126_v17  ;;  %v471_v8 = vshll.u32 %v11513_v41, %v456_v30 }
  0xf1   : > { %v7225_v49 = vadd.s32 4294967294, %v718_v50  ;;  %v8173_v29 = vsub.s32 %v814_v42, %v817_v9  ;;  %v737_v42 = vsel %vm652_vm13, %v736_v28, %v712_v37  ;;  %v458_v21 = vshrl.u32 %v11509_v31, %v457_v16 }
  0xf2   : > { %vm756_vm4 = vcmp.lt.s32.totalorder %v8039_v33, 0  ;;  %v473_v35 = vor.u32 %v472_v20, %v471_v8  ;;  %v479_v10 = vsel %vm477_vm2, %v467_v45, 2102212464  ;;  %v482_v30 = vsel %vm474_vm15, %v461_v11, %v464_v14 }
  0xf3   : > { %vm7226_vm3 = vcmp.lt.s32.totalorder %v7225_v49, 0  ;;  %v820_v5 = vsub.s32 0, %v8173_v29  ;;  %v483_v37 = vsel %vm477_vm2, %v470_v13, 920167782  ;;  %v739_v16 = vsel %vm8158_vm14, 0, %v737_v42 }
  0xf4   : > { %v721_v50 = vsel %vm7226_vm3, 0, %v7225_v49  ;;  %v840_v28 = vsub.s32 4, %v8153_v18  ;;  %v486_v38 = vsel %vm474_vm15, %v464_v14, %v467_v45  ;;  %v480_v55 = vsel %vm476_vm0, %v464_v14, %v479_v10 }
  0xf5   : > { %v722_v7 = vsub.s32 32, %v721_v50  ;;  %v726_v0 = vsub.s32 4294967266, %v721_v50  ;;  %v723_v9 = vshll.u32 %v8136_v61, %v721_v50  ;;  %v7228_v56 = vmin.u32 %v820_v5, %v8173_v29 }
  0xf6   : > { %v478_v5 = vsel %vm474_vm15, %v458_v21, %v461_v11  ;;  %v487_v36 = vsel %vm477_vm2, %v473_v35, 1326507024  ;;  %v556_v21 = vadd.s32 1, %v7219_v40  ;;  %vm742_vm15 = vweird.f32 %v8037_v32 }
  0xf7   : > { %v724_v17 = vshrl.u32 %v706_v26, %v722_v7  ;;  %v727_v15 = vadd.s32 127, %v726_v0  ;;  %v822_v61 = vclz %v7228_v56  ;;  %v11519_v7 = vand.u32 2147483647, %v8039_v33 }
  0xf8   : > { %v484_v26 = vsel %vm476_vm0, %v467_v45, %v483_v37  ;;  %v488_v42 = vsel %vm476_vm0, %v470_v13, %v487_v36  ;;  %v481_v13 = vsel %vm475_vm1, %v478_v5, %v480_v55  ;;  %vm557_vm7 = vcmp.gt.s32.totalorder %v556_v21, 0 }
  0xf9   : > { %v725_v8 = vor.u32 %v724_v17, %v723_v9  ;;  %v728_v20 = vshll.u32 %v727_v15, 23  ;;  %vm8199_vm5 = vcmp.le.f32.partialorder %v11519_v7, 0.7853982  ;;  %v7229_v49 = vadd.s32 4294967294, %v822_v61 }
  0xfa   : > { %v485_v11 = vsel %vm475_vm1, %v482_v30, %v484_v26  ;;  %v489_v45 = vsel %vm475_vm1, %v486_v38, %v488_v42  ;;  %v743_v37 = vadd.s32 3, %v739_v16  ;;  %v841_v61 = vsel %vm756_vm4, %v840_v28, %v8153_v18 }
  0xfb   : > { %v729_v62 = vor.u32 4788187, %v728_v20  ;;  %v732_v50 = vcvt.s32.f32 %v725_v8  ;;  %vm7230_vm6 = vcmp.lt.s32.totalorder %v7229_v49, 0  ;;  %v558_v8 = vsel %vm557_vm7, %v556_v21, 0 }
  0xfc   : > { %v8218_v9 = vmul.u32.u64.low %v8145_v19, %v485_v11  ;;  %v8219_v56 = vmul.u32.u64.high %v8145_v19, %v485_v11, %v8218_v9  ;;  %v825_v10 = vsel %vm7230_vm6, 0, %v7229_v49  ;;  %v497_v11 = vmul.u32 %v8145_v19, %v481_v13 }
  0xfd   : > { %v730_v14 = vand.u32 2147483647, %v729_v62  ;;  %v8223_v17 = vmul.u32.u64.low %v8145_v19, %v489_v45  ;;  %v8224_v35 = vmul.u32.u64.high %v8145_v19, %v489_v45, %v8223_v17  ;;  %v826_v15 = vsub.s32 32, %v825_v10 }
  0xfe   : > { %v830_v30 = vsub.s32 4294967266, %v825_v10  ;;  %v827_v20 = vshll.u32 %v8173_v29, %v825_v10  ;;  %v500_v38 = vadd.s32 1, %v8219_v56  ;;  %v560_v25 = vand.u32 31, %v558_v8 }
  0xff   : > { %v733_v40 = vmul.f32 %v732_v50, %v730_v14  ;;  %v828_v7 = vshrl.u32 %v810_v6, %v826_v15  ;;  %vm499_vm8 = vc.u32 %v8224_v35, %v8218_v9  ;;  %v843_v36 = vsel %vm8199_vm5, 0, %v841_v61 }
 0x100   : > { %v831_v26 = vadd.s32 127, %v830_v30  ;;  %v501_v18 = vsel %vm499_vm8, %v500_v38, %v8219_v56  ;;  %v554_v28 = vor.u32 8388608, %v8149_v12  ;;  %v561_v62 = vsub.s32 32, %v560_v25 }
 0x101   : > { %v734_v49 = vxor.u32 2147483648, %v733_v40  ;;  %v829_v5 = vor.u32 %v828_v7, %v827_v20  ;;  %v502_v29 = vadd.s32 %v501_v18, %v497_v11  ;;  %v8245_v50 = vand.u32 3, %v743_v37 }
 0x102   : > { %v832_v55 = vshll.u32 %v831_v26, 23  ;;  %v8247_v21 = vand.u32 3, %v739_v16  ;;  %v847_v45 = vadd.s32 3, %v843_v36  ;;  %v8249_v14 = vand.u32 3, %v843_v36 }
 0x103   : > { %v735_v6 = vsel %vm652_vm13, %v734_v49, %v733_v40  ;;  %v503_v56 = vadd.s32 536870912, %v502_v29  ;;  %v836_v17 = vcvt.s32.f32 %v829_v5  ;;  %v8251_v15 = vshrl.u32 %v558_v8, 5 }
 0x104   : > { %v738_v19 = vsel %vm8158_vm14, %v8037_v32, %v735_v6  ;;  %v833_v42 = vor.u32 4788187, %v832_v55  ;;  %v564_v3 = vshrl.u32 %v11510_v39, %v561_v62  ;;  %v567_v30 = vshrl.u32 %v11511_v4, %v561_v62 }
 0x105   : > { %7660 = vcosq.f32 %v738_v19  ;;  %v8253_v12 = vshrl.u32 %v503_v56, 30  ;;  %v570_v13 = vshrl.u32 %v11512_v46, %v561_v62  ;;  %v563_v40 = vshll.u32 %v11509_v31, %v560_v25 }
 0x106   : > { %7662 = vsinq.f32 %v738_v19  ;;  %v834_v10 = vand.u32 2147483647, %v833_v42  ;;  %v572_v37 = vshll.u32 %v11512_v46, %v560_v25  ;;  %v573_v61 = vshrl.u32 %v11513_v41, %v561_v62 }
 0x107   : > { %vm749_vm9 = vcmp.eq.s32.totalorder %v8245_v50, 2  ;;  %vm4106_vm10 = vcmp.eq.s32.totalorder %v8247_v21, 2  ;;  %v505_v8 = vshll.u32 %v8253_v12, 30  ;;  %v566_v20 = vshll.u32 %v11510_v39, %v560_v25 }
 0x108   : > { %v837_v16 = vmul.f32 %v836_v17, %v834_v10  ;;  %v569_v7 = vshll.u32 %v11511_v4, %v560_v25  ;;  %v576_v26 = vshrl.u32 %v11514_v24, %v561_v62  ;;  %vm746_vm11 = vcmp.eq.s32.totalorder %v8245_v50, 0 }
 0x109   : > { %v8268_v49 = vand.u32 3, %v847_v45  ;;  %vm4103_vm12 = vcmp.eq.s32.totalorder %v8247_v21, 0  ;;  %v574_v11 = vor.u32 %v573_v61, %v572_v37  ;;  %v575_v5 = vshll.u32 %v11513_v41, %v560_v25 }
 0x10a   : > { %v838_v38 = vxor.u32 2147483648, %v837_v16  ;;  %vm745_vm13 = vcmp.lt.s32.totalorder %v8245_v50, 2  ;;  %vm4102_vm14 = vcmp.lt.s32.totalorder %v8247_v21, 2  ;;  %v8274_v55 = vsub.s32 %v502_v29, %v505_v8 }
 0x10b   : > { %v565_v36 = vor.u32 %v564_v3, %v563_v40  ;;  %v568_v18 = vor.u32 %v567_v30, %v566_v20  ;;  %v571_v6 = vor.u32 %v570_v13, %v569_v7  ;;  %v577_v42 = vor.u32 %v576_v26, %v575_v5 }
 0x10c   : > { %v839_v19 = vsel %vm756_vm4, %v838_v38, %v837_v16  ;;  %vm578_vm0 = vcmp.lt.s32.totalorder %v8251_v15, 1  ;;  %v8280_v45 = vshll.u32 %v554_v28, 8  ;;  %v508_v29 = vsub.s32 0, %v8274_v55 }
 0x10d   : > { %v842_v25 = vsel %vm8199_vm5, %v8039_v33, %v839_v19  ;;  %v562_v56 = vshrl.u32 %v11509_v31, %v561_v62  ;;  %vm581_vm1 = vcmp.lt.s32.totalorder %v8251_v15, 4  ;;  %v528_v10 = vsub.s32 4, %v8253_v12 }
 0x10e   : > { %7664 = vcosq.f32 %v842_v25  ;;  %vm580_vm2 = vcmp.lt.s32.totalorder %v8251_v15, 3  ;;  %v587_v28 = vsel %vm581_vm1, %v574_v11, 920167782  ;;  %vm444_vm3 = vcmp.lt.s32.totalorder %v8041_v34, 0 }
 0x10f   : > { %v7661_v17 = vpop.eup %7660  ;;  %7666 = vsinq.f32 %v842_v25  ;;  %v7216_v0 = vmin.u32 %v508_v29, %v8274_v55  ;;  %v586_v3 = vsel %vm578_vm0, %v565_v36, %v568_v18  ;;  %v588_v62 = vsel %vm580_vm2, %v571_v6, %v587_v28  ;;  %v313_v28 = vpop.permute.xlu1 %312 }
 0x110   : > { %v7663_v30 = vpop.eup %7662  ;;  %v750_v13 = vxor.u32 2147483648, %v7661_v17  ;;  %vm579_vm4 = vcmp.lt.s32.totalorder %v8251_v15, 2  ;;  %v590_v16 = vsel %vm578_vm0, %v568_v18, %v571_v6  ;;  %v591_v40 = vsel %vm581_vm1, %v577_v42, 1326507024 }
 0x111   : > { %v747_v37 = vxor.u32 2147483648, %v7663_v30  ;;  %v510_v61 = vclz %v7216_v0  ;;  %v582_v8 = vsel %vm578_vm0, %v562_v56, %v565_v36  ;;  %v583_v20 = vsel %vm581_vm1, %v571_v6, 2102212464 }
 0x112   : > { %v751_v7 = vsel %vm749_vm9, %v750_v13, %v7663_v30  ;;  %v4108_v26 = vsel %vm4106_vm10, %v750_v13, %v7663_v30  ;;  %vm4209_vm5 = vcmp.eq.s32.totalorder %v8249_v14, 2  ;;  %v589_v38 = vsel %vm579_vm4, %v586_v3, %v588_v62 }
 0x113   : > { %v592_v5 = vsel %vm580_vm2, %v574_v11, %v591_v40  ;;  %v748_v36 = vsel %vm746_vm11, %v7661_v17, %v747_v37  ;;  %v4105_v6 = vsel %vm4103_vm12, %v7661_v17, %v747_v37  ;;  %vm4206_vm6 = vcmp.eq.s32.totalorder %v8249_v14, 0 }
 0x114   : > { %v7217_v19 = vadd.s32 4294967294, %v510_v61  ;;  %v593_v42 = vsel %vm579_vm4, %v590_v16, %v592_v5  ;;  %v752_v25 = vsel %vm745_vm13, %v748_v36, %v751_v7  ;;  %vm849_vm7 = vcmp.lt.s32.totalorder %v8268_v49, 2 }
 0x115   : > { %v4109_v11 = vsel %vm4102_vm14, %v4105_v6, %v4108_v26  ;;  %vm4205_vm8 = vcmp.lt.s32.totalorder %v8249_v14, 2  ;;  %v8335_v29 = vmul.u32.u64.low %v8280_v45, %v593_v42  ;;  %v8336_v56 = vmul.u32.u64.high %v8280_v45, %v593_v42, %v8335_v29 }
 0x116   : > { %v753_v17 = vsel %vm742_vm15, nan, %v752_v25  ;;  %vm846_vm9 = vweird.f32 %v8039_v33  ;;  %v4110_v50 = vsel %vm742_vm15, nan, %v4109_v11  ;;  %vm7218_vm10 = vcmp.lt.s32.totalorder %v7217_v19, 0 }
 0x117   : > { %v584_v21 = vsel %vm580_vm2, %v568_v18, %v583_v20  ;;  %vm850_vm11 = vcmp.eq.s32.totalorder %v8268_v49, 0  ;;  %3772 = vst [vmem:[%s8347_s4 + $0x20] sm:$0xff] %v753_v17  ;;  %7100 = vst [vmem:[%s8347_s4 + $0x30] sm:$0xff] %v4110_v50  ;;  %v513_v0 = vsel %vm7218_vm10, 0, %v7217_v19  ;;  %v498_v32 = vadd.s32 %v8218_v9, %v8224_v35 }
 0x118   : > { %v8352_v3 = vmul.u32.u64.low %v8280_v45, %v589_v38  ;;  %v8353_v62 = vmul.u32.u64.high %v8280_v45, %v589_v38, %v8352_v3  ;;  %v514_v30 = vsub.s32 32, %v513_v0  ;;  %v518_v13 = vsub.s32 4294967266, %v513_v0  ;;  %v7665_v16 = vpop.eup %7664 }
 0x119   : > { %v382_v18 = vmul.f32 %v8028_v22, %v313_v28  ;;  %vm853_vm12 = vcmp.eq.s32.totalorder %v8268_v49, 2  ;;  %v515_v40 = vshll.u32 %v8274_v55, %v513_v0  ;;  %v529_v37 = vsel %vm444_vm3, %v528_v10, %v8253_v12  ;;  %v7667_v20 = vpop.eup %7666 }
 0x11a   : > { %v585_v61 = vsel %vm579_vm4, %v582_v8, %v584_v21  ;;  %v854_v7 = vxor.u32 2147483648, %v7665_v16  ;;  %v516_v26 = vshrl.u32 %v498_v32, %v514_v30  ;;  %v519_v9 = vadd.s32 127, %v518_v13 }
 0x11b   : > { %vm603_vm13 = vc.u32 %v8336_v56, %v8352_v3  ;;  %v851_v35 = vxor.u32 2147483648, %v7667_v20  ;;  %v604_v38 = vadd.s32 1, %v8353_v62  ;;  %v383_v5 = vmul.f32 %v8030_v23, %v313_v28 }
 0x11c   : > { %v8371_v55 = vadd.f32 %v382_v18, %v7955_v43  ;;  %v855_v36 = vsel %vm853_vm12, %v854_v7, %v7667_v20  ;;  %v4211_v15 = vsel %vm4209_vm5, %v854_v7, %v7667_v20  ;;  %v517_v12 = vor.u32 %v516_v26, %v515_v40 }
 0x11d   : > { %v520_v10 = vshll.u32 %v519_v9, 23  ;;  %v852_v8 = vsel %vm850_vm11, %v7665_v16, %v851_v35  ;;  %v4208_v6 = vsel %vm4206_vm6, %v7665_v16, %v851_v35  ;;  %v601_v19 = vmul.u32 %v8280_v45, %v585_v61 }
 0x11e   : > { %v605_v42 = vsel %vm603_vm13, %v604_v38, %v8353_v62  ;;  %v856_v43 = vsel %vm849_vm7, %v852_v8, %v855_v36  ;;  %v4212_v25 = vsel %vm4205_vm8, %v4208_v6, %v4211_v15  ;;  %v8386_v29 = vadd.f32 %v383_v5, %v7958_v44 }
 0x11f   : > { %v521_v11 = vor.u32 4788187, %v520_v10  ;;  %v857_v28 = vsel %vm846_vm9, nan, %v856_v43  ;;  %v4213_v17 = vsel %vm846_vm9, nan, %v4212_v25  ;;  %v11522_v45 = vand.u32 2147483647, %v8041_v34 }
 0x120   : > { %v606_v49 = vadd.s32 %v605_v42, %v601_v19  ;;  %3773 = vst [vmem:[%s8347_s4 + $0x28] sm:$0xff] %v857_v28  ;;  %7101 = vst [vmem:[%s8347_s4 + $0x38] sm:$0xff] %v4213_v17  ;;  %v524_v21 = vcvt.s32.f32 %v517_v12  ;;  %v861_v0 = vand.u32 2139095040, %v8371_v55  ;;  %v858_v33 = vand.u32 2147483647, %v8371_v55 }
 0x121   : > { %vm8394_vm14 = vcmp.le.f32.partialorder %v11522_v45, 0.7853982  ;;  %v522_v14 = vand.u32 2147483647, %v521_v11  ;;  %v965_v13 = vand.u32 2139095040, %v8386_v29  ;;  %vm548_vm0 = vcmp.lt.s32.totalorder %v8055_v27, 0 }
 0x122   : > { %v531_v44 = vsel %vm8394_vm14, 0, %v529_v37  ;;  %v607_v62 = vadd.s32 536870912, %v606_v49  ;;  %v862_v30 = vshrl.u32 %v861_v0, 23  ;;  %v865_v26 = vand.u32 8388607, %v858_v33 }
 0x123   : > { %v525_v32 = vmul.f32 %v524_v21, %v522_v14  ;;  %v535_v18 = vadd.s32 3, %v531_v44  ;;  %v966_v20 = vshrl.u32 %v965_v13, 23  ;;  %v8416_v12 = vand.u32 3, %v531_v44 }
 0x124   : > { %v608_v16 = vshrl.u32 %v607_v62, 30  ;;  %v7231_v61 = vadd.s32 4294967169, %v862_v30  ;;  %v866_v6 = vor.u32 8388608, %v865_v26  ;;  %v11493_v19 = vand.u32 2147483647, %v8386_v29 }
 0x125   : > { %v526_v40 = vxor.u32 2147483648, %v525_v32  ;;  %v7235_v35 = vadd.s32 4294967169, %v966_v20  ;;  %v8412_v5 = vand.u32 3, %v535_v18  ;;  %v11525_v43 = vand.u32 2147483647, %v8055_v27 }
 0x126   : > { %v609_v7 = vshll.u32 %v608_v16, 30  ;;  %v868_v9 = vadd.s32 1, %v7231_v61  ;;  %v632_v15 = vsub.s32 4, %v608_v16  ;;  %v602_v17 = vadd.s32 %v8352_v3, %v8336_v56 }
 0x127   : > { %v527_v37 = vsel %vm444_vm3, %v526_v40, %v525_v32  ;;  %v972_v10 = vadd.s32 1, %v7235_v35  ;;  %vm8423_vm1 = vcmp.le.f32.partialorder %v11525_v43, 0.7853982  ;;  %vm541_vm3 = vcmp.eq.s32.totalorder %v8412_v5, 2 }
 0x128   : > { %v530_v38 = vsel %vm8394_vm14, %v8041_v34, %v527_v37  ;;  %v8414_v36 = vsub.s32 %v606_v49, %v609_v7  ;;  %vm869_vm15 = vcmp.gt.s32.totalorder %v868_v9, 0  ;;  %v633_v28 = vsel %vm548_vm0, %v632_v15, %v608_v16 }
 0x129   : > { %7668 = vcosq.f32 %v530_v38  ;;  %v870_v42 = vsel %vm869_vm15, %v868_v9, 0  ;;  %vm973_vm2 = vcmp.gt.s32.totalorder %v972_v10, 0  ;;  %vm3900_vm4 = vcmp.eq.s32.totalorder %v8416_v12, 2 }
 0x12a   : > { %7670 = vsinq.f32 %v530_v38  ;;  %v612_v8 = vsub.s32 0, %v8414_v36  ;;  %v872_v45 = vand.u32 31, %v870_v42  ;;  %vm538_vm5 = vcmp.eq.s32.totalorder %v8412_v5, 0 }
 0x12b   : > { %vm3897_vm6 = vcmp.eq.s32.totalorder %v8416_v12, 0  ;;  %v8436_v49 = vshrl.u32 %v870_v42, 5  ;;  %v8438_v14 = vshll.u32 %v866_v6, 8  ;;  %v8442_v21 = vand.u32 8388607, %v11493_v19 }
 0x12c   : > { %v7220_v11 = vmin.u32 %v612_v8, %v8414_v36  ;;  %vm537_vm7 = vcmp.lt.s32.totalorder %v8412_v5, 2  ;;  %v8447_v56 = vsel %vm8423_vm1, 0, %v633_v28  ;;  %vm3896_vm8 = vcmp.lt.s32.totalorder %v8416_v12, 2 }
 0x12d   : > { %v873_v3 = vsub.s32 32, %v872_v45  ;;  %v875_v44 = vshll.u32 %v11509_v31, %v872_v45  ;;  %v8452_v0 = vsel %vm973_vm2, %v972_v10, 0  ;;  %vm534_vm9 = vweird.f32 %v8041_v34 }
 0x12e   : > { %v614_v50 = vclz %v7220_v11  ;;  %v878_v32 = vshll.u32 %v11510_v39, %v872_v45  ;;  %v881_v30 = vshll.u32 %v11511_v4, %v872_v45  ;;  %v884_v13 = vshll.u32 %v11512_v46, %v872_v45 }
 0x12f   : > { %v876_v18 = vshrl.u32 %v11510_v39, %v873_v3  ;;  %v879_v16 = vshrl.u32 %v11511_v4, %v873_v3  ;;  %v882_v40 = vshrl.u32 %v11512_v46, %v873_v3  ;;  %v887_v61 = vshll.u32 %v11513_v41, %v872_v45 }
 0x130   : > { %v7221_v62 = vadd.s32 4294967294, %v614_v50  ;;  %v885_v20 = vshrl.u32 %v11513_v41, %v873_v3  ;;  %v888_v7 = vshrl.u32 %v11514_v24, %v873_v3  ;;  %vm890_vm11 = vcmp.lt.s32.totalorder %v8436_v49, 1 }
 0x131   : > { %v874_v9 = vshrl.u32 %v11509_v31, %v873_v3  ;;  %v877_v35 = vor.u32 %v876_v18, %v875_v44  ;;  %v880_v38 = vor.u32 %v879_v16, %v878_v32  ;;  %v883_v42 = vor.u32 %v882_v40, %v881_v30 }
 0x132   : > { %vm7222_vm10 = vcmp.lt.s32.totalorder %v7221_v62, 0  ;;  %v886_v28 = vor.u32 %v885_v20, %v884_v13  ;;  %v889_v45 = vor.u32 %v888_v7, %v887_v61  ;;  %vm892_vm12 = vcmp.lt.s32.totalorder %v8436_v49, 3 }
 0x133   : > { %v7669_v26 = vpop.eup %7668  ;;  %v617_v37 = vsel %vm7222_vm10, 0, %v7221_v62  ;;  %vm893_vm13 = vcmp.lt.s32.totalorder %v8436_v49, 4  ;;  %v898_v61 = vsel %vm890_vm11, %v877_v35, %v880_v38  ;;  %v894_v5 = vsel %vm890_vm11, %v874_v9, %v877_v35 }
 0x134   : > { %v7671_v15 = vpop.eup %7670  ;;  %v542_v10 = vxor.u32 2147483648, %v7669_v26  ;;  %v618_v8 = vsub.s32 32, %v617_v37  ;;  %v622_v6 = vsub.s32 4294967266, %v617_v37  ;;  %v619_v11 = vshll.u32 %v8414_v36, %v617_v37 }
 0x135   : > { %v539_v43 = vxor.u32 2147483648, %v7671_v15  ;;  %v895_v40 = vsel %vm893_vm13, %v883_v42, 2102212464  ;;  %vm891_vm14 = vcmp.lt.s32.totalorder %v8436_v49, 2  ;;  %v902_v7 = vsel %vm890_vm11, %v880_v38, %v883_v42 }
 0x136   : > { %v543_v50 = vsel %vm541_vm3, %v542_v10, %v7671_v15  ;;  %v620_v19 = vshrl.u32 %v602_v17, %v618_v8  ;;  %v623_v62 = vadd.s32 127, %v622_v6  ;;  %v3902_v3 = vsel %vm3900_vm4, %v542_v10, %v7671_v15  ;;  %v8506_v10 = vpop.permute.xlu0 %316 }
 0x137   : > { %v540_v44 = vsel %vm538_vm5, %v7669_v26, %v539_v43  ;;  %v3899_v32 = vsel %vm3897_vm6, %v7669_v26, %v539_v43  ;;  %v896_v12 = vsel %vm892_vm12, %v880_v38, %v895_v40  ;;  %v903_v26 = vsel %vm893_vm13, %v889_v45, 1326507024 }
 0x138   : > { %v544_v36 = vsel %vm537_vm7, %v540_v44, %v543_v50  ;;  %v621_v17 = vor.u32 %v620_v19, %v619_v11  ;;  %v624_v30 = vshll.u32 %v623_v62, 23  ;;  %v3903_v13 = vsel %vm3896_vm8, %v3899_v32, %v3902_v3 }
 0x139   : > { %v545_v18 = vsel %vm534_vm9, nan, %v544_v36  ;;  %v3904_v16 = vsel %vm534_vm9, nan, %v3903_v13  ;;  %v899_v19 = vsel %vm893_vm13, %v886_v28, 920167782  ;;  %v904_v35 = vsel %vm892_vm12, %v886_v28, %v903_v26 }
 0x13a   : > { %v625_v20 = vor.u32 4788187, %v624_v30  ;;  %3770 = vst [vmem:[%s8347_s4] sm:$0xff] %v545_v18  ;;  %7098 = vst [vmem:[%s8347_s4 + $0x10] sm:$0xff] %v3904_v16  ;;  %v900_v34 = vsel %vm892_vm12, %v883_v42, %v899_v19  ;;  %v628_v15 = vcvt.s32.f32 %v621_v17  ;;  %v897_v8 = vsel %vm891_vm14, %v894_v5, %v896_v12 }
 0x13b   : > { %v901_v9 = vsel %vm891_vm14, %v898_v61, %v900_v34  ;;  %v905_v6 = vsel %vm891_vm14, %v902_v7, %v904_v35  ;;  %v976_v45 = vand.u32 31, %v8452_v0  ;;  %v639_v62 = vadd.s32 3, %v8447_v56 }
 0x13c   : > { %v626_v37 = vand.u32 2147483647, %v625_v20  ;;  %v8509_v43 = vmul.u32.u64.low %v8438_v14, %v901_v9  ;;  %v8510_v11 = vmul.u32.u64.high %v8438_v14, %v901_v9, %v8509_v43  ;;  %v8520_v49 = vand.u32 3, %v8447_v56 }
 0x13d   : > { %v8514_v38 = vmul.u32.u64.low %v8438_v14, %v905_v6  ;;  %v8515_v42 = vmul.u32.u64.high %v8438_v14, %v905_v6, %v8514_v38  ;;  %v970_v28 = vor.u32 8388608, %v8442_v21  ;;  %v384_v3 = vmul.f32 %v8028_v22, %v8506_v10 }
 0x13e   : > { %v629_v50 = vmul.f32 %v628_v15, %v626_v37  ;;  %v913_v32 = vmul.u32 %v8438_v14, %v897_v8  ;;  %v8527_v36 = vshrl.u32 %v8452_v0, 5  ;;  %v977_v17 = vsub.s32 32, %v976_v45 }
 0x13f   : > { %v916_v30 = vadd.s32 1, %v8510_v11  ;;  %v979_v13 = vshll.u32 %v11509_v31, %v976_v45  ;;  %v982_v18 = vshll.u32 %v11510_v39, %v976_v45  ;;  %v985_v56 = vshll.u32 %v11511_v4, %v976_v45 }
 0x140   : > { %v630_v44 = vxor.u32 2147483648, %v629_v50  ;;  %vm915_vm15 = vc.u32 %v8515_v42, %v8509_v43  ;;  %v988_v14 = vshll.u32 %v11512_v46, %v976_v45  ;;  %v991_v0 = vshll.u32 %v11513_v41, %v976_v45 }
 0x141   : > { %v917_v40 = vsel %vm915_vm15, %v916_v30, %v8510_v11  ;;  %v980_v61 = vshrl.u32 %v11510_v39, %v977_v17  ;;  %v983_v20 = vshrl.u32 %v11511_v4, %v977_v17  ;;  %v986_v12 = vshrl.u32 %v11512_v46, %v977_v17 }
 0x142   : > { %v631_v21 = vsel %vm548_vm0, %v630_v44, %v629_v50  ;;  %v918_v5 = vadd.s32 %v917_v40, %v913_v32  ;;  %v989_v19 = vshrl.u32 %v11513_v41, %v977_v17  ;;  %v992_v26 = vshrl.u32 %v11514_v24, %v977_v17 }
 0x143   : > { %v634_v16 = vsel %vm8423_vm1, %v8055_v27, %v631_v21  ;;  %v981_v34 = vor.u32 %v980_v61, %v979_v13  ;;  %v984_v7 = vor.u32 %v983_v20, %v982_v18  ;;  %v987_v25 = vor.u32 %v986_v12, %v985_v56 }
 0x144   : > { %7672 = vcosq.f32 %v634_v16  ;;  %v919_v37 = vadd.s32 536870912, %v918_v5  ;;  %v990_v15 = vor.u32 %v989_v19, %v988_v14  ;;  %vm994_vm0 = vcmp.lt.s32.totalorder %v8527_v36, 1 }
 0x145   : > { %7674 = vsinq.f32 %v634_v16  ;;  %v993_v9 = vor.u32 %v992_v26, %v991_v0  ;;  %vm997_vm1 = vcmp.lt.s32.totalorder %v8527_v36, 4  ;;  %v1002_v35 = vsel %vm994_vm0, %v981_v34, %v984_v7 }
 0x146   : > { %v1010_v8 = vshll.u32 %v970_v28, 8  ;;  %v920_v6 = vshrl.u32 %v919_v37, 30  ;;  %vm996_vm2 = vcmp.lt.s32.totalorder %v8527_v36, 3  ;;  %v1003_v11 = vsel %vm997_vm1, %v990_v15, 920167782 }
 0x147   : > { %v8554_v50 = vadd.f32 %v384_v3, %v7960_v47  ;;  %vm995_vm3 = vcmp.lt.s32.totalorder %v8527_v36, 2  ;;  %v1004_v38 = vsel %vm996_vm2, %v987_v25, %v1003_v11  ;;  %v1006_v45 = vsel %vm994_vm0, %v984_v7, %v987_v25 }
 0x148   : > { %v1007_v44 = vsel %vm997_vm1, %v993_v9, 1326507024  ;;  %v921_v32 = vshll.u32 %v920_v6, 30  ;;  %v978_v30 = vshrl.u32 %v11509_v31, %v977_v17  ;;  %v999_v28 = vsel %vm997_vm1, %v987_v25, 2102212464 }
 0x149   : > { %v1005_v13 = vsel %vm995_vm3, %v1002_v35, %v1004_v38  ;;  %vm638_vm4 = vweird.f32 %v8055_v27  ;;  %v640_v47 = vand.u32 3, %v639_v62  ;;  %v1008_v3 = vsel %vm996_vm2, %v990_v15, %v1007_v44 }
 0x14a   : > { %v8567_v18 = vmul.u32.u64.low %v1010_v8, %v1005_v13  ;;  %v8568_v56 = vmul.u32.u64.high %v1010_v8, %v1005_v13, %v8567_v18  ;;  %vm860_vm5 = vcmp.lt.s32.totalorder %v8371_v55, 0  ;;  %v8572_v21 = vsub.s32 %v918_v5, %v921_v32 }
 0x14b   : > { %v998_v17 = vsel %vm994_vm0, %v978_v30, %v981_v34  ;;  %v1009_v14 = vsel %vm995_vm3, %v1006_v45, %v1008_v3  ;;  %v385_v62 = vmul.f32 %v8030_v23, %v8506_v10  ;;  %v1000_v0 = vsel %vm996_vm2, %v984_v7, %v999_v28 }
 0x14c   : > { %v8582_v16 = vmul.u32.u64.low %v1010_v8, %v1009_v14  ;;  %v8583_v40 = vmul.u32.u64.high %v1010_v8, %v1009_v14, %v8582_v16  ;;  %v1069_v61 = vand.u32 2139095040, %v8554_v50  ;;  %vm3999_vm6 = vcmp.lt.s32.totalorder %v8520_v49, 2 }
 0x14d   : > { %vm4000_vm7 = vcmp.eq.s32.totalorder %v8520_v49, 0  ;;  %vm4003_vm8 = vcmp.eq.s32.totalorder %v8520_v49, 2  ;;  %v924_v5 = vsub.s32 0, %v8572_v21  ;;  %vm642_vm9 = vcmp.eq.s32.totalorder %v640_v47, 0 }
 0x14e   : > { %v7673_v20 = vpop.eup %7672  ;;  %vm645_vm10 = vcmp.eq.s32.totalorder %v640_v47, 2  ;;  %v944_v19 = vsub.s32 4, %v920_v6  ;;  %v1001_v26 = vsel %vm995_vm3, %v998_v17, %v1000_v0  ;;  %v1020_v37 = vadd.s32 1, %v8568_v56 }
 0x14f   : > { %v7675_v12 = vpop.eup %7674  ;;  %v646_v10 = vxor.u32 2147483648, %v7673_v20  ;;  %v7232_v7 = vmin.u32 %v924_v5, %v8572_v21  ;;  %vm1019_vm11 = vc.u32 %v8583_v40, %v8567_v18  ;;  %v1070_v9 = vshrl.u32 %v1069_v61, 23 }
 0x150   : > { %v643_v34 = vxor.u32 2147483648, %v7675_v12  ;;  %vm641_vm12 = vcmp.lt.s32.totalorder %v640_v47, 2  ;;  %v1017_v44 = vmul.u32 %v1010_v8, %v1001_v26  ;;  %v1066_v32 = vand.u32 2147483647, %v8554_v50 }
 0x151   : > { %v647_v25 = vsel %vm645_vm10, %v646_v10, %v7675_v12  ;;  %v4005_v15 = vsel %vm4003_vm8, %v646_v10, %v7675_v12  ;;  %v926_v38 = vclz %v7232_v7  ;;  %v1021_v47 = vsel %vm1019_vm11, %v1020_v37, %v8568_v56 }
 0x152   : > { %v644_v35 = vsel %vm642_vm9, %v7673_v20, %v643_v34  ;;  %v4002_v11 = vsel %vm4000_vm7, %v7673_v20, %v643_v34  ;;  %v945_v3 = vsel %vm860_vm5, %v944_v19, %v920_v6  ;;  %v1022_v17 = vadd.s32 %v1021_v47, %v1017_v44 }
 0x153   : > { %v648_v45 = vsel %vm641_vm12, %v644_v35, %v647_v25  ;;  %v4006_v36 = vsel %vm3999_vm6, %v4002_v11, %v4005_v15  ;;  %v7233_v13 = vadd.s32 4294967294, %v926_v38  ;;  %v8611_v49 = vadd.f32 %v385_v62, %v7963_v48 }
 0x154   : > { %v649_v30 = vsel %vm638_vm4, nan, %v648_v45  ;;  %v4007_v28 = vsel %vm638_vm4, nan, %v4006_v36  ;;  %v7239_v8 = vadd.s32 4294967169, %v1070_v9  ;;  %vm8615_vm13 = vcmp.le.f32.partialorder %v858_v33, 0.7853982 }
 0x155   : > { %3771 = vst [vmem:[%s8347_s4 + $0x8] sm:$0xff] %v649_v30  ;;  %7099 = vst [vmem:[%s8347_s4 + $0x18] sm:$0xff] %v4007_v28  ;;  %vm7234_vm14 = vcmp.lt.s32.totalorder %v7233_v13, 0  ;;  %v914_v27 = vadd.s32 %v8509_v43, %v8515_v42  ;;  %v1023_v0 = vadd.s32 536870912, %v1022_v17  ;;  %v947_v48 = vsel %vm8615_vm13, 0, %v945_v3 }
 0x156   : > { %v929_v56 = vsel %vm7234_vm14, 0, %v7233_v13  ;;  %v1076_v16 = vadd.s32 1, %v7239_v8  ;;  %v1073_v62 = vand.u32 8388607, %v1066_v32  ;;  %v1173_v33 = vand.u32 2139095040, %v8611_v49 }
 0x157   : > { %v930_v61 = vsub.s32 32, %v929_v56  ;;  %v934_v6 = vsub.s32 4294967266, %v929_v56  ;;  %v1024_v20 = vshrl.u32 %v1023_v0, 30  ;;  %v931_v5 = vshll.u32 %v8572_v21, %v929_v56 }
 0x158   : > { %vm1077_vm15 = vcmp.gt.s32.totalorder %v1076_v16, 0  ;;  %v951_v42 = vadd.s32 3, %v947_v48  ;;  %v1074_v37 = vor.u32 8388608, %v1073_v62  ;;  %v1170_v25 = vand.u32 2147483647, %v8611_v49 }
 0x159   : > { %v932_v12 = vshrl.u32 %v914_v27, %v930_v61  ;;  %v935_v10 = vadd.s32 127, %v934_v6  ;;  %v1078_v43 = vsel %vm1077_vm15, %v1076_v16, 0  ;;  %v1025_v19 = vshll.u32 %v1024_v20, 30 }
 0x15a   : > { %v1080_v34 = vand.u32 31, %v1078_v43  ;;  %vm964_vm0 = vcmp.lt.s32.totalorder %v8386_v29, 0  ;;  %v1048_v11 = vsub.s32 4, %v1024_v20  ;;  %v1174_v38 = vshrl.u32 %v1173_v33, 23 }
 0x15b   : > { %v933_v7 = vor.u32 %v932_v12, %v931_v5  ;;  %v936_v26 = vshll.u32 %v935_v10, 23  ;;  %v8628_v15 = vsub.s32 %v1022_v17, %v1025_v19  ;;  %v8631_v21 = vand.u32 3, %v951_v42 }
 0x15c   : > { %v1081_v9 = vsub.s32 32, %v1080_v34  ;;  %v1018_v45 = vadd.s32 %v8567_v18, %v8583_v40  ;;  %v8636_v44 = vand.u32 3, %v947_v48  ;;  %v8638_v13 = vshll.u32 %v1074_v37, 8 }
 0x15d   : > { %v937_v35 = vor.u32 4788187, %v936_v26  ;;  %v1028_v36 = vsub.s32 0, %v8628_v15  ;;  %v940_v28 = vcvt.s32.f32 %v933_v7  ;;  %v8642_v47 = vand.u32 8388607, %v1170_v25 }
 0x15e   : > { %v8645_v17 = vshrl.u32 %v1078_v43, 5  ;;  %v1084_v8 = vshrl.u32 %v11510_v39, %v1081_v9  ;;  %v1087_v18 = vshrl.u32 %v11511_v4, %v1081_v9  ;;  %v1049_v27 = vsel %vm964_vm0, %v1048_v11, %v1024_v20 }
 0x15f   : > { %v938_v30 = vand.u32 2147483647, %v937_v35  ;;  %v7236_v3 = vmin.u32 %v1028_v36, %v8628_v15  ;;  %v1083_v56 = vshll.u32 %v11509_v31, %v1080_v34  ;;  %v7243_v0 = vadd.s32 4294967169, %v1174_v38 }
 0x160   : > { %v1082_v61 = vshrl.u32 %v11509_v31, %v1081_v9  ;;  %v1086_v6 = vshll.u32 %v11510_v39, %v1080_v34  ;;  %v1089_v48 = vshll.u32 %v11511_v4, %v1080_v34  ;;  %v1090_v33 = vshrl.u32 %v11512_v46, %v1081_v9 }
 0x161   : > { %v941_v40 = vmul.f32 %v940_v28, %v938_v30  ;;  %v1030_v16 = vclz %v7236_v3  ;;  %v1092_v5 = vshll.u32 %v11512_v46, %v1080_v34  ;;  %v1093_v12 = vshrl.u32 %v11513_v41, %v1081_v9 }
 0x162   : > { %v1085_v43 = vor.u32 %v1084_v8, %v1083_v56  ;;  %v1088_v20 = vor.u32 %v1087_v18, %v1086_v6  ;;  %v1096_v42 = vshrl.u32 %v11514_v24, %v1081_v9  ;;  %v11530_v7 = vand.u32 2147483647, %v8386_v29 }
 0x163   : > { %v942_v62 = vxor.u32 2147483648, %v941_v40  ;;  %v7237_v10 = vadd.s32 4294967294, %v1030_v16  ;;  %v1091_v37 = vor.u32 %v1090_v33, %v1089_v48  ;;  %v1094_v35 = vor.u32 %v1093_v12, %v1092_v5 }
 0x164   : > { %vm8663_vm1 = vcmp.le.f32.partialorder %v11530_v7, 0.7853982  ;;  %v1095_v11 = vshll.u32 %v11513_v41, %v1080_v34  ;;  %vm1098_vm3 = vcmp.lt.s32.totalorder %v8645_v17, 1  ;;  %vm1099_vm4 = vcmp.lt.s32.totalorder %v8645_v17, 2 }
 0x165   : > { %v943_v19 = vsel %vm860_vm5, %v942_v62, %v941_v40  ;;  %vm7238_vm2 = vcmp.lt.s32.totalorder %v7237_v10, 0  ;;  %vm1100_vm5 = vcmp.lt.s32.totalorder %v8645_v17, 3  ;;  %vm1101_vm6 = vcmp.lt.s32.totalorder %v8645_v17, 4 }
 0x166   : > { %v946_v38 = vsel %vm8615_vm13, %v8371_v55, %v943_v19  ;;  %v1033_v9 = vsel %vm7238_vm2, 0, %v7237_v10  ;;  %v1097_v36 = vor.u32 %v1096_v42, %v1095_v11  ;;  %v1103_v3 = vsel %vm1101_vm6, %v1091_v37, 2102212464 }
 0x167   : > { %7676 = vcosq.f32 %v946_v38  ;;  %v1034_v30 = vsub.s32 32, %v1033_v9  ;;  %v1038_v28 = vsub.s32 4294967266, %v1033_v9  ;;  %v1035_v34 = vshll.u32 %v8628_v15, %v1033_v9 }
 0x168   : > { %7678 = vsinq.f32 %v946_v38  ;;  %v1106_v14 = vsel %vm1098_vm3, %v1085_v43, %v1088_v20  ;;  %v1107_v8 = vsel %vm1101_vm6, %v1094_v35, 920167782  ;;  %v1110_v16 = vsel %vm1098_vm3, %v1088_v20, %v1091_v37 }
 0x169   : > { %v1036_v18 = vshrl.u32 %v1018_v45, %v1034_v30  ;;  %v1039_v40 = vadd.s32 127, %v1038_v28  ;;  %v1108_v56 = vsel %vm1100_vm5, %v1091_v37, %v1107_v8  ;;  %v1102_v6 = vsel %vm1098_vm3, %v1082_v61, %v1085_v43 }
 0x16a   : > { %v1109_v48 = vsel %vm1099_vm4, %v1106_v14, %v1108_v56  ;;  %v1111_v15 = vsel %vm1101_vm6, %v1097_v36, 1326507024  ;;  %v1180_v62 = vadd.s32 1, %v7243_v0  ;;  %v1104_v45 = vsel %vm1100_vm5, %v1088_v20, %v1103_v3 }
 0x16b   : > { %v1037_v33 = vor.u32 %v1036_v18, %v1035_v34  ;;  %v1040_v5 = vshll.u32 %v1039_v40, 23  ;;  %v1112_v12 = vsel %vm1100_vm5, %v1094_v35, %v1111_v15  ;;  %vm953_vm7 = vcmp.lt.s32.totalorder %v8631_v21, 2 }
 0x16c   : > { %vm4308_vm8 = vcmp.lt.s32.totalorder %v8636_v44, 2  ;;  %v1113_v61 = vsel %vm1099_vm4, %v1110_v16, %v1112_v12  ;;  %v8695_v10 = vmul.u32.u64.low %v8638_v13, %v1109_v48  ;;  %v8696_v43 = vmul.u32.u64.high %v8638_v13, %v1109_v48, %v8695_v10 }
 0x16d   : > { %vm1181_vm9 = vcmp.gt.s32.totalorder %v1180_v62, 0  ;;  %vm950_vm10 = vweird.f32 %v8371_v55  ;;  %v1041_v0 = vor.u32 4788187, %v1040_v5  ;;  %v1051_v20 = vsel %vm8663_vm1, 0, %v1049_v27 }
 0x16e   : > { %v8703_v42 = vmul.u32.u64.low %v8638_v13, %v1113_v61  ;;  %v8704_v19 = vmul.u32.u64.high %v8638_v13, %v1113_v61, %v8703_v42  ;;  %vm954_vm11 = vcmp.eq.s32.totalorder %v8631_v21, 0  ;;  %vm957_vm12 = vcmp.eq.s32.totalorder %v8631_v21, 2 }
 0x16f   : > { %v1105_v7 = vsel %vm1099_vm4, %v1102_v6, %v1104_v45  ;;  %v1182_v37 = vsel %vm1181_vm9, %v1180_v62, 0  ;;  %v1042_v35 = vand.u32 2147483647, %v1041_v0  ;;  %v1044_v11 = vcvt.s32.f32 %v1037_v33 }
 0x170   : > { %vm4309_vm13 = vcmp.eq.s32.totalorder %v8636_v44, 0  ;;  %v1184_v38 = vand.u32 31, %v1182_v37  ;;  %v1055_v36 = vadd.s32 3, %v1051_v20  ;;  %vm4312_vm14 = vcmp.eq.s32.totalorder %v8636_v44, 2 }
 0x171   : > { %v7677_v9 = vpop.eup %7676  ;;  %v1124_v27 = vadd.s32 1, %v8696_v43  ;;  %v1178_v30 = vor.u32 8388608, %v8642_v47  ;;  %v1045_v3 = vmul.f32 %v1044_v11, %v1042_v35  ;;  %v1121_v17 = vmul.u32 %v8638_v13, %v1105_v7 }
 0x172   : > { %v7679_v28 = vpop.eup %7678  ;;  %v958_v34 = vxor.u32 2147483648, %v7677_v9  ;;  %vm1123_vm15 = vc.u32 %v8704_v19, %v8695_v10  ;;  %v8717_v8 = vand.u32 3, %v1051_v20  ;;  %v1185_v40 = vsub.s32 32, %v1184_v38 }
 0x173   : > { %v955_v14 = vxor.u32 2147483648, %v7679_v28  ;;  %v1125_v18 = vsel %vm1123_vm15, %v1124_v27, %v8696_v43  ;;  %v1046_v16 = vxor.u32 2147483648, %v1045_v3  ;;  %v8724_v48 = vand.u32 3, %v1055_v36 }
 0x174   : > { %v959_v56 = vsel %vm957_vm12, %v958_v34, %v7679_v28  ;;  %v4314_v47 = vsel %vm4312_vm14, %v958_v34, %v7679_v28  ;;  %v1126_v6 = vadd.s32 %v1125_v18, %v1121_v17  ;;  %v1188_v62 = vshrl.u32 %v11510_v39, %v1185_v40 }
 0x175   : > { %v956_v13 = vsel %vm954_vm11, %v7677_v9, %v955_v14  ;;  %v4311_v15 = vsel %vm4309_vm13, %v7677_v9, %v955_v14  ;;  %v1047_v5 = vsel %vm964_vm0, %v1046_v16, %v1045_v3  ;;  %v8742_v20 = vshrl.u32 %v1182_v37, 5  ;;  %v321_v3 = vpop.permute.xlu1 %320 }
 0x176   : > { %v960_v33 = vsel %vm953_vm7, %v956_v13, %v959_v56  ;;  %v4315_v45 = vsel %vm4308_vm8, %v4311_v15, %v4314_v47  ;;  %v1127_v12 = vadd.s32 536870912, %v1126_v6  ;;  %v1050_v43 = vsel %vm8663_vm1, %v8386_v29, %v1047_v5 }
 0x177   : > { %v961_v61 = vsel %vm950_vm10, nan, %v960_v33  ;;  %v4316_v0 = vsel %vm950_vm10, nan, %v4315_v45  ;;  %7680 = vcosq.f32 %v1050_v43  ;;  %v1187_v44 = vshll.u32 %v11509_v31, %v1184_v38 }
 0x178   : > { %3774 = vst [vmem:[%s8347_s4 + $0x40] sm:$0xff] %v961_v61  ;;  %7102 = vst [vmem:[%s8347_s4 + $0x50] sm:$0xff] %v4316_v0  ;;  %v8746_v21 = vshrl.u32 %v1127_v12, 30  ;;  %v1191_v42 = vshrl.u32 %v11511_v4, %v1185_v40  ;;  %7682 = vsinq.f32 %v1050_v43  ;;  %v1190_v7 = vshll.u32 %v11510_v39, %v1184_v38 }
 0x179   : > { %v1193_v26 = vshll.u32 %v11511_v4, %v1184_v38  ;;  %v1194_v35 = vshrl.u32 %v11512_v46, %v1185_v40  ;;  %v1189_v37 = vor.u32 %v1188_v62, %v1187_v44  ;;  %v1196_v11 = vshll.u32 %v11512_v46, %v1184_v38 }
 0x17a   : > { %v1129_v55 = vshll.u32 %v8746_v21, 30  ;;  %v1197_v9 = vshrl.u32 %v11513_v41, %v1185_v40  ;;  %v1192_v36 = vor.u32 %v1191_v42, %v1190_v7  ;;  %v1199_v28 = vshll.u32 %v11513_v41, %v1184_v38 }
 0x17b   : > { %v1195_v27 = vor.u32 %v1194_v35, %v1193_v26  ;;  %v1200_v34 = vshrl.u32 %v11514_v24, %v1185_v40  ;;  %vm4415_vm0 = vcmp.eq.s32.totalorder %v8717_v8, 2  ;;  %vm1058_vm1 = vcmp.eq.s32.totalorder %v8724_v48, 0 }
 0x17c   : > { %v8759_v17 = vsub.s32 %v1126_v6, %v1129_v55  ;;  %v1198_v14 = vor.u32 %v1197_v9, %v1196_v11  ;;  %vm1061_vm2 = vcmp.eq.s32.totalorder %v8724_v48, 2  ;;  %vm4412_vm3 = vcmp.eq.s32.totalorder %v8717_v8, 0 }
 0x17d   : > { %v1201_v18 = vor.u32 %v1200_v34, %v1199_v28  ;;  %v1218_v56 = vshll.u32 %v1178_v30, 8  ;;  %vm1057_vm4 = vcmp.lt.s32.totalorder %v8724_v48, 2  ;;  %vm4411_vm5 = vcmp.lt.s32.totalorder %v8717_v8, 2 }
 0x17e   : > { %v1132_v38 = vsub.s32 0, %v8759_v17  ;;  %vm1202_vm6 = vcmp.lt.s32.totalorder %v8742_v20, 1  ;;  %vm1205_vm7 = vcmp.lt.s32.totalorder %v8742_v20, 4  ;;  %v386_v16 = vmul.f32 %v8028_v22, %v321_v3 }
 0x17f   : > { %vm1054_vm8 = vweird.f32 %v8386_v29  ;;  %vm1204_vm9 = vcmp.lt.s32.totalorder %v8742_v20, 3  ;;  %v1207_v47 = vsel %vm1205_vm7, %v1195_v27, 2102212464  ;;  %v1210_v30 = vsel %vm1202_vm6, %v1189_v37, %v1192_v36 }
 0x180   : > { %v1211_v6 = vsel %vm1205_vm7, %v1198_v14, 920167782  ;;  %v7240_v13 = vmin.u32 %v1132_v38, %v8759_v17  ;;  %v1186_v15 = vshrl.u32 %v11509_v31, %v1185_v40  ;;  %vm1203_vm10 = vcmp.lt.s32.totalorder %v8742_v20, 2 }
 0x181   : > { %v1212_v62 = vsel %vm1204_vm9, %v1195_v27, %v1211_v6  ;;  %v1214_v5 = vsel %vm1202_vm6, %v1192_v36, %v1195_v27  ;;  %v1215_v45 = vsel %vm1205_vm7, %v1201_v18, 1326507024  ;;  %v387_v12 = vmul.f32 %v8030_v23, %v321_v3  ;;  %v7681_v61 = vpop.eup %7680 }
 0x182   : > { %v1213_v33 = vsel %vm1203_vm10, %v1210_v30, %v1212_v62  ;;  %v1134_v43 = vclz %v7240_v13  ;;  %v1206_v0 = vsel %vm1202_vm6, %v1186_v15, %v1189_v37  ;;  %v1208_v40 = vsel %vm1204_vm9, %v1192_v36, %v1207_v47  ;;  %v7683_v42 = vpop.eup %7682 }
 0x183   : > { %v8789_v44 = vadd.f32 %v386_v16, %v7970_v53  ;;  %v1062_v7 = vxor.u32 2147483648, %v7681_v61  ;;  %v1216_v26 = vsel %vm1204_vm9, %v1198_v14, %v1215_v45  ;;  %v1059_v11 = vxor.u32 2147483648, %v7683_v42 }
 0x184   : > { %v8793_v35 = vmul.u32.u64.low %v1218_v56, %v1213_v33  ;;  %v8794_v55 = vmul.u32.u64.high %v1218_v56, %v1213_v33, %v8793_v35  ;;  %v1122_v9 = vadd.s32 %v8695_v10, %v8704_v19  ;;  %v7241_v37 = vadd.s32 4294967294, %v1134_v43 }
 0x185   : > { %v1217_v36 = vsel %vm1203_vm10, %v1214_v5, %v1216_v26  ;;  %v1063_v53 = vsel %vm1061_vm2, %v1062_v7, %v7683_v42  ;;  %v4417_v27 = vsel %vm4415_vm0, %v1062_v7, %v7683_v42  ;;  %v1060_v3 = vsel %vm1058_vm1, %v7681_v61, %v1059_v11 }
 0x186   : > { %v8805_v28 = vmul.u32.u64.low %v1218_v56, %v1217_v36  ;;  %v8806_v34 = vmul.u32.u64.high %v1218_v56, %v1217_v36, %v8805_v28  ;;  %v4414_v10 = vsel %vm4412_vm3, %v7681_v61, %v1059_v11  ;;  %vm7242_vm11 = vcmp.lt.s32.totalorder %v7241_v37, 0 }
 0x187   : > { %v1209_v19 = vsel %vm1203_vm10, %v1206_v0, %v1208_v40  ;;  %v1064_v14 = vsel %vm1057_vm4, %v1060_v3, %v1063_v53  ;;  %v4418_v18 = vsel %vm4411_vm5, %v4414_v10, %v4417_v27  ;;  %v1137_v38 = vsel %vm7242_vm11, 0, %v7241_v37  ;;  %v8851_v3 = vpop.permute.xlu0 %324 }
 0x188   : > { %v1228_v16 = vadd.s32 1, %v8794_v55  ;;  %v1065_v47 = vsel %vm1054_vm8, nan, %v1064_v14  ;;  %v4419_v30 = vsel %vm1054_vm8, nan, %v4418_v18  ;;  %v1138_v6 = vsub.s32 32, %v1137_v38 }
 0x189   : > { %v1152_v13 = vsub.s32 4, %v8746_v21  ;;  %3775 = vst [vmem:[%s8347_s4 + $0x48] sm:$0xff] %v1065_v47  ;;  %7103 = vst [vmem:[%s8347_s4 + $0x58] sm:$0xff] %v4419_v30  ;;  %v1142_v20 = vsub.s32 4294967266, %v1137_v38  ;;  %v1225_v48 = vmul.u32 %v1218_v56, %v1209_v19  ;;  %vm1227_vm12 = vc.u32 %v8806_v34, %v8793_v35 }
 0x18a   : > { %vm1068_vm13 = vcmp.lt.s32.totalorder %v8554_v50, 0  ;;  %v1140_v8 = vshrl.u32 %v1122_v9, %v1138_v6  ;;  %v1229_v15 = vsel %vm1227_vm12, %v1228_v16, %v8794_v55  ;;  %v8831_v62 = vadd.f32 %v387_v12, %v7973_v54 }
 0x18b   : > { %v1139_v29 = vshll.u32 %v8759_v17, %v1137_v38  ;;  %v1143_v33 = vadd.s32 127, %v1142_v20  ;;  %v1230_v5 = vadd.s32 %v1229_v15, %v1225_v48  ;;  %v1277_v45 = vand.u32 2139095040, %v8789_v44 }
 0x18c   : > { %v1153_v56 = vsel %vm1068_vm13, %v1152_v13, %v8746_v21  ;;  %v1274_v61 = vand.u32 2147483647, %v8789_v44  ;;  %vm8841_vm14 = vcmp.le.f32.partialorder %v1066_v32, 0.7853982  ;;  %v1381_v17 = vand.u32 2139095040, %v8831_v62 }
 0x18d   : > { %v1141_v43 = vor.u32 %v1140_v8, %v1139_v29  ;;  %v1144_v0 = vshll.u32 %v1143_v33, 23  ;;  %v1231_v40 = vadd.s32 536870912, %v1230_v5  ;;  %v1278_v42 = vshrl.u32 %v1277_v45, 23 }
 0x18e   : > { %v1155_v7 = vsel %vm8841_vm14, 0, %v1153_v56  ;;  %v1281_v55 = vand.u32 8388607, %v1274_v61  ;;  %v1378_v11 = vand.u32 2147483647, %v8831_v62  ;;  %v1382_v9 = vshrl.u32 %v1381_v17, 23 }
 0x18f   : > { %v1145_v12 = vor.u32 4788187, %v1144_v0  ;;  %v1232_v26 = vshrl.u32 %v1231_v40, 30  ;;  %v7247_v21 = vadd.s32 4294967169, %v1278_v42  ;;  %v1148_v36 = vcvt.s32.f32 %v1141_v43 }
 0x190   : > { %v1159_v27 = vadd.s32 3, %v1155_v7  ;;  %v7251_v14 = vadd.s32 4294967169, %v1382_v9  ;;  %vm1172_vm0 = vcmp.lt.s32.totalorder %v8611_v49, 0  ;;  %v1282_v18 = vor.u32 8388608, %v1281_v55 }
 0x191   : > { %v1146_v37 = vand.u32 2147483647, %v1145_v12  ;;  %v1233_v32 = vshll.u32 %v1232_v26, 30  ;;  %v1284_v53 = vadd.s32 1, %v7247_v21  ;;  %v1256_v28 = vsub.s32 4, %v1232_v26 }
 0x192   : > { %v8859_v30 = vand.u32 8388607, %v1378_v11  ;;  %v388_v6 = vmul.f32 %v8028_v22, %v8851_v3  ;;  %v8863_v13 = vand.u32 3, %v1159_v27  ;;  %vm8867_vm1 = vcmp.le.f32.partialorder %v1170_v25, 0.7853982 }
 0x193   : > { %v1149_v10 = vmul.f32 %v1148_v36, %v1146_v37  ;;  %v8853_v19 = vsub.s32 %v1230_v5, %v1233_v32  ;;  %vm1285_vm15 = vcmp.gt.s32.totalorder %v1284_v53, 0  ;;  %v8871_v48 = vand.u32 3, %v1155_v7 }
 0x194   : > { %v1286_v38 = vsel %vm1285_vm15, %v1284_v53, 0  ;;  %v1257_v33 = vsel %vm1172_vm0, %v1256_v28, %v1232_v26  ;;  %v8878_v5 = vadd.s32 1, %v7251_v14  ;;  %v1226_v45 = vadd.s32 %v8793_v35, %v8806_v34 }
 0x195   : > { %v1150_v16 = vxor.u32 2147483648, %v1149_v10  ;;  %v1236_v47 = vsub.s32 0, %v8853_v19  ;;  %v1288_v8 = vand.u32 31, %v1286_v38  ;;  %v8885_v43 = vshll.u32 %v1282_v18, 8 }
 0x196   : > { %v1386_v40 = vor.u32 8388608, %v8859_v30  ;;  %v8889_v42 = vadd.f32 %v388_v6, %v7965_v51  ;;  %v8893_v17 = vsel %vm8867_vm1, 0, %v1257_v33  ;;  %v1287_v54 = vshrl.u32 %v1286_v38, 5 }
 0x197   : > { %v1151_v15 = vsel %vm1068_vm13, %v1150_v16, %v1149_v10  ;;  %v7244_v29 = vmin.u32 %v1236_v47, %v8853_v19  ;;  %v1289_v56 = vsub.s32 32, %v1288_v8  ;;  %v1291_v12 = vshll.u32 %v11509_v31, %v1288_v8 }
 0x198   : > { %v1154_v25 = vsel %vm8841_vm14, %v8554_v50, %v1151_v15  ;;  %v1294_v34 = vshll.u32 %v11510_v39, %v1288_v8  ;;  %vm1389_vm2 = vcmp.gt.s32.totalorder %v8878_v5, 0  ;;  %v1297_v51 = vshll.u32 %v11511_v4, %v1288_v8 }
 0x199   : > { %7684 = vcosq.f32 %v1154_v25  ;;  %v1238_v0 = vclz %v7244_v29  ;;  %v1292_v35 = vshrl.u32 %v11510_v39, %v1289_v56  ;;  %v1295_v26 = vshrl.u32 %v11511_v4, %v1289_v56 }
 0x19a   : > { %7686 = vsinq.f32 %v1154_v25  ;;  %v1298_v21 = vshrl.u32 %v11512_v46, %v1289_v56  ;;  %v1300_v55 = vshll.u32 %v11512_v46, %v1288_v8  ;;  %v1301_v9 = vshrl.u32 %v11513_v41, %v1289_v56 }
 0x19b   : > { %v7245_v7 = vadd.s32 4294967294, %v1238_v0  ;;  %vm1165_vm3 = vcmp.eq.s32.totalorder %v8863_v13, 2  ;;  %vm4518_vm5 = vcmp.eq.s32.totalorder %v8871_v48, 2  ;;  %v1293_v37 = vor.u32 %v1292_v35, %v1291_v12 }
 0x19c   : > { %v1296_v36 = vor.u32 %v1295_v26, %v1294_v34  ;;  %v1303_v32 = vshll.u32 %v11513_v41, %v1288_v8  ;;  %vm1162_vm6 = vcmp.eq.s32.totalorder %v8863_v13, 0  ;;  %vm4515_vm7 = vcmp.eq.s32.totalorder %v8871_v48, 0 }
 0x19d   : > { %vm7246_vm4 = vcmp.lt.s32.totalorder %v7245_v7, 0  ;;  %v1299_v27 = vor.u32 %v1298_v21, %v1297_v51  ;;  %v1302_v28 = vor.u32 %v1301_v9, %v1300_v55  ;;  %v1304_v10 = vshrl.u32 %v11514_v24, %v1289_v56 }
 0x19e   : > { %v1241_v53 = vsel %vm7246_vm4, 0, %v7245_v7  ;;  %vm1161_vm8 = vcmp.lt.s32.totalorder %v8863_v13, 2  ;;  %vm4514_vm9 = vcmp.lt.s32.totalorder %v8871_v48, 2  ;;  %v1290_v16 = vshrl.u32 %v11509_v31, %v1289_v56 }
 0x19f   : > { %v1242_v14 = vsub.s32 32, %v1241_v53  ;;  %v1243_v18 = vshll.u32 %v8853_v19, %v1241_v53  ;;  %v1246_v38 = vsub.s32 4294967266, %v1241_v53  ;;  %vm1158_vm10 = vweird.f32 %v8554_v50 }
 0x1a0   : > { %v1305_v47 = vor.u32 %v1304_v10, %v1303_v32  ;;  %vm1306_vm11 = vcmp.lt.s32.totalorder %v1287_v54, 1  ;;  %vm1308_vm12 = vcmp.lt.s32.totalorder %v1287_v54, 3  ;;  %vm1309_vm13 = vcmp.lt.s32.totalorder %v1287_v54, 4 }
 0x1a1   : > { %v1244_v30 = vshrl.u32 %v1226_v45, %v1242_v14  ;;  %v1247_v6 = vadd.s32 127, %v1246_v38  ;;  %v1310_v8 = vsel %vm1306_vm11, %v1290_v16, %v1293_v37  ;;  %v1311_v15 = vsel %vm1309_vm13, %v1299_v27, 2102212464 }
 0x1a2   : > { %vm1307_vm14 = vcmp.lt.s32.totalorder %v1287_v54, 2  ;;  %v1312_v29 = vsel %vm1308_vm12, %v1296_v36, %v1311_v15  ;;  %v1314_v19 = vsel %vm1306_vm11, %v1293_v37, %v1296_v36  ;;  %v1315_v33 = vsel %vm1309_vm13, %v1302_v28, 920167782 }
 0x1a3   : > { %v7685_v25 = vpop.eup %7684  ;;  %v1245_v0 = vor.u32 %v1244_v30, %v1243_v18  ;;  %v1248_v56 = vshll.u32 %v1247_v6, 23  ;;  %v1316_v12 = vsel %vm1308_vm12, %v1299_v27, %v1315_v33  ;;  %v1318_v7 = vsel %vm1306_vm11, %v1296_v36, %v1299_v27 }
 0x1a4   : > { %v7687_v35 = vpop.eup %7686  ;;  %v1166_v34 = vxor.u32 2147483648, %v7685_v25  ;;  %v1313_v45 = vsel %vm1307_vm14, %v1310_v8, %v1312_v29  ;;  %v1319_v26 = vsel %vm1309_vm13, %v1305_v47, 1326507024  ;;  %v8921_v51 = vshll.u32 %v1386_v40, 8 }
 0x1a5   : > { %v1163_v21 = vxor.u32 2147483648, %v7687_v35  ;;  %v1249_v55 = vor.u32 4788187, %v1248_v56  ;;  %v1317_v9 = vsel %vm1307_vm14, %v1314_v19, %v1316_v12  ;;  %v1320_v37 = vsel %vm1308_vm12, %v1302_v28, %v1319_v26 }
 0x1a6   : > { %v1167_v32 = vsel %vm1165_vm3, %v1166_v34, %v7687_v35  ;;  %v4520_v36 = vsel %vm4518_vm5, %v1166_v34, %v7687_v35  ;;  %v1321_v53 = vsel %vm1307_vm14, %v1318_v7, %v1320_v37  ;;  %v1390_v40 = vsel %vm1389_vm2, %v8878_v5, 0 }
 0x1a7   : > { %v1164_v27 = vsel %vm1162_vm6, %v7685_v25, %v1163_v21  ;;  %v1250_v10 = vand.u32 2147483647, %v1249_v55  ;;  %v1252_v14 = vcvt.s32.f32 %v1245_v0  ;;  %v4517_v28 = vsel %vm4515_vm7, %v7685_v25, %v1163_v21 }
 0x1a8   : > { %v1168_v18 = vsel %vm1161_vm8, %v1164_v27, %v1167_v32  ;;  %v4521_v54 = vsel %vm4514_vm9, %v4517_v28, %v4520_v36  ;;  %v8942_v38 = vmul.u32.u64.low %v8885_v43, %v1321_v53  ;;  %v8943_v16 = vmul.u32.u64.high %v8885_v43, %v1321_v53, %v8942_v38 }
 0x1a9   : > { %v1169_v5 = vsel %vm1158_vm10, nan, %v1168_v18  ;;  %v1253_v47 = vmul.f32 %v1252_v14, %v1250_v10  ;;  %v4522_v30 = vsel %vm1158_vm10, nan, %v4521_v54  ;;  %v1392_v6 = vand.u32 31, %v1390_v40 }
 0x1aa   : > { %v1263_v8 = vadd.s32 3, %v8893_v17  ;;  %3776 = vst [vmem:[%s8347_s4 + $0x60] sm:$0xff] %v1169_v5  ;;  %v8952_v13 = vand.u32 3, %v8893_v17  ;;  %7104 = vst [vmem:[%s8347_s4 + $0x70] sm:$0xff] %v4522_v30  ;;  %v8956_v48 = vmul.u32.u64.low %v8885_v43, %v1317_v9  ;;  %v8957_v15 = vmul.u32.u64.high %v8885_v43, %v1317_v9, %v8956_v48 }
 0x1ab   : > { %v1254_v29 = vxor.u32 2147483648, %v1253_v47  ;;  %v1329_v19 = vmul.u32 %v8885_v43, %v1313_v45  ;;  %v1391_v33 = vshrl.u32 %v1390_v40, 5  ;;  %v1393_v25 = vsub.s32 32, %v1392_v6 }
 0x1ac   : > { %vm1331_vm15 = vc.u32 %v8943_v16, %v8956_v48  ;;  %v1395_v50 = vshll.u32 %v11509_v31, %v1392_v6  ;;  %v1398_v0 = vshll.u32 %v11510_v39, %v1392_v6  ;;  %v1401_v17 = vshll.u32 %v11511_v4, %v1392_v6 }
 0x1ad   : > { %v1255_v56 = vsel %vm1172_vm0, %v1254_v29, %v1253_v47  ;;  %v1396_v12 = vshrl.u32 %v11510_v39, %v1393_v25  ;;  %v1399_v7 = vshrl.u32 %v11511_v4, %v1393_v25  ;;  %v1404_v43 = vshll.u32 %v11512_v46, %v1392_v6 }
 0x1ae   : > { %v1258_v35 = vsel %vm8867_vm1, %v8611_v49, %v1255_v56  ;;  %v1332_v34 = vadd.s32 1, %v8957_v15  ;;  %v1402_v45 = vshrl.u32 %v11512_v46, %v1393_v25  ;;  %v1405_v26 = vshrl.u32 %v11513_v41, %v1393_v25 }
 0x1af   : > { %7688 = vcosq.f32 %v1258_v35  ;;  %v1397_v21 = vor.u32 %v1396_v12, %v1395_v50  ;;  %v1400_v55 = vor.u32 %v1399_v7, %v1398_v0  ;;  %vm1410_vm0 = vcmp.lt.s32.totalorder %v1391_v33, 1 }
 0x1b0   : > { %7690 = vsinq.f32 %v1258_v35  ;;  %v1333_v9 = vsel %vm1331_vm15, %v1332_v34, %v8957_v15  ;;  %v1403_v37 = vor.u32 %v1402_v45, %v1401_v17  ;;  %v1406_v32 = vor.u32 %v1405_v26, %v1404_v43 }
 0x1b1   : > { %v1334_v20 = vadd.s32 %v1333_v9, %v1329_v19  ;;  %v1407_v36 = vshll.u32 %v11513_v41, %v1392_v6  ;;  %v1408_v53 = vshrl.u32 %v11514_v24, %v1393_v25  ;;  %vm1413_vm1 = vcmp.lt.s32.totalorder %v1391_v33, 4 }
 0x1b2   : > { %vm1411_vm2 = vcmp.lt.s32.totalorder %v1391_v33, 2  ;;  %vm1412_vm3 = vcmp.lt.s32.totalorder %v1391_v33, 3  ;;  %v1418_v40 = vsel %vm1410_vm0, %v1397_v21, %v1400_v55  ;;  %v1419_v27 = vsel %vm1413_vm1, %v1406_v32, 920167782 }
 0x1b3   : > { %v1335_v10 = vadd.s32 536870912, %v1334_v20  ;;  %v1409_v14 = vor.u32 %v1408_v53, %v1407_v36  ;;  %v1415_v28 = vsel %vm1413_vm1, %v1403_v37, 2102212464  ;;  %v1420_v18 = vsel %vm1412_vm3, %v1403_v37, %v1419_v27 }
 0x1b4   : > { %v1264_v54 = vand.u32 3, %v1263_v8  ;;  %v1394_v38 = vshrl.u32 %v11509_v31, %v1393_v25  ;;  %v1421_v5 = vsel %vm1411_vm2, %v1418_v40, %v1420_v18  ;;  %v1422_v47 = vsel %vm1410_vm0, %v1400_v55, %v1403_v37 }
 0x1b5   : > { %v1336_v30 = vshrl.u32 %v1335_v10, 30  ;;  %v1423_v6 = vsel %vm1413_vm1, %v1409_v14, 1326507024  ;;  %v8989_v15 = vmul.u32.u64.low %v8921_v51, %v1421_v5  ;;  %v8990_v29 = vmul.u32.u64.high %v8921_v51, %v1421_v5, %v8989_v15 }
 0x1b6   : > { %v1414_v19 = vsel %vm1410_vm0, %v1394_v38, %v1397_v21  ;;  %v1416_v50 = vsel %vm1412_vm3, %v1400_v55, %v1415_v28  ;;  %v1424_v0 = vsel %vm1412_vm3, %v1406_v32, %v1423_v6  ;;  %v1485_v8 = vand.u32 2139095040, %v8889_v42 }
 0x1b7   : > { %vm1262_vm4 = vweird.f32 %v8611_v49  ;;  %v1337_v25 = vshll.u32 %v1336_v30, 30  ;;  %v1425_v17 = vsel %vm1411_vm2, %v1422_v47, %v1424_v0  ;;  %v389_v56 = vmul.f32 %v8030_v23, %v8851_v3 }
 0x1b8   : > { %vm4617_vm5 = vcmp.lt.s32.totalorder %v8952_v13, 2  ;;  %v9003_v12 = vmul.u32.u64.low %v8921_v51, %v1425_v17  ;;  %v9004_v7 = vmul.u32.u64.high %v8921_v51, %v1425_v17, %v9003_v12  ;;  %v1482_v43 = vand.u32 2147483647, %v8889_v42 }
 0x1b9   : > { %v7689_v35 = vpop.eup %7688  ;;  %vm4618_vm6 = vcmp.eq.s32.totalorder %v8952_v13, 0  ;;  %v1338_v34 = vsub.s32 %v1334_v20, %v1337_v25  ;;  %v1417_v45 = vsel %vm1411_vm2, %v1414_v19, %v1416_v50  ;;  %v1486_v26 = vshrl.u32 %v1485_v8, 23 }
 0x1ba   : > { %v7691_v21 = vpop.eup %7690  ;;  %vm1265_vm7 = vcmp.lt.s32.totalorder %v1264_v54, 2  ;;  %v1270_v55 = vxor.u32 2147483648, %v7689_v35  ;;  %vm4621_vm8 = vcmp.eq.s32.totalorder %v8952_v13, 2  ;;  %v1436_v3 = vadd.s32 1, %v8990_v29 }
 0x1bb   : > { %vm1266_vm9 = vcmp.eq.s32.totalorder %v1264_v54, 0  ;;  %v1267_v9 = vxor.u32 2147483648, %v7691_v21  ;;  %vm1269_vm10 = vcmp.eq.s32.totalorder %v1264_v54, 2  ;;  %v1340_v37 = vsub.s32 0, %v1338_v34 }
 0x1bc   : > { %v1271_v32 = vsel %vm1269_vm10, %v1270_v55, %v7691_v21  ;;  %v4623_v36 = vsel %vm4621_vm8, %v1270_v55, %v7691_v21  ;;  %v1433_v20 = vmul.u32 %v8921_v51, %v1417_v45  ;;  %vm1435_vm11 = vc.u32 %v9004_v7, %v8989_v15 }
 0x1bd   : > { %v1268_v33 = vsel %vm1266_vm9, %v7689_v35, %v1267_v9  ;;  %v4620_v53 = vsel %vm4618_vm6, %v7689_v35, %v1267_v9  ;;  %v7248_v40 = vmin.u32 %v1340_v37, %v1338_v34  ;;  %v7255_v27 = vadd.s32 4294967169, %v1486_v26 }
 0x1be   : > { %v1272_v10 = vsel %vm1265_vm7, %v1268_v33, %v1271_v32  ;;  %v4624_v14 = vsel %vm4617_vm5, %v4620_v53, %v4623_v36  ;;  %v1360_v28 = vsub.s32 4, %v1336_v30  ;;  %v1437_v18 = vsel %vm1435_vm11, %v1436_v3, %v8990_v29 }
 0x1bf   : > { %v1273_v51 = vsel %vm1262_vm4, nan, %v1272_v10  ;;  %v4625_v38 = vsel %vm1262_vm4, nan, %v4624_v14  ;;  %v1342_v5 = vclz %v7248_v40  ;;  %v1438_v47 = vadd.s32 %v1437_v18, %v1433_v20 }
 0x1c0   : > { %3777 = vst [vmem:[%s8347_s4 + $0x68] sm:$0xff] %v1273_v51  ;;  %7105 = vst [vmem:[%s8347_s4 + $0x78] sm:$0xff] %v4625_v38  ;;  %v9027_v6 = vadd.f32 %v389_v56, %v7968_v52  ;;  %vm1276_vm12 = vcmp.lt.s32.totalorder %v8789_v44, 0  ;;  %v1492_v54 = vadd.s32 1, %v7255_v27  ;;  %v1489_v50 = vand.u32 8388607, %v1482_v43 }
 0x1c1   : > { %v7249_v13 = vadd.s32 4294967294, %v1342_v5  ;;  %v1361_v29 = vsel %vm1276_vm12, %v1360_v28, %v1336_v30  ;;  %v1439_v19 = vadd.s32 536870912, %v1438_v47  ;;  %vm9036_vm13 = vcmp.le.f32.partialorder %v1274_v61, 0.7853982 }
 0x1c2   : > { %vm1493_vm15 = vcmp.gt.s32.totalorder %v1492_v54, 0  ;;  %v1589_v25 = vand.u32 2139095040, %v9027_v6  ;;  %v1330_v30 = vadd.s32 %v8956_v48, %v8943_v16  ;;  %v1363_v12 = vsel %vm9036_vm13, 0, %v1361_v29 }
 0x1c3   : > { %vm7250_vm14 = vcmp.lt.s32.totalorder %v7249_v13, 0  ;;  %v1440_v0 = vshrl.u32 %v1439_v19, 30  ;;  %v1494_v8 = vsel %vm1493_vm15, %v1492_v54, 0  ;;  %v1490_v61 = vor.u32 8388608, %v1489_v50 }
 0x1c4   : > { %v1345_v52 = vsel %vm7250_vm14, 0, %v7249_v13  ;;  %v1496_v45 = vand.u32 31, %v1494_v8  ;;  %v1367_v9 = vadd.s32 3, %v1363_v12  ;;  %v1590_v36 = vshrl.u32 %v1589_v25, 23 }
 0x1c5   : > { %v1346_v17 = vsub.s32 32, %v1345_v52  ;;  %v1350_v56 = vsub.s32 4294967266, %v1345_v52  ;;  %v1441_v35 = vshll.u32 %v1440_v0, 30  ;;  %v1347_v26 = vshll.u32 %v1338_v34, %v1345_v52 }
 0x1c6   : > { %v1464_v3 = vsub.s32 4, %v1440_v0  ;;  %v1497_v32 = vsub.s32 32, %v1496_v45  ;;  %vm9049_vm0 = vcmp.le.f32.partialorder %v1378_v11, 0.7853982  ;;  %vm1380_vm1 = vcmp.lt.s32.totalorder %v8831_v62, 0 }
 0x1c7   : > { %v1348_v21 = vshrl.u32 %v1330_v30, %v1346_v17  ;;  %v1351_v55 = vadd.s32 127, %v1350_v56  ;;  %v9045_v37 = vsub.s32 %v1438_v47, %v1441_v35  ;;  %v9055_v34 = vand.u32 3, %v1363_v12 }
 0x1c8   : > { %v9057_v53 = vshrl.u32 %v1494_v8, 5  ;;  %v1586_v40 = vand.u32 2147483647, %v9027_v6  ;;  %v1434_v10 = vadd.s32 %v8989_v15, %v9004_v7  ;;  %v1465_v11 = vsel %vm1380_vm1, %v1464_v3, %v1440_v0 }
 0x1c9   : > { %v1349_v20 = vor.u32 %v1348_v21, %v1347_v26  ;;  %v1352_v33 = vshll.u32 %v1351_v55, 23  ;;  %v1444_v48 = vsub.s32 0, %v9045_v37  ;;  %v1500_v14 = vshrl.u32 %v11510_v39, %v1497_v32 }
 0x1ca   : > { %v9065_v28 = vand.u32 3, %v1367_v9  ;;  %v9068_v51 = vshll.u32 %v1490_v61, 8  ;;  %v7259_v38 = vadd.s32 4294967169, %v1590_v36  ;;  %v1499_v13 = vshll.u32 %v11509_v31, %v1496_v45 }
 0x1cb   : > { %v1353_v27 = vor.u32 4788187, %v1352_v33  ;;  %v7252_v18 = vmin.u32 %v1444_v48, %v9045_v37  ;;  %v1356_v47 = vcvt.s32.f32 %v1349_v20  ;;  %v1503_v54 = vshrl.u32 %v11511_v4, %v1497_v32 }
 0x1cc   : > { %v9074_v15 = vsel %vm9049_vm0, 0, %v1465_v11  ;;  %v1502_v7 = vshll.u32 %v11510_v39, %v1496_v45  ;;  %vm1514_vm2 = vcmp.lt.s32.totalorder %v9057_v53, 1  ;;  %v1501_v50 = vor.u32 %v1500_v14, %v1499_v13 }
 0x1cd   : > { %v1354_v5 = vand.u32 2147483647, %v1353_v27  ;;  %v1446_v29 = vclz %v7252_v18  ;;  %v1505_v52 = vshll.u32 %v11511_v4, %v1496_v45  ;;  %v1506_v0 = vshrl.u32 %v11512_v46, %v1497_v32 }
 0x1ce   : > { %vm1515_vm3 = vcmp.lt.s32.totalorder %v9057_v53, 2  ;;  %v1508_v25 = vshll.u32 %v11512_v46, %v1496_v45  ;;  %v1509_v30 = vshrl.u32 %v11513_v41, %v1497_v32  ;;  %v1512_v17 = vshrl.u32 %v11514_v24, %v1497_v32 }
 0x1cf   : > { %v1357_v19 = vmul.f32 %v1356_v47, %v1354_v5  ;;  %v7253_v8 = vadd.s32 4294967294, %v1446_v29  ;;  %v1504_v12 = vor.u32 %v1503_v54, %v1502_v7  ;;  %v1507_v35 = vor.u32 %v1506_v0, %v1505_v52 }
 0x1d0   : > { %v1511_v61 = vshll.u32 %v11513_v41, %v1496_v45  ;;  %v1498_v26 = vshrl.u32 %v11509_v31, %v1497_v32  ;;  %v1510_v21 = vor.u32 %v1509_v30, %v1508_v25  ;;  %vm1516_vm5 = vcmp.lt.s32.totalorder %v9057_v53, 3 }
 0x1d1   : > { %v1358_v56 = vxor.u32 2147483648, %v1357_v19  ;;  %vm7254_vm4 = vcmp.lt.s32.totalorder %v7253_v8, 0  ;;  %vm1517_vm6 = vcmp.lt.s32.totalorder %v9057_v53, 4  ;;  %v1522_v48 = vsel %vm1514_vm2, %v1501_v50, %v1504_v12 }
 0x1d2   : > { %v1449_v3 = vsel %vm7254_vm4, 0, %v7253_v8  ;;  %v1513_v9 = vor.u32 %v1512_v17, %v1511_v61  ;;  %v1519_v45 = vsel %vm1517_vm6, %v1507_v35, 2102212464  ;;  %v1523_v27 = vsel %vm1517_vm6, %v1510_v21, 920167782 }
 0x1d3   : > { %v1359_v55 = vsel %vm1276_vm12, %v1358_v56, %v1357_v19  ;;  %v1450_v20 = vsub.s32 32, %v1449_v3  ;;  %v1454_v33 = vsub.s32 4294967266, %v1449_v3  ;;  %v1451_v32 = vshll.u32 %v9045_v37, %v1449_v3 }
 0x1d4   : > { %v1362_v36 = vsel %vm9036_vm13, %v8789_v44, %v1359_v55  ;;  %v1526_v49 = vsel %vm1514_vm2, %v1504_v12, %v1507_v35  ;;  %v1518_v18 = vsel %vm1514_vm2, %v1498_v26, %v1501_v50  ;;  %v1520_v5 = vsel %vm1516_vm5, %v1504_v12, %v1519_v45 }
 0x1d5   : > { %7692 = vcosq.f32 %v1362_v36  ;;  %v1452_v11 = vshrl.u32 %v1434_v10, %v1450_v20  ;;  %v1455_v14 = vadd.s32 127, %v1454_v33  ;;  %v1524_v37 = vsel %vm1516_vm5, %v1507_v35, %v1523_v27 }
 0x1d6   : > { %7694 = vsinq.f32 %v1362_v36  ;;  %v1527_v47 = vsel %vm1517_vm6, %v1513_v9, 1326507024  ;;  %v1525_v10 = vsel %vm1515_vm3, %v1522_v48, %v1524_v37  ;;  %v1596_v52 = vadd.s32 1, %v7259_v38 }
 0x1d7   : > { %v1453_v13 = vor.u32 %v1452_v11, %v1451_v32  ;;  %v1456_v54 = vshll.u32 %v1455_v14, 23  ;;  %v1528_v29 = vsel %vm1516_vm5, %v1510_v21, %v1527_v47  ;;  %vm1370_vm7 = vcmp.eq.s32.totalorder %v9065_v28, 0 }
 0x1d8   : > { %v1529_v7 = vsel %vm1515_vm3, %v1526_v49, %v1528_v29  ;;  %v9117_v19 = vmul.u32.u64.low %v9068_v51, %v1525_v10  ;;  %v9118_v50 = vmul.u32.u64.high %v9068_v51, %v1525_v10, %v9117_v19  ;;  %vm1369_vm8 = vcmp.lt.s32.totalorder %v9065_v28, 2 }
 0x1d9   : > { %v1457_v0 = vor.u32 4788187, %v1456_v54  ;;  %v9123_v8 = vmul.u32.u64.low %v9068_v51, %v1529_v7  ;;  %v9124_v25 = vmul.u32.u64.high %v9068_v51, %v1529_v7, %v9123_v8  ;;  %v1471_v30 = vadd.s32 3, %v9074_v15 }
 0x1da   : > { %vm4720_vm9 = vcmp.lt.s32.totalorder %v9055_v34, 2  ;;  %v1521_v17 = vsel %vm1515_vm3, %v1518_v18, %v1520_v5  ;;  %v9133_v56 = vand.u32 8388607, %v1586_v40  ;;  %vm1597_vm10 = vcmp.gt.s32.totalorder %v1596_v52, 0 }
 0x1db   : > { %vm1366_vm11 = vweird.f32 %v8789_v44  ;;  %vm1373_vm12 = vcmp.eq.s32.totalorder %v9065_v28, 2  ;;  %v1458_v38 = vand.u32 2147483647, %v1457_v0  ;;  %v1460_v12 = vcvt.s32.f32 %v1453_v13  ;;  %v329_v44 = vpop.permute.xlu1 %328 }
 0x1dc   : > { %v1598_v35 = vsel %vm1597_vm10, %v1596_v52, 0  ;;  %vm4721_vm13 = vcmp.eq.s32.totalorder %v9055_v34, 0  ;;  %vm4724_vm14 = vcmp.eq.s32.totalorder %v9055_v34, 2  ;;  %v1540_v61 = vadd.s32 1, %v9118_v50 }
 0x1dd   : > { %v1600_v53 = vand.u32 31, %v1598_v35  ;;  %v1461_v26 = vmul.f32 %v1460_v12, %v1458_v38  ;;  %v9141_v21 = vand.u32 3, %v9074_v15  ;;  %v1537_v55 = vmul.u32 %v9068_v51, %v1521_v17 }
 0x1de   : > { %vm1539_vm15 = vc.u32 %v9124_v25, %v9117_v19  ;;  %v9146_v9 = vand.u32 3, %v1471_v30  ;;  %v1594_v20 = vor.u32 8388608, %v9133_v56  ;;  %v9150_v11 = vshrl.u32 %v1598_v35, 5 }
 0x1df   : > { %v7693_v3 = vpop.eup %7692  ;;  %v1541_v36 = vsel %vm1539_vm15, %v1540_v61, %v9118_v50  ;;  %v1601_v33 = vsub.s32 32, %v1600_v53  ;;  %v1462_v48 = vxor.u32 2147483648, %v1461_v26  ;;  %v1603_v51 = vshll.u32 %v11509_v31, %v1600_v53 }
 0x1e0   : > { %v7695_v45 = vpop.eup %7694  ;;  %v1374_v32 = vxor.u32 2147483648, %v7693_v3  ;;  %v1542_v27 = vadd.s32 %v1541_v36, %v1537_v55  ;;  %v1606_v29 = vshll.u32 %v11510_v39, %v1600_v53  ;;  %v1609_v8 = vshll.u32 %v11511_v4, %v1600_v53 }
 0x1e1   : > { %v1371_v15 = vxor.u32 2147483648, %v7695_v45  ;;  %v1604_v14 = vshrl.u32 %v11510_v39, %v1601_v33  ;;  %v1607_v49 = vshrl.u32 %v11511_v4, %v1601_v33  ;;  %v1463_v5 = vsel %vm1380_vm1, %v1462_v48, %v1461_v26 }
 0x1e2   : > { %v1375_v18 = vsel %vm1373_vm12, %v1374_v32, %v7695_v45  ;;  %v4726_v37 = vsel %vm4724_vm14, %v1374_v32, %v7695_v45  ;;  %v1543_v47 = vadd.s32 536870912, %v1542_v27  ;;  %v1466_v54 = vsel %vm9049_vm0, %v8831_v62, %v1463_v5 }
 0x1e3   : > { %v1372_v13 = vsel %vm1370_vm7, %v7693_v3, %v1371_v15  ;;  %v4723_v10 = vsel %vm4721_vm13, %v7693_v3, %v1371_v15  ;;  %7696 = vcosq.f32 %v1466_v54  ;;  %v1605_v30 = vor.u32 %v1604_v14, %v1603_v51 }
 0x1e4   : > { %v1376_v7 = vsel %vm1369_vm8, %v1372_v13, %v1375_v18  ;;  %v4727_v50 = vsel %vm4720_vm9, %v4723_v10, %v4726_v37  ;;  %v9173_v52 = vshrl.u32 %v1543_v47, 30  ;;  %7698 = vsinq.f32 %v1466_v54 }
 0x1e5   : > { %v1377_v0 = vsel %vm1366_vm11, nan, %v1376_v7  ;;  %v4728_v16 = vsel %vm1366_vm11, nan, %v4727_v50  ;;  %v1608_v17 = vor.u32 %v1607_v49, %v1606_v29  ;;  %v1610_v34 = vshrl.u32 %v11512_v46, %v1601_v33 }
 0x1e6   : > { %3778 = vst [vmem:[%s8347_s4 + $0x80] sm:$0xff] %v1377_v0  ;;  %7106 = vst [vmem:[%s8347_s4 + $0x90] sm:$0xff] %v4728_v16  ;;  %v1545_v28 = vshll.u32 %v9173_v52, 30  ;;  %v1612_v56 = vshll.u32 %v11512_v46, %v1600_v53  ;;  %v1613_v38 = vshrl.u32 %v11513_v41, %v1601_v33  ;;  %v1615_v12 = vshll.u32 %v11513_v41, %v1600_v53 }
 0x1e7   : > { %v1616_v35 = vshrl.u32 %v11514_v24, %v1601_v33  ;;  %vm4827_vm0 = vcmp.eq.s32.totalorder %v9141_v21, 2  ;;  %v1611_v26 = vor.u32 %v1610_v34, %v1609_v8  ;;  %vm1474_vm1 = vcmp.eq.s32.totalorder %v9146_v9, 0 }
 0x1e8   : > { %v9189_v61 = vsub.s32 %v1542_v27, %v1545_v28  ;;  %vm1477_vm2 = vcmp.eq.s32.totalorder %v9146_v9, 2  ;;  %vm4824_vm3 = vcmp.eq.s32.totalorder %v9141_v21, 0  ;;  %v1614_v55 = vor.u32 %v1613_v38, %v1612_v56 }
 0x1e9   : > { %v1617_v3 = vor.u32 %v1616_v35, %v1615_v12  ;;  %v1634_v36 = vshll.u32 %v1594_v20, 8  ;;  %vm1473_vm4 = vcmp.lt.s32.totalorder %v9146_v9, 2  ;;  %vm4823_vm5 = vcmp.lt.s32.totalorder %v9141_v21, 2 }
 0x1ea   : > { %v1548_v53 = vsub.s32 0, %v9189_v61  ;;  %vm1618_vm6 = vcmp.lt.s32.totalorder %v9150_v11, 1  ;;  %vm1621_vm7 = vcmp.lt.s32.totalorder %v9150_v11, 4  ;;  %v390_v45 = vmul.f32 %v8028_v22, %v329_v44 }
 0x1eb   : > { %vm1470_vm8 = vweird.f32 %v8831_v62  ;;  %vm1620_vm9 = vcmp.lt.s32.totalorder %v9150_v11, 3  ;;  %v1623_v32 = vsel %vm1621_vm7, %v1611_v26, 2102212464  ;;  %v1626_v20 = vsel %vm1618_vm6, %v1605_v30, %v1608_v17 }
 0x1ec   : > { %v1627_v48 = vsel %vm1621_vm7, %v1614_v55, 920167782  ;;  %v7256_v27 = vmin.u32 %v1548_v53, %v9189_v61  ;;  %v1602_v15 = vshrl.u32 %v11509_v31, %v1601_v33  ;;  %vm1619_vm10 = vcmp.lt.s32.totalorder %v9150_v11, 2 }
 0x1ed   : > { %v1628_v51 = vsel %vm1620_vm9, %v1611_v26, %v1627_v48  ;;  %v1630_v49 = vsel %vm1618_vm6, %v1608_v17, %v1611_v26  ;;  %v1631_v18 = vsel %vm1621_vm7, %v1617_v3, 1326507024  ;;  %v391_v5 = vmul.f32 %v8030_v23, %v329_v44  ;;  %v7697_v37 = vpop.eup %7696 }
 0x1ee   : > { %v1629_v14 = vsel %vm1619_vm10, %v1626_v20, %v1628_v51  ;;  %v1550_v47 = vclz %v7256_v27  ;;  %v1622_v13 = vsel %vm1618_vm6, %v1602_v15, %v1605_v30  ;;  %v1624_v33 = vsel %vm1620_vm9, %v1608_v17, %v1623_v32  ;;  %v7699_v10 = vpop.eup %7698 }
 0x1ef   : > { %v9219_v54 = vadd.f32 %v390_v45, %v7980_v59  ;;  %v1478_v29 = vxor.u32 2147483648, %v7697_v37  ;;  %v1632_v7 = vsel %vm1620_vm9, %v1614_v55, %v1631_v18  ;;  %v1475_v16 = vxor.u32 2147483648, %v7699_v10 }
 0x1f0   : > { %v9223_v50 = vmul.u32.u64.low %v1634_v36, %v1629_v14  ;;  %v9224_v0 = vmul.u32.u64.high %v1634_v36, %v1629_v14, %v9223_v50  ;;  %v1538_v8 = vadd.s32 %v9117_v19, %v9124_v25  ;;  %v7257_v28 = vadd.s32 4294967294, %v1550_v47 }
 0x1f1   : > { %v1633_v30 = vsel %vm1619_vm10, %v1630_v49, %v1632_v7  ;;  %v1479_v59 = vsel %vm1477_vm2, %v1478_v29, %v7699_v10  ;;  %v4829_v17 = vsel %vm4827_vm0, %v1478_v29, %v7699_v10  ;;  %v1476_v38 = vsel %vm1474_vm1, %v7697_v37, %v1475_v16 }
 0x1f2   : > { %v9235_v34 = vmul.u32.u64.low %v1634_v36, %v1633_v30  ;;  %v9236_v56 = vmul.u32.u64.high %v1634_v36, %v1633_v30, %v9235_v34  ;;  %v4826_v19 = vsel %vm4824_vm3, %v7697_v37, %v1475_v16  ;;  %vm7258_vm11 = vcmp.lt.s32.totalorder %v7257_v28, 0  ;;  %v9281_v30 = vpop.permute.xlu0 %332 }
 0x1f3   : > { %v1625_v25 = vsel %vm1619_vm10, %v1622_v13, %v1624_v33  ;;  %v1480_v12 = vsel %vm1473_vm4, %v1476_v38, %v1479_v59  ;;  %v4830_v35 = vsel %vm4823_vm5, %v4826_v19, %v4829_v17  ;;  %v1553_v44 = vsel %vm7258_vm11, 0, %v7257_v28 }
 0x1f4   : > { %v1644_v26 = vadd.s32 1, %v9224_v0  ;;  %v1481_v55 = vsel %vm1470_vm8, nan, %v1480_v12  ;;  %v4831_v3 = vsel %vm1470_vm8, nan, %v4830_v35  ;;  %v1554_v53 = vsub.s32 32, %v1553_v44 }
 0x1f5   : > { %v1568_v45 = vsub.s32 4, %v9173_v52  ;;  %3779 = vst [vmem:[%s8347_s4 + $0x88] sm:$0xff] %v1481_v55  ;;  %7107 = vst [vmem:[%s8347_s4 + $0x98] sm:$0xff] %v4831_v3  ;;  %v1558_v11 = vsub.s32 4294967266, %v1553_v44  ;;  %v1641_v9 = vmul.u32 %v1634_v36, %v1625_v25  ;;  %vm1643_vm12 = vc.u32 %v9236_v56, %v9223_v50 }
 0x1f6   : > { %vm1484_vm13 = vcmp.lt.s32.totalorder %v8889_v42, 0  ;;  %v1556_v21 = vshrl.u32 %v1538_v8, %v1554_v53  ;;  %v1645_v32 = vsel %vm1643_vm12, %v1644_v26, %v9224_v0  ;;  %v9261_v20 = vadd.f32 %v391_v5, %v7983_v60 }
 0x1f7   : > { %v1555_v62 = vshll.u32 %v9189_v61, %v1553_v44  ;;  %v1559_v48 = vadd.s32 127, %v1558_v11  ;;  %v1646_v27 = vadd.s32 %v1645_v32, %v1641_v9  ;;  %v1693_v15 = vand.u32 2139095040, %v9219_v54 }
 0x1f8   : > { %v1569_v36 = vsel %vm1484_vm13, %v1568_v45, %v9173_v52  ;;  %v1690_v51 = vand.u32 2147483647, %v9219_v54  ;;  %vm9271_vm14 = vcmp.le.f32.partialorder %v1482_v43, 0.7853982  ;;  %v1797_v61 = vand.u32 2139095040, %v9261_v20 }
 0x1f9   : > { %v1557_v14 = vor.u32 %v1556_v21, %v1555_v62  ;;  %v1560_v49 = vshll.u32 %v1559_v48, 23  ;;  %v1647_v18 = vadd.s32 536870912, %v1646_v27  ;;  %v1694_v37 = vshrl.u32 %v1693_v15, 23 }
 0x1fa   : > { %v1571_v47 = vsel %vm9271_vm14, 0, %v1569_v36  ;;  %v1697_v33 = vand.u32 8388607, %v1690_v51  ;;  %v1794_v10 = vand.u32 2147483647, %v9261_v20  ;;  %v1798_v29 = vshrl.u32 %v1797_v61, 23 }
 0x1fb   : > { %v1561_v5 = vor.u32 4788187, %v1560_v49  ;;  %v1648_v13 = vshrl.u32 %v1647_v18, 30  ;;  %v7263_v52 = vadd.s32 4294967169, %v1694_v37  ;;  %v1564_v0 = vcvt.s32.f32 %v1557_v14 }
 0x1fc   : > { %v1575_v8 = vadd.s32 3, %v1571_v47  ;;  %v7267_v34 = vadd.s32 4294967169, %v1798_v29  ;;  %vm9287_vm0 = vcmp.le.f32.partialorder %v1586_v40, 0.7853982  ;;  %v1698_v19 = vor.u32 8388608, %v1697_v33 }
 0x1fd   : > { %v1562_v7 = vand.u32 2147483647, %v1561_v5  ;;  %v1649_v43 = vshll.u32 %v1648_v13, 30  ;;  %v1700_v16 = vadd.s32 1, %v7263_v52  ;;  %v1672_v28 = vsub.s32 4, %v1648_v13 }
 0x1fe   : > { %v9294_v44 = vand.u32 8388607, %v1794_v10  ;;  %v392_v26 = vmul.f32 %v8028_v22, %v9281_v30  ;;  %v9298_v55 = vand.u32 3, %v1575_v8  ;;  %vm1588_vm1 = vcmp.lt.s32.totalorder %v9027_v6, 0 }
 0x1ff   : > { %v1565_v59 = vmul.f32 %v1564_v0, %v1562_v7  ;;  %v9283_v17 = vsub.s32 %v1646_v27, %v1649_v43  ;;  %vm1701_vm15 = vcmp.gt.s32.totalorder %v1700_v16, 0  ;;  %v9301_v40 = vand.u32 3, %v1571_v47 }
 0x200   : > { %v1702_v25 = vsel %vm1701_vm15, %v1700_v16, 0  ;;  %v1673_v11 = vsel %vm1588_vm1, %v1672_v28, %v1648_v13  ;;  %v9308_v9 = vadd.s32 1, %v7267_v34  ;;  %v1642_v32 = vadd.s32 %v9223_v50, %v9236_v56 }
 0x201   : > { %v1566_v12 = vxor.u32 2147483648, %v1565_v59  ;;  %v1652_v35 = vsub.s32 0, %v9283_v17  ;;  %v1704_v3 = vand.u32 31, %v1702_v25  ;;  %v9315_v48 = vshll.u32 %v1698_v19, 8 }
 0x202   : > { %v1802_v15 = vor.u32 8388608, %v9294_v44  ;;  %v9319_v36 = vadd.f32 %v392_v26, %v7975_v57  ;;  %v9323_v14 = vsel %vm9287_vm0, 0, %v1673_v11  ;;  %v1703_v49 = vshrl.u32 %v1702_v25, 5 }
 0x203   : > { %v1567_v53 = vsel %vm1484_vm13, %v1566_v12, %v1565_v59  ;;  %v7260_v45 = vmin.u32 %v1652_v35, %v9283_v17  ;;  %v1705_v62 = vsub.s32 32, %v1704_v3  ;;  %v1707_v18 = vshll.u32 %v11509_v31, %v1704_v3 }
 0x204   : > { %v1570_v21 = vsel %vm9271_vm14, %v8889_v42, %v1567_v53  ;;  %v1710_v56 = vshll.u32 %v11510_v39, %v1704_v3  ;;  %vm1805_vm2 = vcmp.gt.s32.totalorder %v9308_v9, 0  ;;  %v1713_v57 = vshll.u32 %v11511_v4, %v1704_v3 }
 0x205   : > { %7700 = vcosq.f32 %v1570_v21  ;;  %v1654_v27 = vclz %v7260_v45  ;;  %v1708_v50 = vshrl.u32 %v11510_v39, %v1705_v62  ;;  %v1711_v60 = vshrl.u32 %v11511_v4, %v1705_v62 }
 0x206   : > { %7702 = vsinq.f32 %v1570_v21  ;;  %v1714_v61 = vshrl.u32 %v11512_v46, %v1705_v62  ;;  %v1716_v5 = vshll.u32 %v11512_v46, %v1704_v3  ;;  %v1717_v47 = vshrl.u32 %v11513_v41, %v1705_v62 }
 0x207   : > { %v7261_v37 = vadd.s32 4294967294, %v1654_v27  ;;  %vm1581_vm3 = vcmp.eq.s32.totalorder %v9298_v55, 2  ;;  %vm4930_vm5 = vcmp.eq.s32.totalorder %v9301_v40, 2  ;;  %v1709_v13 = vor.u32 %v1708_v50, %v1707_v18 }
 0x208   : > { %v1712_v52 = vor.u32 %v1711_v60, %v1710_v56  ;;  %v1719_v33 = vshll.u32 %v11513_v41, %v1704_v3  ;;  %vm1578_vm6 = vcmp.eq.s32.totalorder %v9298_v55, 0  ;;  %vm4927_vm7 = vcmp.eq.s32.totalorder %v9301_v40, 0 }
 0x209   : > { %vm7262_vm4 = vcmp.lt.s32.totalorder %v7261_v37, 0  ;;  %v1715_v7 = vor.u32 %v1714_v61, %v1713_v57  ;;  %v1718_v0 = vor.u32 %v1717_v47, %v1716_v5  ;;  %v1720_v43 = vshrl.u32 %v11514_v24, %v1705_v62 }
 0x20a   : > { %v1657_v29 = vsel %vm7262_vm4, 0, %v7261_v37  ;;  %vm1577_vm8 = vcmp.lt.s32.totalorder %v9298_v55, 2  ;;  %vm4926_vm9 = vcmp.lt.s32.totalorder %v9301_v40, 2  ;;  %v1706_v59 = vshrl.u32 %v11509_v31, %v1705_v62 }
 0x20b   : > { %v1658_v16 = vsub.s32 32, %v1657_v29  ;;  %v1659_v8 = vshll.u32 %v9283_v17, %v1657_v29  ;;  %v1662_v28 = vsub.s32 4294967266, %v1657_v29  ;;  %vm1574_vm10 = vweird.f32 %v8889_v42 }
 0x20c   : > { %v1721_v34 = vor.u32 %v1720_v43, %v1719_v33  ;;  %vm1722_vm11 = vcmp.lt.s32.totalorder %v1703_v49, 1  ;;  %vm1724_vm12 = vcmp.lt.s32.totalorder %v1703_v49, 3  ;;  %vm1725_vm13 = vcmp.lt.s32.totalorder %v1703_v49, 4 }
 0x20d   : > { %v1660_v19 = vshrl.u32 %v1642_v32, %v1658_v16  ;;  %v1663_v25 = vadd.s32 127, %v1662_v28  ;;  %v1726_v12 = vsel %vm1722_vm11, %v1706_v59, %v1709_v13  ;;  %v1727_v35 = vsel %vm1725_vm13, %v1715_v7, 2102212464 }
 0x20e   : > { %vm1723_vm14 = vcmp.lt.s32.totalorder %v1703_v49, 2  ;;  %v1728_v44 = vsel %vm1724_vm12, %v1712_v52, %v1727_v35  ;;  %v1730_v17 = vsel %vm1722_vm11, %v1709_v13, %v1712_v52  ;;  %v1731_v26 = vsel %vm1725_vm13, %v1718_v0, 920167782 }
 0x20f   : > { %v7701_v3 = vpop.eup %7700  ;;  %v1661_v53 = vor.u32 %v1660_v19, %v1659_v8  ;;  %v1664_v45 = vshll.u32 %v1663_v25, 23  ;;  %v1732_v11 = vsel %vm1724_vm12, %v1715_v7, %v1731_v26  ;;  %v1734_v21 = vsel %vm1722_vm11, %v1712_v52, %v1715_v7 }
 0x210   : > { %v7703_v62 = vpop.eup %7702  ;;  %v1582_v27 = vxor.u32 2147483648, %v7701_v3  ;;  %v1729_v32 = vsel %vm1723_vm14, %v1726_v12, %v1728_v44  ;;  %v1735_v18 = vsel %vm1725_vm13, %v1721_v34, 1326507024  ;;  %v9351_v37 = vshll.u32 %v1802_v15, 8 }
 0x211   : > { %v1579_v50 = vxor.u32 2147483648, %v7703_v62  ;;  %v1665_v56 = vor.u32 4788187, %v1664_v45  ;;  %v1733_v60 = vsel %vm1723_vm14, %v1730_v17, %v1732_v11  ;;  %v1736_v57 = vsel %vm1724_vm12, %v1718_v0, %v1735_v18 }
 0x212   : > { %v1583_v61 = vsel %vm1581_vm3, %v1582_v27, %v7703_v62  ;;  %v4932_v5 = vsel %vm4930_vm5, %v1582_v27, %v7703_v62  ;;  %v1737_v47 = vsel %vm1723_vm14, %v1734_v21, %v1736_v57  ;;  %v1806_v15 = vsel %vm1805_vm2, %v9308_v9, 0 }
 0x213   : > { %v1580_v13 = vsel %vm1578_vm6, %v7701_v3, %v1579_v50  ;;  %v1666_v52 = vand.u32 2147483647, %v1665_v56  ;;  %v1668_v33 = vcvt.s32.f32 %v1661_v53  ;;  %v4929_v29 = vsel %vm4927_vm7, %v7701_v3, %v1579_v50 }
 0x214   : > { %v1584_v7 = vsel %vm1577_vm8, %v1580_v13, %v1583_v61  ;;  %v4933_v49 = vsel %vm4926_vm9, %v4929_v29, %v4932_v5  ;;  %v9372_v0 = vmul.u32.u64.low %v9315_v48, %v1737_v47  ;;  %v9373_v43 = vmul.u32.u64.high %v9315_v48, %v1737_v47, %v9372_v0 }
 0x215   : > { %v1585_v9 = vsel %vm1574_vm10, nan, %v1584_v7  ;;  %v1669_v16 = vmul.f32 %v1668_v33, %v1666_v52  ;;  %v4934_v8 = vsel %vm1574_vm10, nan, %v4933_v49  ;;  %v1808_v28 = vand.u32 31, %v1806_v15 }
 0x216   : > { %v1679_v59 = vadd.s32 3, %v9323_v14  ;;  %3780 = vst [vmem:[%s8347_s4 + $0xa0] sm:$0xff] %v1585_v9  ;;  %v9382_v55 = vand.u32 3, %v9323_v14  ;;  %7108 = vst [vmem:[%s8347_s4 + $0xb0] sm:$0xff] %v4934_v8  ;;  %v9386_v40 = vmul.u32.u64.low %v9315_v48, %v1733_v60  ;;  %v9387_v34 = vmul.u32.u64.high %v9315_v48, %v1733_v60, %v9386_v40 }
 0x217   : > { %v1670_v19 = vxor.u32 2147483648, %v1669_v16  ;;  %v1745_v25 = vmul.u32 %v9315_v48, %v1729_v32  ;;  %v1807_v12 = vshrl.u32 %v1806_v15, 5  ;;  %v1809_v35 = vsub.s32 32, %v1808_v28 }
 0x218   : > { %vm1747_vm15 = vc.u32 %v9373_v43, %v9386_v40  ;;  %v1811_v42 = vshll.u32 %v11509_v31, %v1808_v28  ;;  %v1814_v44 = vshll.u32 %v11510_v39, %v1808_v28  ;;  %v1817_v14 = vshll.u32 %v11511_v4, %v1808_v28 }
 0x219   : > { %v1671_v17 = vsel %vm1588_vm1, %v1670_v19, %v1669_v16  ;;  %v1812_v26 = vshrl.u32 %v11510_v39, %v1809_v35  ;;  %v1815_v3 = vshrl.u32 %v11511_v4, %v1809_v35  ;;  %v1820_v48 = vshll.u32 %v11512_v46, %v1808_v28 }
 0x21a   : > { %v1674_v53 = vsel %vm9287_vm0, %v9027_v6, %v1671_v17  ;;  %v1748_v45 = vadd.s32 1, %v9387_v34  ;;  %v1818_v11 = vshrl.u32 %v11512_v46, %v1809_v35  ;;  %v1821_v21 = vshrl.u32 %v11513_v41, %v1809_v35 }
 0x21b   : > { %7704 = vcosq.f32 %v1674_v53  ;;  %v1813_v62 = vor.u32 %v1812_v26, %v1811_v42  ;;  %v1816_v27 = vor.u32 %v1815_v3, %v1814_v44  ;;  %vm1826_vm1 = vcmp.lt.s32.totalorder %v1807_v12, 1 }
 0x21c   : > { %7706 = vsinq.f32 %v1674_v53  ;;  %v1749_v32 = vsel %vm1747_vm15, %v1748_v45, %v9387_v34  ;;  %v1819_v18 = vor.u32 %v1818_v11, %v1817_v14  ;;  %v1822_v50 = vor.u32 %v1821_v21, %v1820_v48 }
 0x21d   : > { %v1750_v38 = vadd.s32 %v1749_v32, %v1745_v25  ;;  %v1823_v56 = vshll.u32 %v11513_v41, %v1808_v28  ;;  %v1824_v60 = vshrl.u32 %v11514_v24, %v1809_v35  ;;  %vm1829_vm0 = vcmp.lt.s32.totalorder %v1807_v12, 4 }
 0x21e   : > { %vm1827_vm2 = vcmp.lt.s32.totalorder %v1807_v12, 2  ;;  %vm1828_vm3 = vcmp.lt.s32.totalorder %v1807_v12, 3  ;;  %v1834_v57 = vsel %vm1826_vm1, %v1813_v62, %v1816_v27  ;;  %v1835_v61 = vsel %vm1829_vm0, %v1822_v50, 920167782 }
 0x21f   : > { %v1751_v5 = vadd.s32 536870912, %v1750_v38  ;;  %v1825_v47 = vor.u32 %v1824_v60, %v1823_v56  ;;  %v1831_v15 = vsel %vm1829_vm0, %v1819_v18, 2102212464  ;;  %v1836_v13 = vsel %vm1828_vm3, %v1819_v18, %v1835_v61 }
 0x220   : > { %v1680_v52 = vand.u32 3, %v1679_v59  ;;  %v1810_v33 = vshrl.u32 %v11509_v31, %v1809_v35  ;;  %v1837_v29 = vsel %vm1827_vm2, %v1834_v57, %v1836_v13  ;;  %v1838_v7 = vsel %vm1826_vm1, %v1816_v27, %v1819_v18 }
 0x221   : > { %v1752_v49 = vshrl.u32 %v1751_v5, 30  ;;  %v1839_v0 = vsel %vm1829_vm0, %v1825_v47, 1326507024  ;;  %v9419_v9 = vmul.u32.u64.low %v9351_v37, %v1837_v29  ;;  %v9420_v16 = vmul.u32.u64.high %v9351_v37, %v1837_v29, %v9419_v9 }
 0x222   : > { %v1830_v8 = vsel %vm1826_vm1, %v1810_v33, %v1813_v62  ;;  %v1832_v28 = vsel %vm1828_vm3, %v1816_v27, %v1831_v15  ;;  %v1840_v34 = vsel %vm1828_vm3, %v1822_v50, %v1839_v0  ;;  %v1901_v59 = vand.u32 2139095040, %v9319_v36 }
 0x223   : > { %vm1678_vm4 = vweird.f32 %v9027_v6  ;;  %v1753_v19 = vshll.u32 %v1752_v49, 30  ;;  %v1841_v25 = vsel %vm1827_vm2, %v1838_v7, %v1840_v34  ;;  %v393_v35 = vmul.f32 %v8030_v23, %v9281_v30 }
 0x224   : > { %vm5029_vm5 = vcmp.lt.s32.totalorder %v9382_v55, 2  ;;  %v9433_v42 = vmul.u32.u64.low %v9351_v37, %v1841_v25  ;;  %v9434_v44 = vmul.u32.u64.high %v9351_v37, %v1841_v25, %v9433_v42  ;;  %v1898_v14 = vand.u32 2147483647, %v9319_v36 }
 0x225   : > { %v7705_v17 = vpop.eup %7704  ;;  %vm5030_vm6 = vcmp.eq.s32.totalorder %v9382_v55, 0  ;;  %v1754_v26 = vsub.s32 %v1750_v38, %v1753_v19  ;;  %v1833_v3 = vsel %vm1827_vm2, %v1830_v8, %v1832_v28  ;;  %v1902_v48 = vshrl.u32 %v1901_v59, 23 }
 0x226   : > { %v7707_v53 = vpop.eup %7706  ;;  %vm1681_vm7 = vcmp.lt.s32.totalorder %v1680_v52, 2  ;;  %v1686_v45 = vxor.u32 2147483648, %v7705_v17  ;;  %vm5033_vm8 = vcmp.eq.s32.totalorder %v9382_v55, 2  ;;  %v1852_v30 = vadd.s32 1, %v9420_v16 }
 0x227   : > { %vm1682_vm9 = vcmp.eq.s32.totalorder %v1680_v52, 0  ;;  %v1683_v11 = vxor.u32 2147483648, %v7707_v53  ;;  %vm1685_vm10 = vcmp.eq.s32.totalorder %v1680_v52, 2  ;;  %v1756_v21 = vsub.s32 0, %v1754_v26 }
 0x228   : > { %v1687_v62 = vsel %vm1685_vm10, %v1686_v45, %v7707_v53  ;;  %v5035_v27 = vsel %vm5033_vm8, %v1686_v45, %v7707_v53  ;;  %v1849_v32 = vmul.u32 %v9351_v37, %v1833_v3  ;;  %vm1851_vm11 = vc.u32 %v9434_v44, %v9419_v9 }
 0x229   : > { %v1684_v12 = vsel %vm1682_vm9, %v7705_v17, %v1683_v11  ;;  %v5032_v18 = vsel %vm5030_vm6, %v7705_v17, %v1683_v11  ;;  %v7264_v50 = vmin.u32 %v1756_v21, %v1754_v26  ;;  %v7271_v38 = vadd.s32 4294967169, %v1902_v48 }
 0x22a   : > { %v1688_v56 = vsel %vm1681_vm7, %v1684_v12, %v1687_v62  ;;  %v5036_v60 = vsel %vm5029_vm5, %v5032_v18, %v5035_v27  ;;  %v1776_v57 = vsub.s32 4, %v1752_v49  ;;  %v1853_v61 = vsel %vm1851_vm11, %v1852_v30, %v9420_v16 }
 0x22b   : > { %v1689_v37 = vsel %vm1678_vm4, nan, %v1688_v56  ;;  %v5037_v5 = vsel %vm1678_vm4, nan, %v5036_v60  ;;  %v1758_v47 = vclz %v7264_v50  ;;  %v1854_v15 = vadd.s32 %v1853_v61, %v1849_v32 }
 0x22c   : > { %3781 = vst [vmem:[%s8347_s4 + $0xa8] sm:$0xff] %v1689_v37  ;;  %7109 = vst [vmem:[%s8347_s4 + $0xb8] sm:$0xff] %v5037_v5  ;;  %v9457_v13 = vadd.f32 %v393_v35, %v7978_v58  ;;  %vm1692_vm12 = vcmp.lt.s32.totalorder %v9219_v54, 0  ;;  %v1908_v52 = vadd.s32 1, %v7271_v38  ;;  %v1905_v7 = vand.u32 8388607, %v1898_v14 }
 0x22d   : > { %v7265_v55 = vadd.s32 4294967294, %v1758_v47  ;;  %v1777_v33 = vsel %vm1692_vm12, %v1776_v57, %v1752_v49  ;;  %v1855_v29 = vadd.s32 536870912, %v1854_v15  ;;  %vm9466_vm13 = vcmp.le.f32.partialorder %v1690_v51, 0.7853982 }
 0x22e   : > { %vm1909_vm15 = vcmp.gt.s32.totalorder %v1908_v52, 0  ;;  %v2005_v8 = vand.u32 2139095040, %v9457_v13  ;;  %v1746_v49 = vadd.s32 %v9386_v40, %v9373_v43  ;;  %v1779_v59 = vsel %vm9466_vm13, 0, %v1777_v33 }
 0x22f   : > { %vm7266_vm14 = vcmp.lt.s32.totalorder %v7265_v55, 0  ;;  %v1856_v0 = vshrl.u32 %v1855_v29, 30  ;;  %v1910_v16 = vsel %vm1909_vm15, %v1908_v52, 0  ;;  %v1906_v51 = vor.u32 8388608, %v1905_v7 }
 0x230   : > { %v1761_v58 = vsel %vm7266_vm14, 0, %v7265_v55  ;;  %v1912_v25 = vand.u32 31, %v1910_v16  ;;  %v1783_v48 = vadd.s32 3, %v1779_v59  ;;  %v2006_v30 = vshrl.u32 %v2005_v8, 23 }
 0x231   : > { %v1762_v28 = vsub.s32 32, %v1761_v58  ;;  %v1766_v34 = vsub.s32 4294967266, %v1761_v58  ;;  %v1857_v19 = vshll.u32 %v1856_v0, 30  ;;  %v1763_v35 = vshll.u32 %v1754_v26, %v1761_v58 }
 0x232   : > { %v1880_v3 = vsub.s32 4, %v1856_v0  ;;  %v1913_v45 = vsub.s32 32, %v1912_v25  ;;  %vm9479_vm1 = vcmp.le.f32.partialorder %v1794_v10, 0.7853982  ;;  %vm1796_vm0 = vcmp.lt.s32.totalorder %v9261_v20, 0 }
 0x233   : > { %v1764_v42 = vshrl.u32 %v1746_v49, %v1762_v28  ;;  %v1767_v17 = vadd.s32 127, %v1766_v34  ;;  %v9475_v53 = vsub.s32 %v1854_v15, %v1857_v19  ;;  %v9485_v26 = vand.u32 3, %v1779_v59 }
 0x234   : > { %v9487_v62 = vshrl.u32 %v1910_v16, 5  ;;  %v2002_v27 = vand.u32 2147483647, %v9457_v13  ;;  %v1850_v12 = vadd.s32 %v9419_v9, %v9434_v44  ;;  %v1881_v10 = vsel %vm1796_vm0, %v1880_v3, %v1856_v0 }
 0x235   : > { %v1765_v11 = vor.u32 %v1764_v42, %v1763_v35  ;;  %v1768_v21 = vshll.u32 %v1767_v17, 23  ;;  %v1860_v40 = vsub.s32 0, %v9475_v53  ;;  %v1916_v18 = vshrl.u32 %v11510_v39, %v1913_v45 }
 0x236   : > { %v9495_v50 = vand.u32 3, %v1783_v48  ;;  %v9498_v56 = vshll.u32 %v1906_v51, 8  ;;  %v7275_v60 = vadd.s32 4294967169, %v2006_v30  ;;  %v1915_v37 = vshll.u32 %v11509_v31, %v1912_v25 }
 0x237   : > { %v1769_v32 = vor.u32 4788187, %v1768_v21  ;;  %v7268_v38 = vmin.u32 %v1860_v40, %v9475_v53  ;;  %v1772_v61 = vcvt.s32.f32 %v1765_v11  ;;  %v1919_v5 = vshrl.u32 %v11511_v4, %v1913_v45 }
 0x238   : > { %v9504_v9 = vsel %vm9479_vm1, 0, %v1881_v10  ;;  %v1918_v44 = vshll.u32 %v11510_v39, %v1912_v25  ;;  %vm1930_vm2 = vcmp.lt.s32.totalorder %v9487_v62, 1  ;;  %v1917_v55 = vor.u32 %v1916_v18, %v1915_v37 }
 0x239   : > { %v1770_v57 = vand.u32 2147483647, %v1769_v32  ;;  %v1862_v47 = vclz %v7268_v38  ;;  %v1921_v52 = vshll.u32 %v11511_v4, %v1912_v25  ;;  %v1922_v33 = vshrl.u32 %v11512_v46, %v1913_v45 }
 0x23a   : > { %vm1931_vm3 = vcmp.lt.s32.totalorder %v9487_v62, 2  ;;  %v1924_v7 = vshll.u32 %v11512_v46, %v1912_v25  ;;  %v1925_v58 = vshrl.u32 %v11513_v41, %v1913_v45  ;;  %v1928_v0 = vshrl.u32 %v11514_v24, %v1913_v45 }
 0x23b   : > { %v1773_v15 = vmul.f32 %v1772_v61, %v1770_v57  ;;  %v7269_v29 = vadd.s32 4294967294, %v1862_v47  ;;  %v1920_v8 = vor.u32 %v1919_v5, %v1918_v44  ;;  %v1923_v49 = vor.u32 %v1922_v33, %v1921_v52 }
 0x23c   : > { %v1927_v28 = vshll.u32 %v11513_v41, %v1912_v25  ;;  %v1914_v34 = vshrl.u32 %v11509_v31, %v1913_v45  ;;  %v1926_v59 = vor.u32 %v1925_v58, %v1924_v7  ;;  %vm1932_vm5 = vcmp.lt.s32.totalorder %v9487_v62, 3 }
 0x23d   : > { %v1774_v16 = vxor.u32 2147483648, %v1773_v15  ;;  %vm7270_vm4 = vcmp.lt.s32.totalorder %v7269_v29, 0  ;;  %vm1933_vm6 = vcmp.lt.s32.totalorder %v9487_v62, 4  ;;  %v1938_v45 = vsel %vm1930_vm2, %v1917_v55, %v1920_v8 }
 0x23e   : > { %v1865_v51 = vsel %vm7270_vm4, 0, %v7269_v29  ;;  %v1929_v35 = vor.u32 %v1928_v0, %v1927_v28  ;;  %v1935_v25 = vsel %vm1933_vm6, %v1923_v49, 2102212464  ;;  %v1939_v30 = vsel %vm1933_vm6, %v1926_v59, 920167782 }
 0x23f   : > { %v1775_v19 = vsel %vm1692_vm12, %v1774_v16, %v1773_v15  ;;  %v1866_v17 = vsub.s32 32, %v1865_v51  ;;  %v1870_v3 = vsub.s32 4294967266, %v1865_v51  ;;  %v1867_v48 = vshll.u32 %v9475_v53, %v1865_v51 }
 0x240   : > { %v1778_v42 = vsel %vm9466_vm13, %v9219_v54, %v1775_v19  ;;  %v1942_v6 = vsel %vm1930_vm2, %v1920_v8, %v1923_v49  ;;  %v1934_v40 = vsel %vm1930_vm2, %v1914_v34, %v1917_v55  ;;  %v1936_v32 = vsel %vm1932_vm5, %v1920_v8, %v1935_v25 }
 0x241   : > { %7708 = vcosq.f32 %v1778_v42  ;;  %v1868_v11 = vshrl.u32 %v1850_v12, %v1866_v17  ;;  %v1871_v21 = vadd.s32 127, %v1870_v3  ;;  %v1940_v53 = vsel %vm1932_vm5, %v1923_v49, %v1939_v30 }
 0x242   : > { %7710 = vsinq.f32 %v1778_v42  ;;  %v1943_v10 = vsel %vm1933_vm6, %v1929_v35, 1326507024  ;;  %v1941_v12 = vsel %vm1931_vm3, %v1938_v45, %v1940_v53  ;;  %v2012_v47 = vadd.s32 1, %v7275_v60 }
 0x243   : > { %v1869_v18 = vor.u32 %v1868_v11, %v1867_v48  ;;  %v1872_v38 = vshll.u32 %v1871_v21, 23  ;;  %v1944_v57 = vsel %vm1932_vm5, %v1926_v59, %v1943_v10  ;;  %vm1786_vm7 = vcmp.eq.s32.totalorder %v9495_v50, 0 }
 0x244   : > { %v1945_v61 = vsel %vm1931_vm3, %v1942_v6, %v1944_v57  ;;  %v9547_v37 = vmul.u32.u64.low %v9498_v56, %v1941_v12  ;;  %v9548_v5 = vmul.u32.u64.high %v9498_v56, %v1941_v12, %v9547_v37  ;;  %vm1785_vm8 = vcmp.lt.s32.totalorder %v9495_v50, 2 }
 0x245   : > { %v1873_v44 = vor.u32 4788187, %v1872_v38  ;;  %v9553_v15 = vmul.u32.u64.low %v9498_v56, %v1945_v61  ;;  %v9554_v55 = vmul.u32.u64.high %v9498_v56, %v1945_v61, %v9553_v15  ;;  %v1887_v52 = vadd.s32 3, %v9504_v9 }
 0x246   : > { %vm5132_vm9 = vcmp.lt.s32.totalorder %v9485_v26, 2  ;;  %v1937_v33 = vsel %vm1931_vm3, %v1934_v40, %v1936_v32  ;;  %v9563_v29 = vand.u32 8388607, %v2002_v27  ;;  %vm2013_vm10 = vcmp.gt.s32.totalorder %v2012_v47, 0 }
 0x247   : > { %vm1782_vm11 = vweird.f32 %v9219_v54  ;;  %vm1789_vm12 = vcmp.eq.s32.totalorder %v9495_v50, 2  ;;  %v1874_v60 = vand.u32 2147483647, %v1873_v44  ;;  %v1876_v7 = vcvt.s32.f32 %v1869_v18  ;;  %v337_v54 = vpop.permute.xlu1 %336 }
 0x248   : > { %v2014_v58 = vsel %vm2013_vm10, %v2012_v47, 0  ;;  %vm5133_vm13 = vcmp.eq.s32.totalorder %v9485_v26, 0  ;;  %vm5136_vm14 = vcmp.eq.s32.totalorder %v9485_v26, 2  ;;  %v1956_v0 = vadd.s32 1, %v9548_v5 }
 0x249   : > { %v2016_v62 = vand.u32 31, %v2014_v58  ;;  %v1877_v16 = vmul.f32 %v1876_v7, %v1874_v60  ;;  %v9571_v8 = vand.u32 3, %v9504_v9  ;;  %v1953_v49 = vmul.u32 %v9498_v56, %v1937_v33 }
 0x24a   : > { %vm1955_vm15 = vc.u32 %v9554_v55, %v9547_v37  ;;  %v9576_v34 = vand.u32 3, %v1887_v52  ;;  %v2010_v19 = vor.u32 8388608, %v9563_v29  ;;  %v9580_v25 = vshrl.u32 %v2014_v58, 5 }
 0x24b   : > { %v7709_v28 = vpop.eup %7708  ;;  %v1957_v59 = vsel %vm1955_vm15, %v1956_v0, %v9548_v5  ;;  %v2017_v51 = vsub.s32 32, %v2016_v62  ;;  %v1878_v17 = vxor.u32 2147483648, %v1877_v16  ;;  %v2019_v56 = vshll.u32 %v11509_v31, %v2016_v62 }
 0x24c   : > { %v7711_v35 = vpop.eup %7710  ;;  %v1790_v42 = vxor.u32 2147483648, %v7709_v28  ;;  %v1958_v3 = vadd.s32 %v1957_v59, %v1953_v49  ;;  %v2022_v10 = vshll.u32 %v11510_v39, %v2016_v62  ;;  %v2025_v61 = vshll.u32 %v11511_v4, %v2016_v62 }
 0x24d   : > { %v1787_v9 = vxor.u32 2147483648, %v7711_v35  ;;  %v2020_v48 = vshrl.u32 %v11510_v39, %v2017_v51  ;;  %v2023_v45 = vshrl.u32 %v11511_v4, %v2017_v51  ;;  %v1879_v11 = vsel %vm1796_vm0, %v1878_v17, %v1877_v16 }
 0x24e   : > { %v1791_v30 = vsel %vm1789_vm12, %v1790_v42, %v7711_v35  ;;  %v5138_v21 = vsel %vm5136_vm14, %v1790_v42, %v7711_v35  ;;  %v1959_v6 = vadd.s32 536870912, %v1958_v3  ;;  %v1882_v32 = vsel %vm9479_vm1, %v9261_v20, %v1879_v11 }
 0x24f   : > { %v1788_v40 = vsel %vm1786_vm7, %v7709_v28, %v1787_v9  ;;  %v5135_v53 = vsel %vm5133_vm13, %v7709_v28, %v1787_v9  ;;  %7712 = vcosq.f32 %v1882_v32  ;;  %v2021_v5 = vor.u32 %v2020_v48, %v2019_v56 }
 0x250   : > { %v1792_v18 = vsel %vm1785_vm8, %v1788_v40, %v1791_v30  ;;  %v5139_v38 = vsel %vm5132_vm9, %v5135_v53, %v5138_v21  ;;  %v9603_v12 = vshrl.u32 %v1959_v6, 30  ;;  %7714 = vsinq.f32 %v1882_v32 }
 0x251   : > { %v1793_v57 = vsel %vm1782_vm11, nan, %v1792_v18  ;;  %v5140_v43 = vsel %vm1782_vm11, nan, %v5139_v38  ;;  %v2024_v47 = vor.u32 %v2023_v45, %v2022_v10  ;;  %v2026_v26 = vshrl.u32 %v11512_v46, %v2017_v51 }
 0x252   : > { %3782 = vst [vmem:[%s8347_s4 + $0xc0] sm:$0xff] %v1793_v57  ;;  %7110 = vst [vmem:[%s8347_s4 + $0xd0] sm:$0xff] %v5140_v43  ;;  %v1961_v50 = vshll.u32 %v9603_v12, 30  ;;  %v2028_v44 = vshll.u32 %v11512_v46, %v2016_v62  ;;  %v2029_v15 = vshrl.u32 %v11513_v41, %v2017_v51  ;;  %v2031_v52 = vshll.u32 %v11513_v41, %v2016_v62 }
 0x253   : > { %v2032_v33 = vshrl.u32 %v11514_v24, %v2017_v51  ;;  %vm5239_vm1 = vcmp.eq.s32.totalorder %v9571_v8, 2  ;;  %v2027_v60 = vor.u32 %v2026_v26, %v2025_v61  ;;  %vm1890_vm0 = vcmp.eq.s32.totalorder %v9576_v34, 0 }
 0x254   : > { %v9619_v29 = vsub.s32 %v1958_v3, %v1961_v50  ;;  %vm1893_vm2 = vcmp.eq.s32.totalorder %v9576_v34, 2  ;;  %vm5236_vm3 = vcmp.eq.s32.totalorder %v9571_v8, 0  ;;  %v2030_v7 = vor.u32 %v2029_v15, %v2028_v44 }
 0x255   : > { %v2033_v58 = vor.u32 %v2032_v33, %v2031_v52  ;;  %v2050_v0 = vshll.u32 %v2010_v19, 8  ;;  %vm1889_vm4 = vcmp.lt.s32.totalorder %v9576_v34, 2  ;;  %vm5235_vm5 = vcmp.lt.s32.totalorder %v9571_v8, 2 }
 0x256   : > { %v1964_v62 = vsub.s32 0, %v9619_v29  ;;  %vm2034_vm6 = vcmp.lt.s32.totalorder %v9580_v25, 1  ;;  %vm2037_vm7 = vcmp.lt.s32.totalorder %v9580_v25, 4  ;;  %v394_v16 = vmul.f32 %v8028_v22, %v337_v54 }
 0x257   : > { %vm1886_vm8 = vweird.f32 %v9261_v20  ;;  %vm2036_vm9 = vcmp.lt.s32.totalorder %v9580_v25, 3  ;;  %v2039_v49 = vsel %vm2037_vm7, %v2027_v60, 2102212464  ;;  %v2042_v28 = vsel %vm2034_vm6, %v2021_v5, %v2024_v47 }
 0x258   : > { %v2043_v59 = vsel %vm2037_vm7, %v2030_v7, 920167782  ;;  %v7272_v19 = vmin.u32 %v1964_v62, %v9619_v29  ;;  %v2018_v35 = vshrl.u32 %v11509_v31, %v2017_v51  ;;  %vm2035_vm10 = vcmp.lt.s32.totalorder %v9580_v25, 2 }
 0x259   : > { %v2044_v42 = vsel %vm2036_vm9, %v2027_v60, %v2043_v59  ;;  %v2046_v3 = vsel %vm2034_vm6, %v2024_v47, %v2027_v60  ;;  %v2047_v9 = vsel %vm2037_vm7, %v2033_v58, 1326507024  ;;  %v395_v56 = vmul.f32 %v8030_v23, %v337_v54  ;;  %v7713_v48 = vpop.eup %7712 }
 0x25a   : > { %v2045_v17 = vsel %vm2035_vm10, %v2042_v28, %v2044_v42  ;;  %v1966_v45 = vclz %v7272_v19  ;;  %v2038_v30 = vsel %vm2034_vm6, %v2018_v35, %v2021_v5  ;;  %v2040_v51 = vsel %vm2036_vm9, %v2024_v47, %v2039_v49  ;;  %v7715_v21 = vpop.eup %7714 }
 0x25b   : > { %v9649_v11 = vadd.f32 %v394_v16, %v7990_v1  ;;  %v1894_v6 = vxor.u32 2147483648, %v7713_v48  ;;  %v2048_v40 = vsel %vm2036_vm9, %v2030_v7, %v2047_v9  ;;  %v1891_v10 = vxor.u32 2147483648, %v7715_v21 }
 0x25c   : > { %v9653_v32 = vmul.u32.u64.low %v2050_v0, %v2045_v17  ;;  %v9654_v53 = vmul.u32.u64.high %v2050_v0, %v2045_v17, %v9653_v32  ;;  %v1954_v18 = vadd.s32 %v9547_v37, %v9554_v55  ;;  %v7273_v38 = vadd.s32 4294967294, %v1966_v45 }
 0x25d   : > { %v2049_v57 = vsel %vm2035_vm10, %v2046_v3, %v2048_v40  ;;  %v1895_v1 = vsel %vm1893_vm2, %v1894_v6, %v7715_v21  ;;  %v5241_v43 = vsel %vm5239_vm1, %v1894_v6, %v7715_v21  ;;  %v1892_v5 = vsel %vm1890_vm0, %v7713_v48, %v1891_v10 }
 0x25e   : > { %v9665_v61 = vmul.u32.u64.low %v2050_v0, %v2049_v57  ;;  %v9666_v50 = vmul.u32.u64.high %v2050_v0, %v2049_v57, %v9665_v61  ;;  %v5238_v37 = vsel %vm5236_vm3, %v7713_v48, %v1891_v10  ;;  %vm7274_vm11 = vcmp.lt.s32.totalorder %v7273_v38, 0 }
 0x25f   : > { %v2041_v55 = vsel %vm2035_vm10, %v2038_v30, %v2040_v51  ;;  %v1896_v47 = vsel %vm1889_vm4, %v1892_v5, %v1895_v1  ;;  %v5242_v26 = vsel %vm5235_vm5, %v5238_v37, %v5241_v43  ;;  %v1969_v44 = vsel %vm7274_vm11, 0, %v7273_v38 }
 0x260   : > { %v2060_v15 = vadd.s32 1, %v9654_v53  ;;  %v1897_v52 = vsel %vm1886_vm8, nan, %v1896_v47  ;;  %v5243_v33 = vsel %vm1886_vm8, nan, %v5242_v26  ;;  %v1970_v54 = vsub.s32 32, %v1969_v44 }
 0x261   : > { %v1984_v60 = vsub.s32 4, %v9603_v12  ;;  %3783 = vst [vmem:[%s8347_s4 + $0xc8] sm:$0xff] %v1897_v52  ;;  %7111 = vst [vmem:[%s8347_s4 + $0xd8] sm:$0xff] %v5243_v33  ;;  %v1974_v25 = vsub.s32 4294967266, %v1969_v44  ;;  %v2057_v34 = vmul.u32 %v2050_v0, %v2041_v55  ;;  %vm2059_vm12 = vc.u32 %v9666_v50, %v9653_v32 }
 0x262   : > { %vm1900_vm13 = vcmp.lt.s32.totalorder %v9319_v36, 0  ;;  %v1972_v8 = vshrl.u32 %v1954_v18, %v1970_v54  ;;  %v2061_v7 = vsel %vm2059_vm12, %v2060_v15, %v9654_v53  ;;  %v9691_v58 = vadd.f32 %v395_v56, %v7993_v2  ;;  %v9711_v53 = vpop.permute.xlu0 %340 }
 0x263   : > { %v1971_v20 = vshll.u32 %v9619_v29, %v1969_v44  ;;  %v1975_v62 = vadd.s32 127, %v1974_v25  ;;  %v2062_v16 = vadd.s32 %v2061_v7, %v2057_v34  ;;  %v2109_v49 = vand.u32 2139095040, %v9649_v11 }
 0x264   : > { %v1985_v0 = vsel %vm1900_vm13, %v1984_v60, %v9603_v12  ;;  %v2106_v28 = vand.u32 2147483647, %v9649_v11  ;;  %vm9701_vm14 = vcmp.le.f32.partialorder %v1898_v14, 0.7853982  ;;  %v2213_v29 = vand.u32 2139095040, %v9691_v58 }
 0x265   : > { %v1973_v59 = vor.u32 %v1972_v8, %v1971_v20  ;;  %v1976_v19 = vshll.u32 %v1975_v62, 23  ;;  %v2063_v35 = vadd.s32 536870912, %v2062_v16  ;;  %v2110_v42 = vshrl.u32 %v2109_v49, 23 }
 0x266   : > { %v1987_v3 = vsel %vm9701_vm14, 0, %v1985_v0  ;;  %v2113_v56 = vand.u32 8388607, %v2106_v28  ;;  %v2210_v48 = vand.u32 2147483647, %v9691_v58  ;;  %v2214_v45 = vshrl.u32 %v2213_v29, 23 }
 0x267   : > { %v1977_v17 = vor.u32 4788187, %v1976_v19  ;;  %v2064_v9 = vshrl.u32 %v2063_v35, 30  ;;  %v7279_v12 = vadd.s32 4294967169, %v2110_v42  ;;  %v1980_v51 = vcvt.s32.f32 %v1973_v59 }
 0x268   : > { %v1991_v6 = vadd.s32 3, %v1987_v3  ;;  %v7283_v38 = vadd.s32 4294967169, %v2214_v45  ;;  %vm9717_vm1 = vcmp.le.f32.partialorder %v2002_v27, 0.7853982  ;;  %v2114_v1 = vor.u32 8388608, %v2113_v56 }
 0x269   : > { %v1978_v30 = vand.u32 2147483647, %v1977_v17  ;;  %v2065_v14 = vshll.u32 %v2064_v9, 30  ;;  %v2116_v21 = vadd.s32 1, %v7279_v12  ;;  %v2088_v40 = vsub.s32 4, %v2064_v9 }
 0x26a   : > { %v9724_v37 = vand.u32 8388607, %v2210_v48  ;;  %v396_v55 = vmul.f32 %v8028_v22, %v9711_v53  ;;  %v9728_v47 = vand.u32 3, %v1991_v6  ;;  %vm2004_vm0 = vcmp.lt.s32.totalorder %v9457_v13, 0 }
 0x26b   : > { %v1981_v10 = vmul.f32 %v1980_v51, %v1978_v30  ;;  %v9713_v18 = vsub.s32 %v2062_v16, %v2065_v14  ;;  %vm2117_vm15 = vcmp.gt.s32.totalorder %v2116_v21, 0  ;;  %v9731_v27 = vand.u32 3, %v1987_v3 }
 0x26c   : > { %v2118_v43 = vsel %vm2117_vm15, %v2116_v21, 0  ;;  %v2089_v52 = vsel %vm2004_vm0, %v2088_v40, %v2064_v9  ;;  %v9738_v33 = vadd.s32 1, %v7283_v38  ;;  %v2058_v60 = vadd.s32 %v9653_v32, %v9666_v50 }
 0x26d   : > { %v1982_v61 = vxor.u32 2147483648, %v1981_v10  ;;  %v2068_v5 = vsub.s32 0, %v9713_v18  ;;  %v2120_v26 = vand.u32 31, %v2118_v43  ;;  %v9745_v34 = vshll.u32 %v2114_v1, 8 }
 0x26e   : > { %v2218_v7 = vor.u32 8388608, %v9724_v37  ;;  %v9749_v20 = vadd.f32 %v396_v55, %v7985_v63  ;;  %v9753_v62 = vsel %vm9717_vm1, 0, %v2089_v52  ;;  %v2119_v16 = vshrl.u32 %v2118_v43, 5 }
 0x26f   : > { %v1983_v44 = vsel %vm1900_vm13, %v1982_v61, %v1981_v10  ;;  %v7276_v15 = vmin.u32 %v2068_v5, %v9713_v18  ;;  %v2121_v25 = vsub.s32 32, %v2120_v26  ;;  %v2123_v49 = vshll.u32 %v11509_v31, %v2120_v26 }
 0x270   : > { %v1986_v54 = vsel %vm9701_vm14, %v9319_v36, %v1983_v44  ;;  %v2126_v50 = vshll.u32 %v11510_v39, %v2120_v26  ;;  %vm2221_vm2 = vcmp.gt.s32.totalorder %v9738_v33, 0  ;;  %v2129_v63 = vshll.u32 %v11511_v4, %v2120_v26 }
 0x271   : > { %7716 = vcosq.f32 %v1986_v54  ;;  %v2070_v8 = vclz %v7276_v15  ;;  %v2124_v32 = vshrl.u32 %v11510_v39, %v2121_v25  ;;  %v2127_v59 = vshrl.u32 %v11511_v4, %v2121_v25 }
 0x272   : > { %7718 = vsinq.f32 %v1986_v54  ;;  %v2130_v19 = vshrl.u32 %v11512_v46, %v2121_v25  ;;  %v2132_v35 = vshll.u32 %v11512_v46, %v2120_v26  ;;  %v2133_v42 = vshrl.u32 %v11513_v41, %v2121_v25 }
 0x273   : > { %v7277_v0 = vadd.s32 4294967294, %v2070_v8  ;;  %vm1997_vm3 = vcmp.eq.s32.totalorder %v9728_v47, 2  ;;  %vm5342_vm5 = vcmp.eq.s32.totalorder %v9731_v27, 2  ;;  %v2125_v2 = vor.u32 %v2124_v32, %v2123_v49 }
 0x274   : > { %v2128_v29 = vor.u32 %v2127_v59, %v2126_v50  ;;  %v2135_v17 = vshll.u32 %v11513_v41, %v2120_v26  ;;  %vm1994_vm6 = vcmp.eq.s32.totalorder %v9728_v47, 0  ;;  %vm5339_vm7 = vcmp.eq.s32.totalorder %v9731_v27, 0 }
 0x275   : > { %vm7278_vm4 = vcmp.lt.s32.totalorder %v7277_v0, 0  ;;  %v2131_v9 = vor.u32 %v2130_v19, %v2129_v63  ;;  %v2134_v12 = vor.u32 %v2133_v42, %v2132_v35  ;;  %v2136_v56 = vshrl.u32 %v11514_v24, %v2121_v25 }
 0x276   : > { %v2073_v3 = vsel %vm7278_vm4, 0, %v7277_v0  ;;  %vm1993_vm8 = vcmp.lt.s32.totalorder %v9728_v47, 2  ;;  %vm5338_vm9 = vcmp.lt.s32.totalorder %v9731_v27, 2  ;;  %v2122_v14 = vshrl.u32 %v11509_v31, %v2121_v25 }
 0x277   : > { %v2074_v45 = vsub.s32 32, %v2073_v3  ;;  %v2075_v30 = vshll.u32 %v9713_v18, %v2073_v3  ;;  %v2078_v51 = vsub.s32 4294967266, %v2073_v3  ;;  %vm1990_vm10 = vweird.f32 %v9319_v36 }
 0x278   : > { %v2137_v21 = vor.u32 %v2136_v56, %v2135_v17  ;;  %vm2138_vm11 = vcmp.lt.s32.totalorder %v2119_v16, 1  ;;  %vm2140_vm12 = vcmp.lt.s32.totalorder %v2119_v16, 3  ;;  %vm2141_vm13 = vcmp.lt.s32.totalorder %v2119_v16, 4 }
 0x279   : > { %v2076_v6 = vshrl.u32 %v2058_v60, %v2074_v45  ;;  %v2079_v40 = vadd.s32 127, %v2078_v51  ;;  %v2142_v10 = vsel %vm2138_vm11, %v2122_v14, %v2125_v2  ;;  %v2143_v38 = vsel %vm2141_vm13, %v2131_v9, 2102212464 }
 0x27a   : > { %vm2139_vm14 = vcmp.lt.s32.totalorder %v2119_v16, 2  ;;  %v2144_v1 = vsel %vm2140_vm12, %v2128_v29, %v2143_v38  ;;  %v2146_v18 = vsel %vm2138_vm11, %v2125_v2, %v2128_v29  ;;  %v2147_v43 = vsel %vm2141_vm13, %v2134_v12, 920167782 }
 0x27b   : > { %v7717_v61 = vpop.eup %7716  ;;  %v2077_v5 = vor.u32 %v2076_v6, %v2075_v30  ;;  %v2080_v37 = vshll.u32 %v2079_v40, 23  ;;  %v2148_v55 = vsel %vm2140_vm12, %v2131_v9, %v2147_v43  ;;  %v2150_v26 = vsel %vm2138_vm11, %v2128_v29, %v2131_v9 }
 0x27c   : > { %v7719_v44 = vpop.eup %7718  ;;  %v1998_v15 = vxor.u32 2147483648, %v7717_v61  ;;  %v2145_v52 = vsel %vm2139_vm14, %v2142_v10, %v2144_v1  ;;  %v2151_v54 = vsel %vm2141_vm13, %v2137_v21, 1326507024  ;;  %v9781_v60 = vshll.u32 %v2218_v7, 8 }
 0x27d   : > { %v1995_v25 = vxor.u32 2147483648, %v7719_v44  ;;  %v2081_v8 = vor.u32 4788187, %v2080_v37  ;;  %v2149_v49 = vsel %vm2139_vm14, %v2146_v18, %v2148_v55  ;;  %v2152_v0 = vsel %vm2140_vm12, %v2134_v12, %v2151_v54 }
 0x27e   : > { %v1999_v32 = vsel %vm1997_vm3, %v1998_v15, %v7719_v44  ;;  %v5344_v50 = vsel %vm5342_vm5, %v1998_v15, %v7719_v44  ;;  %v2153_v59 = vsel %vm2139_vm14, %v2150_v26, %v2152_v0  ;;  %v2222_v7 = vsel %vm2221_vm2, %v9738_v33, 0 }
 0x27f   : > { %v1996_v63 = vsel %vm1994_vm6, %v7717_v61, %v1995_v25  ;;  %v2082_v19 = vand.u32 2147483647, %v2081_v8  ;;  %v2084_v35 = vcvt.s32.f32 %v2077_v5  ;;  %v5341_v42 = vsel %vm5339_vm7, %v7717_v61, %v1995_v25 }
 0x280   : > { %v2000_v2 = vsel %vm1993_vm8, %v1996_v63, %v1999_v32  ;;  %v5345_v16 = vsel %vm5338_vm9, %v5341_v42, %v5344_v50  ;;  %v9802_v29 = vmul.u32.u64.low %v9745_v34, %v2153_v59  ;;  %v9803_v17 = vmul.u32.u64.high %v9745_v34, %v2153_v59, %v9802_v29 }
 0x281   : > { %v2001_v33 = vsel %vm1990_vm10, nan, %v2000_v2  ;;  %v2085_v3 = vmul.f32 %v2084_v35, %v2082_v19  ;;  %v5346_v9 = vsel %vm1990_vm10, nan, %v5345_v16  ;;  %v2224_v12 = vand.u32 31, %v2222_v7 }
 0x282   : > { %v2095_v56 = vadd.s32 3, %v9753_v62  ;;  %3784 = vst [vmem:[%s8347_s4 + $0xe0] sm:$0xff] %v2001_v33  ;;  %v9812_v47 = vand.u32 3, %v9753_v62  ;;  %7112 = vst [vmem:[%s8347_s4 + $0xf0] sm:$0xff] %v5346_v9  ;;  %v9816_v27 = vmul.u32.u64.low %v9745_v34, %v2149_v49  ;;  %v9817_v45 = vmul.u32.u64.high %v9745_v34, %v2149_v49, %v9816_v27 }
 0x283   : > { %v2086_v30 = vxor.u32 2147483648, %v2085_v3  ;;  %v2161_v51 = vmul.u32 %v9745_v34, %v2145_v52  ;;  %v2223_v14 = vshrl.u32 %v2222_v7, 5  ;;  %v2225_v21 = vsub.s32 32, %v2224_v12 }
 0x284   : > { %vm2163_vm15 = vc.u32 %v9803_v17, %v9816_v27  ;;  %v2227_v36 = vshll.u32 %v11509_v31, %v2224_v12  ;;  %v2230_v6 = vshll.u32 %v11510_v39, %v2224_v12  ;;  %v2233_v62 = vshll.u32 %v11511_v4, %v2224_v12 }
 0x285   : > { %v2087_v40 = vsel %vm2004_vm0, %v2086_v30, %v2085_v3  ;;  %v2228_v10 = vshrl.u32 %v11510_v39, %v2225_v21  ;;  %v2231_v38 = vshrl.u32 %v11511_v4, %v2225_v21  ;;  %v2236_v34 = vshll.u32 %v11512_v46, %v2224_v12 }
 0x286   : > { %v2090_v1 = vsel %vm9717_vm1, %v9457_v13, %v2087_v40  ;;  %v2164_v18 = vadd.s32 1, %v9817_v45  ;;  %v2234_v43 = vshrl.u32 %v11512_v46, %v2225_v21  ;;  %v2237_v61 = vshrl.u32 %v11513_v41, %v2225_v21 }
 0x287   : > { %7720 = vcosq.f32 %v2090_v1  ;;  %v2229_v5 = vor.u32 %v2228_v10, %v2227_v36  ;;  %v2232_v37 = vor.u32 %v2231_v38, %v2230_v6  ;;  %vm2242_vm0 = vcmp.lt.s32.totalorder %v2223_v14, 1 }
 0x288   : > { %7722 = vsinq.f32 %v2090_v1  ;;  %v2165_v55 = vsel %vm2163_vm15, %v2164_v18, %v9817_v45  ;;  %v2235_v26 = vor.u32 %v2234_v43, %v2233_v62  ;;  %v2238_v44 = vor.u32 %v2237_v61, %v2236_v34 }
 0x289   : > { %v2166_v57 = vadd.s32 %v2165_v55, %v2161_v51  ;;  %v2239_v15 = vshll.u32 %v11513_v41, %v2224_v12  ;;  %v2240_v52 = vshrl.u32 %v11514_v24, %v2225_v21  ;;  %vm2245_vm1 = vcmp.lt.s32.totalorder %v2223_v14, 4 }
 0x28a   : > { %vm2243_vm2 = vcmp.lt.s32.totalorder %v2223_v14, 2  ;;  %vm2244_vm3 = vcmp.lt.s32.totalorder %v2223_v14, 3  ;;  %v2250_v54 = vsel %vm2242_vm0, %v2229_v5, %v2232_v37  ;;  %v2251_v25 = vsel %vm2245_vm1, %v2238_v44, 920167782 }
 0x28b   : > { %v2167_v8 = vadd.s32 536870912, %v2166_v57  ;;  %v2241_v49 = vor.u32 %v2240_v52, %v2239_v15  ;;  %v2247_v0 = vsel %vm2245_vm1, %v2235_v26, 2102212464  ;;  %v2252_v32 = vsel %vm2244_vm3, %v2235_v26, %v2251_v25  ;;  %v11553_v25 = vld [vmem:[#allocation5_spill] sm:$0xff] }
 0x28c   : > { %v2096_v50 = vand.u32 3, %v2095_v56  ;;  %v2226_v59 = vshrl.u32 %v11509_v31, %v2225_v21  ;;  %v2253_v7 = vsel %vm2243_vm2, %v2250_v54, %v2252_v32  ;;  %v2254_v63 = vsel %vm2242_vm0, %v2232_v37, %v2235_v26 }
 0x28d   : > { %v2168_v19 = vshrl.u32 %v2167_v8, 30  ;;  %v2255_v35 = vsel %vm2245_vm1, %v2241_v49, 1326507024  ;;  %v9849_v42 = vmul.u32.u64.low %v9781_v60, %v2253_v7  ;;  %v9850_v2 = vmul.u32.u64.high %v9781_v60, %v2253_v7, %v9849_v42 }
 0x28e   : > { %v2246_v16 = vsel %vm2242_vm0, %v2226_v59, %v2229_v5  ;;  %v2248_v29 = vsel %vm2244_vm3, %v2232_v37, %v2247_v0  ;;  %v2256_v33 = vsel %vm2244_vm3, %v2238_v44, %v2255_v35  ;;  %v2317_v3 = vand.u32 2139095040, %v9749_v20 }
 0x28f   : > { %vm2094_vm4 = vweird.f32 %v9457_v13  ;;  %v2169_v9 = vshll.u32 %v2168_v19, 30  ;;  %v2257_v12 = vsel %vm2243_vm2, %v2254_v63, %v2256_v33  ;;  %v397_v56 = vmul.f32 %v8030_v23, %v9711_v53 }
 0x290   : > { %vm5441_vm5 = vcmp.lt.s32.totalorder %v9812_v47, 2  ;;  %v9863_v45 = vmul.u32.u64.low %v9781_v60, %v2257_v12  ;;  %v9864_v30 = vmul.u32.u64.high %v9781_v60, %v2257_v12, %v9863_v45  ;;  %v2314_v51 = vand.u32 2147483647, %v9749_v20 }
 0x291   : > { %v7721_v21 = vpop.eup %7720  ;;  %vm5442_vm6 = vcmp.eq.s32.totalorder %v9812_v47, 0  ;;  %v2170_v36 = vsub.s32 %v2166_v57, %v2169_v9  ;;  %v2249_v6 = vsel %vm2243_vm2, %v2246_v16, %v2248_v29  ;;  %v2318_v62 = vshrl.u32 %v2317_v3, 23 }
 0x292   : > { %v7723_v40 = vpop.eup %7722  ;;  %vm2097_vm7 = vcmp.lt.s32.totalorder %v2096_v50, 2  ;;  %v2102_v10 = vxor.u32 2147483648, %v7721_v21  ;;  %vm5445_vm8 = vcmp.eq.s32.totalorder %v9812_v47, 2  ;;  %v2268_v53 = vadd.s32 1, %v9850_v2 }
 0x293   : > { %vm2098_vm9 = vcmp.eq.s32.totalorder %v2096_v50, 0  ;;  %v2099_v38 = vxor.u32 2147483648, %v7723_v40  ;;  %vm2101_vm10 = vcmp.eq.s32.totalorder %v2096_v50, 2  ;;  %v2172_v34 = vsub.s32 0, %v2170_v36 }
 0x294   : > { %v2103_v1 = vsel %vm2101_vm10, %v2102_v10, %v7723_v40  ;;  %v5447_v18 = vsel %vm5445_vm8, %v2102_v10, %v7723_v40  ;;  %v2265_v43 = vmul.u32 %v9781_v60, %v2249_v6  ;;  %vm2267_vm11 = vc.u32 %v9864_v30, %v9849_v42 }
 0x295   : > { %v2100_v14 = vsel %vm2098_vm9, %v7721_v21, %v2099_v38  ;;  %v5444_v61 = vsel %vm5442_vm6, %v7721_v21, %v2099_v38  ;;  %v7280_v5 = vmin.u32 %v2172_v34, %v2170_v36  ;;  %v7287_v37 = vadd.s32 4294967169, %v2318_v62 }
 0x296   : > { %v2104_v55 = vsel %vm2097_vm7, %v2100_v14, %v2103_v1  ;;  %v5448_v26 = vsel %vm5441_vm5, %v5444_v61, %v5447_v18  ;;  %v2192_v44 = vsub.s32 4, %v2168_v19  ;;  %v2269_v57 = vsel %vm2267_vm11, %v2268_v53, %v9850_v2 }
 0x297   : > { %v2105_v60 = vsel %vm2094_vm4, nan, %v2104_v55  ;;  %v5449_v15 = vsel %vm2094_vm4, nan, %v5448_v26  ;;  %v2174_v52 = vclz %v7280_v5  ;;  %v2270_v54 = vadd.s32 %v2269_v57, %v2265_v43 }
 0x298   : > { %3785 = vst [vmem:[%s8347_s4 + $0xe8] sm:$0xff] %v2105_v60  ;;  %7113 = vst [vmem:[%s8347_s4 + $0xf8] sm:$0xff] %v5449_v15  ;;  %v9887_v8 = vadd.f32 %v397_v56, %v11553_v25  ;;  %vm2108_vm12 = vcmp.lt.s32.totalorder %v9649_v11, 0  ;;  %v2324_v49 = vadd.s32 1, %v7287_v37  ;;  %v2321_v50 = vand.u32 8388607, %v2314_v51 }
 0x299   : > { %v7281_v47 = vadd.s32 4294967294, %v2174_v52  ;;  %v2193_v0 = vsel %vm2108_vm12, %v2192_v44, %v2168_v19  ;;  %v2271_v32 = vadd.s32 536870912, %v2270_v54  ;;  %vm9896_vm13 = vcmp.le.f32.partialorder %v2106_v28, 0.7853982 }
 0x29a   : > { %vm2325_vm15 = vcmp.gt.s32.totalorder %v2324_v49, 0  ;;  %v2421_v35 = vand.u32 2139095040, %v9887_v8  ;;  %v2162_v19 = vadd.s32 %v9816_v27, %v9803_v17  ;;  %v2195_v29 = vsel %vm9896_vm13, 0, %v2193_v0 }
 0x29b   : > { %vm7282_vm14 = vcmp.lt.s32.totalorder %v7281_v47, 0  ;;  %v2272_v7 = vshrl.u32 %v2271_v32, 30  ;;  %v2326_v63 = vsel %vm2325_vm15, %v2324_v49, 0  ;;  %v2322_v28 = vor.u32 8388608, %v2321_v50 }
 0x29c   : > { %v2177_v59 = vsel %vm7282_vm14, 0, %v7281_v47  ;;  %v2328_v3 = vand.u32 31, %v2326_v63  ;;  %v2199_v21 = vadd.s32 3, %v2195_v29  ;;  %v2422_v40 = vshrl.u32 %v2421_v35, 23 }
 0x29d   : > { %v2178_v2 = vsub.s32 32, %v2177_v59  ;;  %v2182_v16 = vsub.s32 4294967266, %v2177_v59  ;;  %v2273_v33 = vshll.u32 %v2272_v7, 30  ;;  %v2179_v9 = vshll.u32 %v2170_v36, %v2177_v59 }
 0x29e   : > { %v2296_v45 = vsub.s32 4, %v2272_v7  ;;  %v2329_v62 = vsub.s32 32, %v2328_v3  ;;  %vm9909_vm0 = vcmp.le.f32.partialorder %v2210_v48, 0.7853982  ;;  %vm2212_vm1 = vcmp.lt.s32.totalorder %v9691_v58, 0 }
 0x29f   : > { %v2180_v12 = vshrl.u32 %v2162_v19, %v2178_v2  ;;  %v2183_v56 = vadd.s32 127, %v2182_v16  ;;  %v9905_v6 = vsub.s32 %v2270_v54, %v2273_v33  ;;  %v9915_v36 = vand.u32 3, %v2195_v29 }
 0x2a0   : > { %v9917_v38 = vshrl.u32 %v2326_v63, 5  ;;  %v2418_v34 = vand.u32 2147483647, %v9887_v8  ;;  %v2266_v18 = vadd.s32 %v9849_v42, %v9864_v30  ;;  %v2297_v48 = vsel %vm2212_vm1, %v2296_v45, %v2272_v7 }
 0x2a1   : > { %v2181_v10 = vor.u32 %v2180_v12, %v2179_v9  ;;  %v2184_v53 = vshll.u32 %v2183_v56, 23  ;;  %v2276_v27 = vsub.s32 0, %v9905_v6  ;;  %v2332_v43 = vshrl.u32 %v11510_v39, %v2329_v62 }
 0x2a2   : > { %v9925_v14 = vand.u32 3, %v2199_v21  ;;  %v9928_v5 = vshll.u32 %v2322_v28, 8  ;;  %v7291_v37 = vadd.s32 4294967169, %v2422_v40  ;;  %v2331_v44 = vshll.u32 %v11509_v31, %v2328_v3 }
 0x2a3   : > { %v2185_v1 = vor.u32 4788187, %v2184_v53  ;;  %v7284_v61 = vmin.u32 %v2276_v27, %v9905_v6  ;;  %v2188_v26 = vcvt.s32.f32 %v2181_v10  ;;  %v2335_v57 = vshrl.u32 %v11511_v4, %v2329_v62 }
 0x2a4   : > { %v9934_v42 = vsel %vm9909_vm0, 0, %v2297_v48  ;;  %v2334_v30 = vshll.u32 %v11510_v39, %v2328_v3  ;;  %vm2346_vm2 = vcmp.lt.s32.totalorder %v9917_v38, 1  ;;  %v2333_v52 = vor.u32 %v2332_v43, %v2331_v44 }
 0x2a5   : > { %v2186_v55 = vand.u32 2147483647, %v2185_v1  ;;  %v2278_v60 = vclz %v7284_v61  ;;  %v2337_v54 = vshll.u32 %v11511_v4, %v2328_v3  ;;  %v2338_v25 = vshrl.u32 %v11512_v46, %v2329_v62 }
 0x2a6   : > { %vm2347_vm3 = vcmp.lt.s32.totalorder %v9917_v38, 2  ;;  %v2340_v49 = vshll.u32 %v11512_v46, %v2328_v3  ;;  %v2341_v0 = vshrl.u32 %v11513_v41, %v2329_v62  ;;  %v2344_v32 = vshrl.u32 %v11514_v24, %v2329_v62 }
 0x2a7   : > { %v2189_v15 = vmul.f32 %v2188_v26, %v2186_v55  ;;  %v7285_v47 = vadd.s32 4294967294, %v2278_v60  ;;  %v2336_v59 = vor.u32 %v2335_v57, %v2334_v30  ;;  %v2339_v7 = vor.u32 %v2338_v25, %v2337_v54 }
 0x2a8   : > { %v2343_v63 = vshll.u32 %v11513_v41, %v2328_v3  ;;  %v2330_v35 = vshrl.u32 %v11509_v31, %v2329_v62  ;;  %v2342_v19 = vor.u32 %v2341_v0, %v2340_v49  ;;  %vm2348_vm5 = vcmp.lt.s32.totalorder %v9917_v38, 3 }
 0x2a9   : > { %v2190_v50 = vxor.u32 2147483648, %v2189_v15  ;;  %vm7286_vm4 = vcmp.lt.s32.totalorder %v7285_v47, 0  ;;  %vm2349_vm6 = vcmp.lt.s32.totalorder %v9917_v38, 4  ;;  %v2354_v56 = vsel %vm2346_vm2, %v2333_v52, %v2336_v59 }
 0x2aa   : > { %v2281_v16 = vsel %vm7286_vm4, 0, %v7285_v47  ;;  %v2345_v29 = vor.u32 %v2344_v32, %v2343_v63  ;;  %v2351_v3 = vsel %vm2349_vm6, %v2339_v7, 2102212464  ;;  %v2355_v45 = vsel %vm2349_vm6, %v2342_v19, 920167782 }
 0x2ab   : > { %v2191_v2 = vsel %vm2108_vm12, %v2190_v50, %v2189_v15  ;;  %v2282_v28 = vsub.s32 32, %v2281_v16  ;;  %v2286_v9 = vsub.s32 4294967266, %v2281_v16  ;;  %v2283_v12 = vshll.u32 %v9905_v6, %v2281_v16 }
 0x2ac   : > { %v2194_v33 = vsel %vm9896_vm13, %v9649_v11, %v2191_v2  ;;  %v2358_v13 = vsel %vm2346_vm2, %v2336_v59, %v2339_v7  ;;  %v2350_v40 = vsel %vm2346_vm2, %v2330_v35, %v2333_v52  ;;  %v2352_v10 = vsel %vm2348_vm5, %v2336_v59, %v2351_v3 }
 0x2ad   : > { %7724 = vcosq.f32 %v2194_v33  ;;  %v2284_v21 = vshrl.u32 %v2266_v18, %v2282_v28  ;;  %v2287_v62 = vadd.s32 127, %v2286_v9  ;;  %v2356_v6 = vsel %vm2348_vm5, %v2339_v7, %v2355_v45 }
 0x2ae   : > { %7726 = vsinq.f32 %v2194_v33  ;;  %v2359_v53 = vsel %vm2349_vm6, %v2345_v29, 1326507024  ;;  %v2357_v18 = vsel %vm2347_vm3, %v2354_v56, %v2356_v6  ;;  %v2428_v26 = vadd.s32 1, %v7291_v37 }
 0x2af   : > { %v2285_v27 = vor.u32 %v2284_v21, %v2283_v12  ;;  %v2288_v1 = vshll.u32 %v2287_v62, 23  ;;  %v2360_v48 = vsel %vm2348_vm5, %v2342_v19, %v2359_v53  ;;  %vm2202_vm7 = vcmp.eq.s32.totalorder %v9925_v14, 0 }
 0x2b0   : > { %v2361_v43 = vsel %vm2347_vm3, %v2358_v13, %v2360_v48  ;;  %v9977_v61 = vmul.u32.u64.low %v9928_v5, %v2357_v18  ;;  %v9978_v55 = vmul.u32.u64.high %v9928_v5, %v2357_v18, %v9977_v61  ;;  %vm2201_vm8 = vcmp.lt.s32.totalorder %v9925_v14, 2 }
 0x2b1   : > { %v2289_v44 = vor.u32 4788187, %v2288_v1  ;;  %v9983_v57 = vmul.u32.u64.low %v9928_v5, %v2361_v43  ;;  %v9984_v60 = vmul.u32.u64.high %v9928_v5, %v2361_v43, %v9983_v57  ;;  %v2303_v30 = vadd.s32 3, %v9934_v42 }
 0x2b2   : > { %vm5544_vm9 = vcmp.lt.s32.totalorder %v9915_v36, 2  ;;  %v2353_v15 = vsel %vm2347_vm3, %v2350_v40, %v2352_v10  ;;  %v9993_v52 = vand.u32 8388607, %v2418_v34  ;;  %vm2429_vm10 = vcmp.gt.s32.totalorder %v2428_v26, 0 }
 0x2b3   : > { %vm2198_vm11 = vweird.f32 %v9649_v11  ;;  %vm2205_vm12 = vcmp.eq.s32.totalorder %v9925_v14, 2  ;;  %v2290_v37 = vand.u32 2147483647, %v2289_v44  ;;  %v2292_v54 = vcvt.s32.f32 %v2285_v27  ;;  %v345_v11 = vpop.permute.xlu1 %344 }
 0x2b4   : > { %v2430_v25 = vsel %vm2429_vm10, %v2428_v26, 0  ;;  %vm5545_vm13 = vcmp.eq.s32.totalorder %v9915_v36, 0  ;;  %vm5548_vm14 = vcmp.eq.s32.totalorder %v9915_v36, 2  ;;  %v2372_v47 = vadd.s32 1, %v9978_v55 }
 0x2b5   : > { %v2432_v38 = vand.u32 31, %v2430_v25  ;;  %v2293_v49 = vmul.f32 %v2292_v54, %v2290_v37  ;;  %v10001_v0 = vand.u32 3, %v9934_v42  ;;  %v2369_v32 = vmul.u32 %v9928_v5, %v2353_v15 }
 0x2b6   : > { %vm2371_vm15 = vc.u32 %v9984_v60, %v9977_v61  ;;  %v10006_v59 = vand.u32 3, %v2303_v30  ;;  %v2426_v63 = vor.u32 8388608, %v9993_v52  ;;  %v10010_v33 = vshrl.u32 %v2430_v25, 5 }
 0x2b7   : > { %v7725_v50 = vpop.eup %7724  ;;  %v2373_v7 = vsel %vm2371_vm15, %v2372_v47, %v9978_v55  ;;  %v2433_v35 = vsub.s32 32, %v2432_v38  ;;  %v2294_v16 = vxor.u32 2147483648, %v2293_v49  ;;  %v2435_v5 = vshll.u32 %v11509_v31, %v2432_v38 }
 0x2b8   : > { %v7727_v19 = vpop.eup %7726  ;;  %v2206_v2 = vxor.u32 2147483648, %v7725_v50  ;;  %v2374_v29 = vadd.s32 %v2373_v7, %v2369_v32  ;;  %v2438_v40 = vshll.u32 %v11510_v39, %v2432_v38  ;;  %v2441_v1 = vshll.u32 %v11511_v4, %v2432_v38 }
 0x2b9   : > { %v2203_v42 = vxor.u32 2147483648, %v7727_v19  ;;  %v2436_v28 = vshrl.u32 %v11510_v39, %v2433_v35  ;;  %v2439_v9 = vshrl.u32 %v11511_v4, %v2433_v35  ;;  %v2295_v12 = vsel %vm2212_vm1, %v2294_v16, %v2293_v49 }
 0x2ba   : > { %v2207_v3 = vsel %vm2205_vm12, %v2206_v2, %v7727_v19  ;;  %v5550_v56 = vsel %vm5548_vm14, %v2206_v2, %v7727_v19  ;;  %v2375_v45 = vadd.s32 536870912, %v2374_v29  ;;  %v2298_v62 = vsel %vm9909_vm0, %v9691_v58, %v2295_v12 }
 0x2bb   : > { %v2204_v21 = vsel %vm2202_vm7, %v7725_v50, %v2203_v42  ;;  %v5547_v13 = vsel %vm5545_vm13, %v7725_v50, %v2203_v42  ;;  %7728 = vcosq.f32 %v2298_v62  ;;  %v2437_v18 = vor.u32 %v2436_v28, %v2435_v5  ;;  %v11558_v28 = vld [vmem:[#allocation8_spill] sm:$0xff] }
 0x2bc   : > { %v2208_v10 = vsel %vm2201_vm8, %v2204_v21, %v2207_v3  ;;  %v5551_v6 = vsel %vm5544_vm9, %v5547_v13, %v5550_v56  ;;  %v10033_v53 = vshrl.u32 %v2375_v45, 30  ;;  %7730 = vsinq.f32 %v2298_v62 }
 0x2bd   : > { %v2209_v27 = vsel %vm2198_vm11, nan, %v2208_v10  ;;  %v5552_v17 = vsel %vm2198_vm11, nan, %v5551_v6  ;;  %v2440_v48 = vor.u32 %v2439_v9, %v2438_v40  ;;  %v2442_v36 = vshrl.u32 %v11512_v46, %v2433_v35 }
 0x2be   : > { %3786 = vst [vmem:[%s8347_s4 + $0x100] sm:$0xff] %v2209_v27  ;;  %7114 = vst [vmem:[%s8347_s4 + $0x110] sm:$0xff] %v5552_v17  ;;  %v2377_v14 = vshll.u32 %v10033_v53, 30  ;;  %v2444_v43 = vshll.u32 %v11512_v46, %v2432_v38  ;;  %v2445_v55 = vshrl.u32 %v11513_v41, %v2433_v35  ;;  %v2447_v26 = vshll.u32 %v11513_v41, %v2432_v38 }
 0x2bf   : > { %v2448_v44 = vshrl.u32 %v11514_v24, %v2433_v35  ;;  %vm5651_vm0 = vcmp.eq.s32.totalorder %v10001_v0, 2  ;;  %v2443_v30 = vor.u32 %v2442_v36, %v2441_v1  ;;  %vm2306_vm1 = vcmp.eq.s32.totalorder %v10006_v59, 0 }
 0x2c0   : > { %v10049_v57 = vsub.s32 %v2374_v29, %v2377_v14  ;;  %vm2309_vm2 = vcmp.eq.s32.totalorder %v10006_v59, 2  ;;  %vm5648_vm3 = vcmp.eq.s32.totalorder %v10001_v0, 0  ;;  %v2446_v15 = vor.u32 %v2445_v55, %v2444_v43 }
 0x2c1   : > { %v2449_v52 = vor.u32 %v2448_v44, %v2447_v26  ;;  %v2466_v37 = vshll.u32 %v2426_v63, 8  ;;  %vm2305_vm4 = vcmp.lt.s32.totalorder %v10006_v59, 2  ;;  %vm5647_vm5 = vcmp.lt.s32.totalorder %v10001_v0, 2 }
 0x2c2   : > { %v2380_v54 = vsub.s32 0, %v10049_v57  ;;  %vm2450_vm6 = vcmp.lt.s32.totalorder %v10010_v33, 1  ;;  %vm2453_vm7 = vcmp.lt.s32.totalorder %v10010_v33, 4  ;;  %v398_v25 = vmul.f32 %v8028_v22, %v345_v11 }
 0x2c3   : > { %vm2302_vm8 = vweird.f32 %v9691_v58  ;;  %vm2452_vm9 = vcmp.lt.s32.totalorder %v10010_v33, 3  ;;  %v2455_v47 = vsel %vm2453_vm7, %v2443_v30, 2102212464  ;;  %v2458_v38 = vsel %vm2450_vm6, %v2437_v18, %v2440_v48 }
 0x2c4   : > { %v2459_v49 = vsel %vm2453_vm7, %v2446_v15, 920167782  ;;  %v7288_v32 = vmin.u32 %v2380_v54, %v10049_v57  ;;  %v2434_v50 = vshrl.u32 %v11509_v31, %v2433_v35  ;;  %vm2451_vm10 = vcmp.lt.s32.totalorder %v10010_v33, 2 }
 0x2c5   : > { %v2460_v7 = vsel %vm2452_vm9, %v2443_v30, %v2459_v49  ;;  %v2462_v19 = vsel %vm2450_vm6, %v2440_v48, %v2443_v30  ;;  %v2463_v2 = vsel %vm2453_vm7, %v2449_v52, 1326507024  ;;  %v399_v16 = vmul.f32 %v8030_v23, %v345_v11  ;;  %v7729_v29 = vpop.eup %7728 }
 0x2c6   : > { %v2461_v63 = vsel %vm2451_vm10, %v2458_v38, %v2460_v7  ;;  %v2382_v42 = vclz %v7288_v32  ;;  %v2454_v5 = vsel %vm2450_vm6, %v2434_v50, %v2437_v18  ;;  %v2456_v35 = vsel %vm2452_vm9, %v2440_v48, %v2455_v47  ;;  %v7731_v3 = vpop.eup %7730 }
 0x2c7   : > { %v10079_v9 = vadd.f32 %v398_v25, %v11558_v28  ;;  %v2310_v12 = vxor.u32 2147483648, %v7729_v29  ;;  %v2464_v56 = vsel %vm2452_vm9, %v2446_v15, %v2463_v2  ;;  %v2307_v62 = vxor.u32 2147483648, %v7731_v3  ;;  %v11559_v15 = vld [vmem:[#allocation9_spill] sm:$0xff] }
 0x2c8   : > { %v10083_v45 = vmul.u32.u64.low %v2466_v37, %v2461_v63  ;;  %v10084_v21 = vmul.u32.u64.high %v2466_v37, %v2461_v63, %v10083_v45  ;;  %v2370_v13 = vadd.s32 %v9977_v61, %v9984_v60  ;;  %v7289_v40 = vadd.s32 4294967294, %v2382_v42 }
 0x2c9   : > { %v2465_v10 = vsel %vm2451_vm10, %v2462_v19, %v2464_v56  ;;  %v2311_v6 = vsel %vm2309_vm2, %v2310_v12, %v7731_v3  ;;  %v5653_v27 = vsel %vm5651_vm0, %v2310_v12, %v7731_v3  ;;  %v2308_v14 = vsel %vm2306_vm1, %v7729_v29, %v2307_v62 }
 0x2ca   : > { %v10095_v17 = vmul.u32.u64.low %v2466_v37, %v2465_v10  ;;  %v10096_v1 = vmul.u32.u64.high %v2466_v37, %v2465_v10, %v10095_v17  ;;  %v5650_v61 = vsel %vm5648_vm3, %v7729_v29, %v2307_v62  ;;  %vm7290_vm11 = vcmp.lt.s32.totalorder %v7289_v40, 0 }
 0x2cb   : > { %v2457_v60 = vsel %vm2451_vm10, %v2454_v5, %v2456_v35  ;;  %v2312_v18 = vsel %vm2305_vm4, %v2308_v14, %v2311_v6  ;;  %v5654_v48 = vsel %vm5647_vm5, %v5650_v61, %v5653_v27  ;;  %v2385_v36 = vsel %vm7290_vm11, 0, %v7289_v40 }
 0x2cc   : > { %v2476_v43 = vadd.s32 1, %v10084_v21  ;;  %v2313_v55 = vsel %vm2302_vm8, nan, %v2312_v18  ;;  %v5655_v26 = vsel %vm2302_vm8, nan, %v5654_v48  ;;  %v2386_v44 = vsub.s32 32, %v2385_v36 }
 0x2cd   : > { %v2400_v11 = vsub.s32 4, %v10033_v53  ;;  %3787 = vst [vmem:[%s8347_s4 + $0x108] sm:$0xff] %v2313_v55  ;;  %7115 = vst [vmem:[%s8347_s4 + $0x118] sm:$0xff] %v5655_v26  ;;  %v2390_v33 = vsub.s32 4294967266, %v2385_v36  ;;  %v2473_v59 = vmul.u32 %v2466_v37, %v2457_v60  ;;  %vm2475_vm12 = vc.u32 %v10096_v1, %v10083_v45 }
 0x2ce   : > { %vm2316_vm13 = vcmp.lt.s32.totalorder %v9749_v20, 0  ;;  %v2388_v0 = vshrl.u32 %v2370_v13, %v2386_v44  ;;  %v2477_v30 = vsel %vm2475_vm12, %v2476_v43, %v10084_v21  ;;  %v10121_v52 = vadd.f32 %v399_v16, %v11559_v15  ;;  %v10141_v21 = vpop.permute.xlu0 %348  ;;  %v11564_v15 = vld [vmem:[#allocation6_spill] sm:$0xff] }
 0x2cf   : > { %v2387_v58 = vshll.u32 %v10049_v57, %v2385_v36  ;;  %v2391_v54 = vadd.s32 127, %v2390_v33  ;;  %v2478_v25 = vadd.s32 %v2477_v30, %v2473_v59  ;;  %v2525_v47 = vand.u32 2139095040, %v10079_v9 }
 0x2d0   : > { %v2401_v37 = vsel %vm2316_vm13, %v2400_v11, %v10033_v53  ;;  %v2522_v38 = vand.u32 2147483647, %v10079_v9  ;;  %vm10131_vm14 = vcmp.le.f32.partialorder %v2314_v51, 0.7853982  ;;  %v2629_v57 = vand.u32 2139095040, %v10121_v52 }
 0x2d1   : > { %v2389_v49 = vor.u32 %v2388_v0, %v2387_v58  ;;  %v2392_v32 = vshll.u32 %v2391_v54, 23  ;;  %v2479_v50 = vadd.s32 536870912, %v2478_v25  ;;  %v2526_v7 = vshrl.u32 %v2525_v47, 23 }
 0x2d2   : > { %v2403_v2 = vsel %vm10131_vm14, 0, %v2401_v37  ;;  %v2529_v29 = vand.u32 8388607, %v2522_v38  ;;  %v2626_v42 = vand.u32 2147483647, %v10121_v52  ;;  %v2630_v5 = vshrl.u32 %v2629_v57, 23 }
 0x2d3   : > { %v2393_v19 = vor.u32 4788187, %v2392_v32  ;;  %v2480_v16 = vshrl.u32 %v2479_v50, 30  ;;  %v7295_v53 = vadd.s32 4294967169, %v2526_v7  ;;  %v2396_v28 = vcvt.s32.f32 %v2389_v49 }
 0x2d4   : > { %v2407_v12 = vadd.s32 3, %v2403_v2  ;;  %v7299_v40 = vadd.s32 4294967169, %v2630_v5  ;;  %vm10147_vm0 = vcmp.le.f32.partialorder %v2418_v34, 0.7853982  ;;  %v2530_v6 = vor.u32 8388608, %v2529_v29 }
 0x2d5   : > { %v2394_v35 = vand.u32 2147483647, %v2393_v19  ;;  %v2481_v51 = vshll.u32 %v2480_v16, 30  ;;  %v2532_v3 = vadd.s32 1, %v7295_v53  ;;  %v2504_v56 = vsub.s32 4, %v2480_v16 }
 0x2d6   : > { %v10154_v61 = vand.u32 8388607, %v2626_v42  ;;  %v400_v60 = vmul.f32 %v8028_v22, %v10141_v21  ;;  %v10158_v18 = vand.u32 3, %v2407_v12  ;;  %vm2420_vm1 = vcmp.lt.s32.totalorder %v9887_v8, 0 }
 0x2d7   : > { %v2397_v62 = vmul.f32 %v2396_v28, %v2394_v35  ;;  %v10143_v13 = vsub.s32 %v2478_v25, %v2481_v51  ;;  %vm2533_vm15 = vcmp.gt.s32.totalorder %v2532_v3, 0  ;;  %v10161_v34 = vand.u32 3, %v2403_v2 }
 0x2d8   : > { %v2534_v27 = vsel %vm2533_vm15, %v2532_v3, 0  ;;  %v2505_v55 = vsel %vm2420_vm1, %v2504_v56, %v2480_v16  ;;  %v10168_v26 = vadd.s32 1, %v7299_v40  ;;  %v2474_v11 = vadd.s32 %v10083_v45, %v10096_v1 }
 0x2d9   : > { %v2398_v17 = vxor.u32 2147483648, %v2397_v62  ;;  %v2484_v14 = vsub.s32 0, %v10143_v13  ;;  %v2536_v48 = vand.u32 31, %v2534_v27  ;;  %v10175_v59 = vshll.u32 %v2530_v6, 8 }
 0x2da   : > { %v2634_v30 = vor.u32 8388608, %v10154_v61  ;;  %v10179_v58 = vadd.f32 %v400_v60, %v11564_v15  ;;  %v10183_v54 = vsel %vm10147_vm0, 0, %v2505_v55  ;;  %v2535_v25 = vshrl.u32 %v2534_v27, 5 }
 0x2db   : > { %v2399_v36 = vsel %vm2316_vm13, %v2398_v17, %v2397_v62  ;;  %v7292_v43 = vmin.u32 %v2484_v14, %v10143_v13  ;;  %v2537_v33 = vsub.s32 32, %v2536_v48  ;;  %v2539_v47 = vshll.u32 %v11509_v31, %v2536_v48 }
 0x2dc   : > { %v2402_v44 = vsel %vm10131_vm14, %v9749_v20, %v2399_v36  ;;  %v2542_v1 = vshll.u32 %v11510_v39, %v2536_v48  ;;  %vm2637_vm2 = vcmp.gt.s32.totalorder %v10168_v26, 0  ;;  %v2545_v32 = vshll.u32 %v11511_v4, %v2536_v48 }
 0x2dd   : > { %7732 = vcosq.f32 %v2402_v44  ;;  %v2486_v0 = vclz %v7292_v43  ;;  %v2540_v45 = vshrl.u32 %v11510_v39, %v2537_v33  ;;  %v2543_v49 = vshrl.u32 %v11511_v4, %v2537_v33 }
 0x2de   : > { %7734 = vsinq.f32 %v2402_v44  ;;  %v2546_v50 = vshrl.u32 %v11512_v46, %v2537_v33  ;;  %v2548_v7 = vshll.u32 %v11512_v46, %v2536_v48  ;;  %v2549_v63 = vshrl.u32 %v11513_v41, %v2537_v33 }
 0x2df   : > { %v7293_v37 = vadd.s32 4294967294, %v2486_v0  ;;  %vm2413_vm3 = vcmp.eq.s32.totalorder %v10158_v18, 2  ;;  %vm5754_vm5 = vcmp.eq.s32.totalorder %v10161_v34, 2  ;;  %v2541_v57 = vor.u32 %v2540_v45, %v2539_v47 }
 0x2e0   : > { %v2544_v19 = vor.u32 %v2543_v49, %v2542_v1  ;;  %v2551_v2 = vshll.u32 %v11513_v41, %v2536_v48  ;;  %vm2410_vm6 = vcmp.eq.s32.totalorder %v10158_v18, 0  ;;  %vm5751_vm7 = vcmp.eq.s32.totalorder %v10161_v34, 0 }
 0x2e1   : > { %vm7294_vm4 = vcmp.lt.s32.totalorder %v7293_v37, 0  ;;  %v2547_v53 = vor.u32 %v2546_v50, %v2545_v32  ;;  %v2550_v29 = vor.u32 %v2549_v63, %v2548_v7  ;;  %v2552_v5 = vshrl.u32 %v11514_v24, %v2537_v33 }
 0x2e2   : > { %v2489_v16 = vsel %vm7294_vm4, 0, %v7293_v37  ;;  %vm2409_vm8 = vcmp.lt.s32.totalorder %v10158_v18, 2  ;;  %vm5750_vm9 = vcmp.lt.s32.totalorder %v10161_v34, 2  ;;  %v2538_v3 = vshrl.u32 %v11509_v31, %v2537_v33 }
 0x2e3   : > { %v2490_v35 = vsub.s32 32, %v2489_v16  ;;  %v2491_v28 = vshll.u32 %v10143_v13, %v2489_v16  ;;  %v2494_v51 = vsub.s32 4294967266, %v2489_v16  ;;  %vm2406_vm10 = vweird.f32 %v9749_v20 }
 0x2e4   : > { %v2553_v12 = vor.u32 %v2552_v5, %v2551_v2  ;;  %vm2554_vm11 = vcmp.lt.s32.totalorder %v2535_v25, 1  ;;  %vm2556_vm12 = vcmp.lt.s32.totalorder %v2535_v25, 3  ;;  %vm2557_vm13 = vcmp.lt.s32.totalorder %v2535_v25, 4 }
 0x2e5   : > { %v2492_v56 = vshrl.u32 %v2474_v11, %v2490_v35  ;;  %v2495_v62 = vadd.s32 127, %v2494_v51  ;;  %v2558_v40 = vsel %vm2554_vm11, %v2538_v3, %v2541_v57  ;;  %v2559_v6 = vsel %vm2557_vm13, %v2547_v53, 2102212464 }
 0x2e6   : > { %vm2555_vm14 = vcmp.lt.s32.totalorder %v2535_v25, 2  ;;  %v2560_v27 = vsel %vm2556_vm12, %v2544_v19, %v2559_v6  ;;  %v2562_v13 = vsel %vm2554_vm11, %v2541_v57, %v2544_v19  ;;  %v2563_v17 = vsel %vm2557_vm13, %v2550_v29, 920167782 }
 0x2e7   : > { %v7733_v14 = vpop.eup %7732  ;;  %v2493_v61 = vor.u32 %v2492_v56, %v2491_v28  ;;  %v2496_v60 = vshll.u32 %v2495_v62, 23  ;;  %v2564_v48 = vsel %vm2556_vm12, %v2547_v53, %v2563_v17  ;;  %v2566_v36 = vsel %vm2554_vm11, %v2544_v19, %v2547_v53 }
 0x2e8   : > { %v7735_v43 = vpop.eup %7734  ;;  %v2414_v55 = vxor.u32 2147483648, %v7733_v14  ;;  %v2561_v44 = vsel %vm2555_vm14, %v2558_v40, %v2560_v27  ;;  %v2567_v11 = vsel %vm2557_vm13, %v2553_v12, 1326507024  ;;  %v10211_v33 = vshll.u32 %v2634_v30, 8 }
 0x2e9   : > { %v2411_v0 = vxor.u32 2147483648, %v7735_v43  ;;  %v2497_v15 = vor.u32 4788187, %v2496_v60  ;;  %v2565_v47 = vsel %vm2555_vm14, %v2562_v13, %v2564_v48  ;;  %v2568_v37 = vsel %vm2556_vm12, %v2550_v29, %v2567_v11 }
 0x2ea   : > { %v2415_v45 = vsel %vm2413_vm3, %v2414_v55, %v7735_v43  ;;  %v5756_v1 = vsel %vm5754_vm5, %v2414_v55, %v7735_v43  ;;  %v2569_v49 = vsel %vm2555_vm14, %v2566_v36, %v2568_v37  ;;  %v2638_v30 = vsel %vm2637_vm2, %v10168_v26, 0 }
 0x2eb   : > { %v2412_v32 = vsel %vm2410_vm6, %v7733_v14, %v2411_v0  ;;  %v2498_v50 = vand.u32 2147483647, %v2497_v15  ;;  %v2500_v7 = vcvt.s32.f32 %v2493_v61  ;;  %v5753_v63 = vsel %vm5751_vm7, %v7733_v14, %v2411_v0 }
 0x2ec   : > { %v2416_v57 = vsel %vm2409_vm8, %v2412_v32, %v2415_v45  ;;  %v5757_v25 = vsel %vm5750_vm9, %v5753_v63, %v5756_v1  ;;  %v10232_v19 = vmul.u32.u64.low %v10175_v59, %v2569_v49  ;;  %v10233_v2 = vmul.u32.u64.high %v10175_v59, %v2569_v49, %v10232_v19 }
 0x2ed   : > { %v2417_v26 = vsel %vm2406_vm10, nan, %v2416_v57  ;;  %v2501_v16 = vmul.f32 %v2500_v7, %v2498_v50  ;;  %v5758_v53 = vsel %vm2406_vm10, nan, %v5757_v25  ;;  %v2640_v29 = vand.u32 31, %v2638_v30 }
 0x2ee   : > { %v2511_v5 = vadd.s32 3, %v10183_v54  ;;  %3788 = vst [vmem:[%s8347_s4 + $0x120] sm:$0xff] %v2417_v26  ;;  %v10242_v18 = vand.u32 3, %v10183_v54  ;;  %7116 = vst [vmem:[%s8347_s4 + $0x130] sm:$0xff] %v5758_v53  ;;  %v10246_v34 = vmul.u32.u64.low %v10175_v59, %v2565_v47  ;;  %v10247_v35 = vmul.u32.u64.high %v10175_v59, %v2565_v47, %v10246_v34 }
 0x2ef   : > { %v2502_v28 = vxor.u32 2147483648, %v2501_v16  ;;  %v2577_v51 = vmul.u32 %v10175_v59, %v2561_v44  ;;  %v2639_v3 = vshrl.u32 %v2638_v30, 5  ;;  %v2641_v12 = vsub.s32 32, %v2640_v29 }
 0x2f0   : > { %vm2579_vm15 = vc.u32 %v10233_v2, %v10246_v34  ;;  %v2643_v20 = vshll.u32 %v11509_v31, %v2640_v29  ;;  %v2646_v56 = vshll.u32 %v11510_v39, %v2640_v29  ;;  %v2649_v54 = vshll.u32 %v11511_v4, %v2640_v29 }
 0x2f1   : > { %v2503_v62 = vsel %vm2420_vm1, %v2502_v28, %v2501_v16  ;;  %v2644_v40 = vshrl.u32 %v11510_v39, %v2641_v12  ;;  %v2647_v6 = vshrl.u32 %v11511_v4, %v2641_v12  ;;  %v2652_v59 = vshll.u32 %v11512_v46, %v2640_v29 }
 0x2f2   : > { %v2506_v27 = vsel %vm10147_vm0, %v9887_v8, %v2503_v62  ;;  %v2580_v13 = vadd.s32 1, %v10247_v35  ;;  %v2650_v17 = vshrl.u32 %v11512_v46, %v2641_v12  ;;  %v2653_v14 = vshrl.u32 %v11513_v41, %v2641_v12 }
 0x2f3   : > { %7736 = vcosq.f32 %v2506_v27  ;;  %v2645_v61 = vor.u32 %v2644_v40, %v2643_v20  ;;  %v2648_v60 = vor.u32 %v2647_v6, %v2646_v56  ;;  %vm2658_vm1 = vcmp.lt.s32.totalorder %v2639_v3, 1 }
 0x2f4   : > { %7738 = vsinq.f32 %v2506_v27  ;;  %v2581_v48 = vsel %vm2579_vm15, %v2580_v13, %v10247_v35  ;;  %v2651_v36 = vor.u32 %v2650_v17, %v2649_v54  ;;  %v2654_v43 = vor.u32 %v2653_v14, %v2652_v59 }
 0x2f5   : > { %v2582_v10 = vadd.s32 %v2581_v48, %v2577_v51  ;;  %v2655_v55 = vshll.u32 %v11513_v41, %v2640_v29  ;;  %v2656_v44 = vshrl.u32 %v11514_v24, %v2641_v12  ;;  %vm2661_vm0 = vcmp.lt.s32.totalorder %v2639_v3, 4 }
 0x2f6   : > { %vm2659_vm2 = vcmp.lt.s32.totalorder %v2639_v3, 2  ;;  %vm2660_vm3 = vcmp.lt.s32.totalorder %v2639_v3, 3  ;;  %v2666_v11 = vsel %vm2658_vm1, %v2645_v61, %v2648_v60  ;;  %v2667_v0 = vsel %vm2661_vm0, %v2654_v43, 920167782 }
 0x2f7   : > { %v2583_v15 = vadd.s32 536870912, %v2582_v10  ;;  %v2657_v47 = vor.u32 %v2656_v44, %v2655_v55  ;;  %v2663_v37 = vsel %vm2661_vm0, %v2651_v36, 2102212464  ;;  %v2668_v45 = vsel %vm2660_vm3, %v2651_v36, %v2667_v0  ;;  %v11565_v0 = vld [vmem:[#allocation7_spill] sm:$0xff] }
 0x2f8   : > { %v2512_v1 = vand.u32 3, %v2511_v5  ;;  %v2642_v49 = vshrl.u32 %v11509_v31, %v2641_v12  ;;  %v2669_v30 = vsel %vm2659_vm2, %v2666_v11, %v2668_v45  ;;  %v2670_v32 = vsel %vm2658_vm1, %v2648_v60, %v2651_v36 }
 0x2f9   : > { %v2584_v50 = vshrl.u32 %v2583_v15, 30  ;;  %v2671_v7 = vsel %vm2661_vm0, %v2657_v47, 1326507024  ;;  %v10279_v63 = vmul.u32.u64.low %v10211_v33, %v2669_v30  ;;  %v10280_v57 = vmul.u32.u64.high %v10211_v33, %v2669_v30, %v10279_v63 }
 0x2fa   : > { %v2662_v25 = vsel %vm2658_vm1, %v2642_v49, %v2645_v61  ;;  %v2664_v19 = vsel %vm2660_vm3, %v2648_v60, %v2663_v37  ;;  %v2672_v26 = vsel %vm2660_vm3, %v2654_v43, %v2671_v7  ;;  %v2733_v16 = vand.u32 2139095040, %v10179_v58 }
 0x2fb   : > { %vm2510_vm4 = vweird.f32 %v9887_v8  ;;  %v2585_v53 = vshll.u32 %v2584_v50, 30  ;;  %v2673_v29 = vsel %vm2659_vm2, %v2670_v32, %v2672_v26  ;;  %v401_v5 = vmul.f32 %v8030_v23, %v10141_v21 }
 0x2fc   : > { %vm5853_vm5 = vcmp.lt.s32.totalorder %v10242_v18, 2  ;;  %v10293_v35 = vmul.u32.u64.low %v10211_v33, %v2673_v29  ;;  %v10294_v28 = vmul.u32.u64.high %v10211_v33, %v2673_v29, %v10293_v35  ;;  %v2730_v51 = vand.u32 2147483647, %v10179_v58 }
 0x2fd   : > { %v7737_v12 = vpop.eup %7736  ;;  %vm5854_vm6 = vcmp.eq.s32.totalorder %v10242_v18, 0  ;;  %v2586_v20 = vsub.s32 %v2582_v10, %v2585_v53  ;;  %v2665_v56 = vsel %vm2659_vm2, %v2662_v25, %v2664_v19  ;;  %v2734_v54 = vshrl.u32 %v2733_v16, 23 }
 0x2fe   : > { %v7739_v62 = vpop.eup %7738  ;;  %vm2513_vm7 = vcmp.lt.s32.totalorder %v2512_v1, 2  ;;  %v2518_v40 = vxor.u32 2147483648, %v7737_v12  ;;  %vm5857_vm8 = vcmp.eq.s32.totalorder %v10242_v18, 2  ;;  %v2684_v21 = vadd.s32 1, %v10280_v57 }
 0x2ff   : > { %vm2514_vm9 = vcmp.eq.s32.totalorder %v2512_v1, 0  ;;  %v2515_v6 = vxor.u32 2147483648, %v7739_v62  ;;  %vm2517_vm10 = vcmp.eq.s32.totalorder %v2512_v1, 2  ;;  %v2588_v59 = vsub.s32 0, %v2586_v20 }
 0x300   : > { %v2519_v27 = vsel %vm2517_vm10, %v2518_v40, %v7739_v62  ;;  %v5859_v13 = vsel %vm5857_vm8, %v2518_v40, %v7739_v62  ;;  %v2681_v17 = vmul.u32 %v10211_v33, %v2665_v56  ;;  %vm2683_vm11 = vc.u32 %v10294_v28, %v10279_v63 }
 0x301   : > { %v2516_v3 = vsel %vm2514_vm9, %v7737_v12, %v2515_v6  ;;  %v5856_v14 = vsel %vm5854_vm6, %v7737_v12, %v2515_v6  ;;  %v7296_v61 = vmin.u32 %v2588_v59, %v2586_v20  ;;  %v7303_v60 = vadd.s32 4294967169, %v2734_v54 }
 0x302   : > { %v2520_v48 = vsel %vm2513_vm7, %v2516_v3, %v2519_v27  ;;  %v5860_v36 = vsel %vm5853_vm5, %v5856_v14, %v5859_v13  ;;  %v2608_v43 = vsub.s32 4, %v2584_v50  ;;  %v2685_v10 = vsel %vm2683_vm11, %v2684_v21, %v10280_v57 }
 0x303   : > { %v2521_v33 = vsel %vm2510_vm4, nan, %v2520_v48  ;;  %v5861_v55 = vsel %vm2510_vm4, nan, %v5860_v36  ;;  %v2590_v44 = vclz %v7296_v61  ;;  %v2686_v11 = vadd.s32 %v2685_v10, %v2681_v17 }
 0x304   : > { %3789 = vst [vmem:[%s8347_s4 + $0x128] sm:$0xff] %v2521_v33  ;;  %7117 = vst [vmem:[%s8347_s4 + $0x138] sm:$0xff] %v5861_v55  ;;  %v10317_v15 = vadd.f32 %v401_v5, %v11565_v0  ;;  %vm2524_vm12 = vcmp.lt.s32.totalorder %v10079_v9, 0  ;;  %v2740_v47 = vadd.s32 1, %v7303_v60  ;;  %v2737_v1 = vand.u32 8388607, %v2730_v51 }
 0x305   : > { %v7297_v18 = vadd.s32 4294967294, %v2590_v44  ;;  %v2609_v37 = vsel %vm2524_vm12, %v2608_v43, %v2584_v50  ;;  %v2687_v45 = vadd.s32 536870912, %v2686_v11  ;;  %vm10326_vm13 = vcmp.le.f32.partialorder %v2522_v38, 0.7853982 }
 0x306   : > { %vm2741_vm15 = vcmp.gt.s32.totalorder %v2740_v47, 0  ;;  %v2837_v7 = vand.u32 2139095040, %v10317_v15  ;;  %v2578_v50 = vadd.s32 %v10246_v34, %v10233_v2  ;;  %v2611_v19 = vsel %vm10326_vm13, 0, %v2609_v37 }
 0x307   : > { %vm7298_vm14 = vcmp.lt.s32.totalorder %v7297_v18, 0  ;;  %v2688_v30 = vshrl.u32 %v2687_v45, 30  ;;  %v2742_v32 = vsel %vm2741_vm15, %v2740_v47, 0  ;;  %v2738_v38 = vor.u32 8388608, %v2737_v1 }
 0x308   : > { %v2593_v49 = vsel %vm7298_vm14, 0, %v7297_v18  ;;  %v2744_v16 = vand.u32 31, %v2742_v32  ;;  %v2615_v12 = vadd.s32 3, %v2611_v19  ;;  %v2838_v62 = vshrl.u32 %v2837_v7, 23 }
 0x309   : > { %v2594_v57 = vsub.s32 32, %v2593_v49  ;;  %v2598_v25 = vsub.s32 4294967266, %v2593_v49  ;;  %v2689_v26 = vshll.u32 %v2688_v30, 30  ;;  %v2595_v53 = vshll.u32 %v2586_v20, %v2593_v49 }
 0x30a   : > { %v2712_v35 = vsub.s32 4, %v2688_v30  ;;  %v2745_v54 = vsub.s32 32, %v2744_v16  ;;  %vm10339_vm1 = vcmp.le.f32.partialorder %v2626_v42, 0.7853982  ;;  %vm2628_vm0 = vcmp.lt.s32.totalorder %v10121_v52, 0 }
 0x30b   : > { %v2596_v29 = vshrl.u32 %v2578_v50, %v2594_v57  ;;  %v2599_v5 = vadd.s32 127, %v2598_v25  ;;  %v10335_v56 = vsub.s32 %v2686_v11, %v2689_v26  ;;  %v10345_v20 = vand.u32 3, %v2611_v19 }
 0x30c   : > { %v10347_v6 = vshrl.u32 %v2742_v32, 5  ;;  %v2834_v59 = vand.u32 2147483647, %v10317_v15  ;;  %v2682_v13 = vadd.s32 %v10279_v63, %v10294_v28  ;;  %v2713_v42 = vsel %vm2628_vm0, %v2712_v35, %v2688_v30 }
 0x30d   : > { %v2597_v40 = vor.u32 %v2596_v29, %v2595_v53  ;;  %v2600_v21 = vshll.u32 %v2599_v5, 23  ;;  %v2692_v34 = vsub.s32 0, %v10335_v56  ;;  %v2748_v17 = vshrl.u32 %v11510_v39, %v2745_v54 }
 0x30e   : > { %v10355_v3 = vand.u32 3, %v2615_v12  ;;  %v10358_v61 = vshll.u32 %v2738_v38, 8  ;;  %v7307_v60 = vadd.s32 4294967169, %v2838_v62  ;;  %v2747_v43 = vshll.u32 %v11509_v31, %v2744_v16 }
 0x30f   : > { %v2601_v27 = vor.u32 4788187, %v2600_v21  ;;  %v7300_v14 = vmin.u32 %v2692_v34, %v10335_v56  ;;  %v2604_v36 = vcvt.s32.f32 %v2597_v40  ;;  %v2751_v10 = vshrl.u32 %v11511_v4, %v2745_v54 }
 0x310   : > { %v10364_v63 = vsel %vm10339_vm1, 0, %v2713_v42  ;;  %v2750_v28 = vshll.u32 %v11510_v39, %v2744_v16  ;;  %vm2762_vm2 = vcmp.lt.s32.totalorder %v10347_v6, 1  ;;  %v2749_v44 = vor.u32 %v2748_v17, %v2747_v43 }
 0x311   : > { %v2602_v48 = vand.u32 2147483647, %v2601_v27  ;;  %v2694_v33 = vclz %v7300_v14  ;;  %v2753_v11 = vshll.u32 %v11511_v4, %v2744_v16  ;;  %v2754_v0 = vshrl.u32 %v11512_v46, %v2745_v54 }
 0x312   : > { %vm2763_vm3 = vcmp.lt.s32.totalorder %v10347_v6, 2  ;;  %v2756_v47 = vshll.u32 %v11512_v46, %v2744_v16  ;;  %v2757_v37 = vshrl.u32 %v11513_v41, %v2745_v54  ;;  %v2760_v45 = vshrl.u32 %v11514_v24, %v2745_v54 }
 0x313   : > { %v2605_v55 = vmul.f32 %v2604_v36, %v2602_v48  ;;  %v7301_v18 = vadd.s32 4294967294, %v2694_v33  ;;  %v2752_v49 = vor.u32 %v2751_v10, %v2750_v28  ;;  %v2755_v30 = vor.u32 %v2754_v0, %v2753_v11 }
 0x314   : > { %v2759_v32 = vshll.u32 %v11513_v41, %v2744_v16  ;;  %v2746_v7 = vshrl.u32 %v11509_v31, %v2745_v54  ;;  %v2758_v50 = vor.u32 %v2757_v37, %v2756_v47  ;;  %vm2764_vm5 = vcmp.lt.s32.totalorder %v10347_v6, 3 }
 0x315   : > { %v2606_v1 = vxor.u32 2147483648, %v2605_v55  ;;  %vm7302_vm4 = vcmp.lt.s32.totalorder %v7301_v18, 0  ;;  %vm2765_vm6 = vcmp.lt.s32.totalorder %v10347_v6, 4  ;;  %v2770_v5 = vsel %vm2762_vm2, %v2749_v44, %v2752_v49 }
 0x316   : > { %v2697_v25 = vsel %vm7302_vm4, 0, %v7301_v18  ;;  %v2761_v19 = vor.u32 %v2760_v45, %v2759_v32  ;;  %v2767_v16 = vsel %vm2765_vm6, %v2755_v30, 2102212464  ;;  %v2771_v35 = vsel %vm2765_vm6, %v2758_v50, 920167782 }
 0x317   : > { %v2607_v57 = vsel %vm2524_vm12, %v2606_v1, %v2605_v55  ;;  %v2698_v38 = vsub.s32 32, %v2697_v25  ;;  %v2702_v53 = vsub.s32 4294967266, %v2697_v25  ;;  %v2699_v29 = vshll.u32 %v10335_v56, %v2697_v25 }
 0x318   : > { %v2610_v26 = vsel %vm10326_vm13, %v10079_v9, %v2607_v57  ;;  %v2774_v8 = vsel %vm2762_vm2, %v2752_v49, %v2755_v30  ;;  %v2766_v62 = vsel %vm2762_vm2, %v2746_v7, %v2749_v44  ;;  %v2768_v40 = vsel %vm2764_vm5, %v2752_v49, %v2767_v16 }
 0x319   : > { %7740 = vcosq.f32 %v2610_v26  ;;  %v2700_v12 = vshrl.u32 %v2682_v13, %v2698_v38  ;;  %v2703_v54 = vadd.s32 127, %v2702_v53  ;;  %v2772_v56 = vsel %vm2764_vm5, %v2755_v30, %v2771_v35 }
 0x31a   : > { %7742 = vsinq.f32 %v2610_v26  ;;  %v2775_v21 = vsel %vm2765_vm6, %v2761_v19, 1326507024  ;;  %v2773_v13 = vsel %vm2763_vm3, %v2770_v5, %v2772_v56  ;;  %v2844_v36 = vadd.s32 1, %v7307_v60 }
 0x31b   : > { %v2701_v34 = vor.u32 %v2700_v12, %v2699_v29  ;;  %v2704_v27 = vshll.u32 %v2703_v54, 23  ;;  %v2776_v42 = vsel %vm2764_vm5, %v2758_v50, %v2775_v21  ;;  %vm2618_vm7 = vcmp.eq.s32.totalorder %v10355_v3, 0 }
 0x31c   : > { %v2777_v17 = vsel %vm2763_vm3, %v2774_v8, %v2776_v42  ;;  %v10407_v14 = vmul.u32.u64.low %v10358_v61, %v2773_v13  ;;  %v10408_v48 = vmul.u32.u64.high %v10358_v61, %v2773_v13, %v10407_v14  ;;  %vm2617_vm8 = vcmp.lt.s32.totalorder %v10355_v3, 2 }
 0x31d   : > { %v2705_v43 = vor.u32 4788187, %v2704_v27  ;;  %v10413_v10 = vmul.u32.u64.low %v10358_v61, %v2777_v17  ;;  %v10414_v33 = vmul.u32.u64.high %v10358_v61, %v2777_v17, %v10413_v10  ;;  %v2719_v28 = vadd.s32 3, %v10364_v63 }
 0x31e   : > { %vm5956_vm9 = vcmp.lt.s32.totalorder %v10345_v20, 2  ;;  %v2769_v55 = vsel %vm2763_vm3, %v2766_v62, %v2768_v40  ;;  %v10423_v44 = vand.u32 8388607, %v2834_v59  ;;  %vm2845_vm10 = vcmp.gt.s32.totalorder %v2844_v36, 0 }
 0x31f   : > { %vm2614_vm11 = vweird.f32 %v10079_v9  ;;  %vm2621_vm12 = vcmp.eq.s32.totalorder %v10355_v3, 2  ;;  %v2706_v60 = vand.u32 2147483647, %v2705_v43  ;;  %v2708_v11 = vcvt.s32.f32 %v2701_v34  ;;  %v353_v9 = vpop.permute.xlu1 %352 }
 0x320   : > { %v2846_v0 = vsel %vm2845_vm10, %v2844_v36, 0  ;;  %vm5957_vm13 = vcmp.eq.s32.totalorder %v10345_v20, 0  ;;  %vm5960_vm14 = vcmp.eq.s32.totalorder %v10345_v20, 2  ;;  %v2788_v18 = vadd.s32 1, %v10408_v48 }
 0x321   : > { %v2848_v6 = vand.u32 31, %v2846_v0  ;;  %v2709_v47 = vmul.f32 %v2708_v11, %v2706_v60  ;;  %v10431_v37 = vand.u32 3, %v10364_v63  ;;  %v2785_v45 = vmul.u32 %v10358_v61, %v2769_v55 }
 0x322   : > { %vm2787_vm15 = vc.u32 %v10414_v33, %v10407_v14  ;;  %v10436_v49 = vand.u32 3, %v2719_v28  ;;  %v2842_v32 = vor.u32 8388608, %v10423_v44  ;;  %v10440_v26 = vshrl.u32 %v2846_v0, 5 }
 0x323   : > { %v7741_v1 = vpop.eup %7740  ;;  %v2789_v30 = vsel %vm2787_vm15, %v2788_v18, %v10408_v48  ;;  %v2849_v7 = vsub.s32 32, %v2848_v6  ;;  %v2710_v25 = vxor.u32 2147483648, %v2709_v47  ;;  %v2851_v61 = vshll.u32 %v11509_v31, %v2848_v6 }
 0x324   : > { %v7743_v50 = vpop.eup %7742  ;;  %v2622_v57 = vxor.u32 2147483648, %v7741_v1  ;;  %v2790_v19 = vadd.s32 %v2789_v30, %v2785_v45  ;;  %v2854_v62 = vshll.u32 %v11510_v39, %v2848_v6  ;;  %v2857_v27 = vshll.u32 %v11511_v4, %v2848_v6 }
 0x325   : > { %v2619_v63 = vxor.u32 2147483648, %v7743_v50  ;;  %v2852_v38 = vshrl.u32 %v11510_v39, %v2849_v7  ;;  %v2855_v53 = vshrl.u32 %v11511_v4, %v2849_v7  ;;  %v2711_v29 = vsel %vm2628_vm0, %v2710_v25, %v2709_v47 }
 0x326   : > { %v2623_v16 = vsel %vm2621_vm12, %v2622_v57, %v7743_v50  ;;  %v5962_v5 = vsel %vm5960_vm14, %v2622_v57, %v7743_v50  ;;  %v2791_v35 = vadd.s32 536870912, %v2790_v19  ;;  %v2714_v54 = vsel %vm10339_vm1, %v10121_v52, %v2711_v29 }
 0x327   : > { %v2620_v12 = vsel %vm2618_vm7, %v7741_v1, %v2619_v63  ;;  %v5959_v8 = vsel %vm5957_vm13, %v7741_v1, %v2619_v63  ;;  %7744 = vcosq.f32 %v2714_v54  ;;  %v2853_v13 = vor.u32 %v2852_v38, %v2851_v61  ;;  %v11570_v38 = vld [vmem:[#allocation12_spill] sm:$0xff] }
 0x328   : > { %v2624_v40 = vsel %vm2617_vm8, %v2620_v12, %v2623_v16  ;;  %v5963_v56 = vsel %vm5956_vm9, %v5959_v8, %v5962_v5  ;;  %v10463_v21 = vshrl.u32 %v2791_v35, 30  ;;  %7746 = vsinq.f32 %v2714_v54 }
 0x329   : > { %v2625_v34 = vsel %vm2614_vm11, nan, %v2624_v40  ;;  %v5964_v2 = vsel %vm2614_vm11, nan, %v5963_v56  ;;  %v2856_v42 = vor.u32 %v2855_v53, %v2854_v62  ;;  %v2858_v20 = vshrl.u32 %v11512_v46, %v2849_v7 }
 0x32a   : > { %3790 = vst [vmem:[%s8347_s4 + $0x140] sm:$0xff] %v2625_v34  ;;  %7118 = vst [vmem:[%s8347_s4 + $0x150] sm:$0xff] %v5964_v2  ;;  %v2793_v3 = vshll.u32 %v10463_v21, 30  ;;  %v2860_v17 = vshll.u32 %v11512_v46, %v2848_v6  ;;  %v2861_v48 = vshrl.u32 %v11513_v41, %v2849_v7  ;;  %v2863_v36 = vshll.u32 %v11513_v41, %v2848_v6 }
 0x32b   : > { %v2864_v43 = vshrl.u32 %v11514_v24, %v2849_v7  ;;  %vm6063_vm1 = vcmp.eq.s32.totalorder %v10431_v37, 2  ;;  %v2859_v28 = vor.u32 %v2858_v20, %v2857_v27  ;;  %vm2722_vm0 = vcmp.eq.s32.totalorder %v10436_v49, 0 }
 0x32c   : > { %v10479_v10 = vsub.s32 %v2790_v19, %v2793_v3  ;;  %vm2725_vm2 = vcmp.eq.s32.totalorder %v10436_v49, 2  ;;  %vm6060_vm3 = vcmp.eq.s32.totalorder %v10431_v37, 0  ;;  %v2862_v55 = vor.u32 %v2861_v48, %v2860_v17 }
 0x32d   : > { %v2865_v44 = vor.u32 %v2864_v43, %v2863_v36  ;;  %v2882_v60 = vshll.u32 %v2842_v32, 8  ;;  %vm2721_vm4 = vcmp.lt.s32.totalorder %v10436_v49, 2  ;;  %vm6059_vm5 = vcmp.lt.s32.totalorder %v10431_v37, 2 }
 0x32e   : > { %v2796_v11 = vsub.s32 0, %v10479_v10  ;;  %vm2866_vm6 = vcmp.lt.s32.totalorder %v10440_v26, 1  ;;  %vm2869_vm7 = vcmp.lt.s32.totalorder %v10440_v26, 4  ;;  %v402_v0 = vmul.f32 %v8028_v22, %v353_v9 }
 0x32f   : > { %vm2718_vm8 = vweird.f32 %v10121_v52  ;;  %vm2868_vm9 = vcmp.lt.s32.totalorder %v10440_v26, 3  ;;  %v2871_v18 = vsel %vm2869_vm7, %v2859_v28, 2102212464  ;;  %v2874_v6 = vsel %vm2866_vm6, %v2853_v13, %v2856_v42 }
 0x330   : > { %v2875_v47 = vsel %vm2869_vm7, %v2862_v55, 920167782  ;;  %v7304_v45 = vmin.u32 %v2796_v11, %v10479_v10  ;;  %v2850_v1 = vshrl.u32 %v11509_v31, %v2849_v7  ;;  %vm2867_vm10 = vcmp.lt.s32.totalorder %v10440_v26, 2 }
 0x331   : > { %v2876_v30 = vsel %vm2868_vm9, %v2859_v28, %v2875_v47  ;;  %v2878_v50 = vsel %vm2866_vm6, %v2856_v42, %v2859_v28  ;;  %v2879_v57 = vsel %vm2869_vm7, %v2865_v44, 1326507024  ;;  %v403_v25 = vmul.f32 %v8030_v23, %v353_v9  ;;  %v7745_v19 = vpop.eup %7744 }
 0x332   : > { %v2877_v32 = vsel %vm2867_vm10, %v2874_v6, %v2876_v30  ;;  %v2798_v63 = vclz %v7304_v45  ;;  %v2870_v61 = vsel %vm2866_vm6, %v2850_v1, %v2853_v13  ;;  %v2872_v7 = vsel %vm2868_vm9, %v2856_v42, %v2871_v18  ;;  %v7747_v16 = vpop.eup %7746 }
 0x333   : > { %v10509_v53 = vadd.f32 %v402_v0, %v11570_v38  ;;  %v2726_v29 = vxor.u32 2147483648, %v7745_v19  ;;  %v2880_v5 = vsel %vm2868_vm9, %v2862_v55, %v2879_v57  ;;  %v2723_v54 = vxor.u32 2147483648, %v7747_v16  ;;  %v11571_v55 = vld [vmem:[#allocation13_spill] sm:$0xff] }
 0x334   : > { %v10513_v35 = vmul.u32.u64.low %v2882_v60, %v2877_v32  ;;  %v10514_v12 = vmul.u32.u64.high %v2882_v60, %v2877_v32, %v10513_v35  ;;  %v2786_v8 = vadd.s32 %v10407_v14, %v10414_v33  ;;  %v7305_v62 = vadd.s32 4294967294, %v2798_v63 }
 0x335   : > { %v2881_v40 = vsel %vm2867_vm10, %v2878_v50, %v2880_v5  ;;  %v2727_v56 = vsel %vm2725_vm2, %v2726_v29, %v7747_v16  ;;  %v6065_v34 = vsel %vm6063_vm1, %v2726_v29, %v7747_v16  ;;  %v2724_v3 = vsel %vm2722_vm0, %v7745_v19, %v2723_v54 }
 0x336   : > { %v10525_v2 = vmul.u32.u64.low %v2882_v60, %v2881_v40  ;;  %v10526_v27 = vmul.u32.u64.high %v2882_v60, %v2881_v40, %v10525_v2  ;;  %v6062_v14 = vsel %vm6060_vm3, %v7745_v19, %v2723_v54  ;;  %vm7306_vm11 = vcmp.lt.s32.totalorder %v7305_v62, 0 }
 0x337   : > { %v2873_v33 = vsel %vm2867_vm10, %v2870_v61, %v2872_v7  ;;  %v2728_v13 = vsel %vm2721_vm4, %v2724_v3, %v2727_v56  ;;  %v6066_v42 = vsel %vm6059_vm5, %v6062_v14, %v6065_v34  ;;  %v2801_v20 = vsel %vm7306_vm11, 0, %v7305_v62 }
 0x338   : > { %v2892_v17 = vadd.s32 1, %v10514_v12  ;;  %v2729_v48 = vsel %vm2718_vm8, nan, %v2728_v13  ;;  %v6067_v36 = vsel %vm2718_vm8, nan, %v6066_v42  ;;  %v2802_v43 = vsub.s32 32, %v2801_v20 }
 0x339   : > { %v2816_v9 = vsub.s32 4, %v10463_v21  ;;  %3791 = vst [vmem:[%s8347_s4 + $0x148] sm:$0xff] %v2729_v48  ;;  %7119 = vst [vmem:[%s8347_s4 + $0x158] sm:$0xff] %v6067_v36  ;;  %v2806_v26 = vsub.s32 4294967266, %v2801_v20  ;;  %v2889_v49 = vmul.u32 %v2882_v60, %v2873_v33  ;;  %vm2891_vm12 = vc.u32 %v10526_v27, %v10513_v35 }
 0x33a   : > { %vm2732_vm13 = vcmp.lt.s32.totalorder %v10179_v58, 0  ;;  %v2804_v37 = vshrl.u32 %v2786_v8, %v2802_v43  ;;  %v2893_v28 = vsel %vm2891_vm12, %v2892_v17, %v10514_v12  ;;  %v10551_v44 = vadd.f32 %v403_v25, %v11571_v55  ;;  %v10571_v12 = vpop.permute.xlu0 %356  ;;  %v11576_v55 = vld [vmem:[#allocation10_spill] sm:$0xff] }
 0x33b   : > { %v2803_v52 = vshll.u32 %v10479_v10, %v2801_v20  ;;  %v2807_v11 = vadd.s32 127, %v2806_v26  ;;  %v2894_v0 = vadd.s32 %v2893_v28, %v2889_v49  ;;  %v2941_v18 = vand.u32 2139095040, %v10509_v53 }
 0x33c   : > { %v2817_v60 = vsel %vm2732_vm13, %v2816_v9, %v10463_v21  ;;  %v2938_v6 = vand.u32 2147483647, %v10509_v53  ;;  %vm10561_vm14 = vcmp.le.f32.partialorder %v2730_v51, 0.7853982  ;;  %v3045_v10 = vand.u32 2139095040, %v10551_v44 }
 0x33d   : > { %v2805_v47 = vor.u32 %v2804_v37, %v2803_v52  ;;  %v2808_v45 = vshll.u32 %v2807_v11, 23  ;;  %v2895_v1 = vadd.s32 536870912, %v2894_v0  ;;  %v2942_v30 = vshrl.u32 %v2941_v18, 23 }
 0x33e   : > { %v2819_v57 = vsel %vm10561_vm14, 0, %v2817_v60  ;;  %v2945_v19 = vand.u32 8388607, %v2938_v6  ;;  %v3042_v63 = vand.u32 2147483647, %v10551_v44  ;;  %v3046_v61 = vshrl.u32 %v3045_v10, 23 }
 0x33f   : > { %v2809_v50 = vor.u32 4788187, %v2808_v45  ;;  %v2896_v25 = vshrl.u32 %v2895_v1, 30  ;;  %v7311_v21 = vadd.s32 4294967169, %v2942_v30  ;;  %v2812_v38 = vcvt.s32.f32 %v2805_v47 }
 0x340   : > { %v2823_v29 = vadd.s32 3, %v2819_v57  ;;  %v7315_v62 = vadd.s32 4294967169, %v3046_v61  ;;  %vm10577_vm1 = vcmp.le.f32.partialorder %v2834_v59, 0.7853982  ;;  %v2946_v56 = vor.u32 8388608, %v2945_v19 }
 0x341   : > { %v2810_v7 = vand.u32 2147483647, %v2809_v50  ;;  %v2897_v51 = vshll.u32 %v2896_v25, 30  ;;  %v2948_v16 = vadd.s32 1, %v7311_v21  ;;  %v2920_v5 = vsub.s32 4, %v2896_v25 }
 0x342   : > { %v10584_v14 = vand.u32 8388607, %v3042_v63  ;;  %v404_v33 = vmul.f32 %v8028_v22, %v10571_v12  ;;  %v10588_v13 = vand.u32 3, %v2823_v29  ;;  %vm2836_vm0 = vcmp.lt.s32.totalorder %v10317_v15, 0 }
 0x343   : > { %v2813_v54 = vmul.f32 %v2812_v38, %v2810_v7  ;;  %v10573_v8 = vsub.s32 %v2894_v0, %v2897_v51  ;;  %vm2949_vm15 = vcmp.gt.s32.totalorder %v2948_v16, 0  ;;  %v10591_v59 = vand.u32 3, %v2819_v57 }
 0x344   : > { %v2950_v34 = vsel %vm2949_vm15, %v2948_v16, 0  ;;  %v2921_v48 = vsel %vm2836_vm0, %v2920_v5, %v2896_v25  ;;  %v10598_v36 = vadd.s32 1, %v7315_v62  ;;  %v2890_v9 = vadd.s32 %v10513_v35, %v10526_v27 }
 0x345   : > { %v2814_v2 = vxor.u32 2147483648, %v2813_v54  ;;  %v2900_v3 = vsub.s32 0, %v10573_v8  ;;  %v2952_v42 = vand.u32 31, %v2950_v34  ;;  %v10605_v49 = vshll.u32 %v2946_v56, 8 }
 0x346   : > { %v3050_v28 = vor.u32 8388608, %v10584_v14  ;;  %v10609_v52 = vadd.f32 %v404_v33, %v11576_v55  ;;  %v10613_v11 = vsel %vm10577_vm1, 0, %v2921_v48  ;;  %v2951_v0 = vshrl.u32 %v2950_v34, 5 }
 0x347   : > { %v2815_v20 = vsel %vm2732_vm13, %v2814_v2, %v2813_v54  ;;  %v7308_v17 = vmin.u32 %v2900_v3, %v10573_v8  ;;  %v2953_v26 = vsub.s32 32, %v2952_v42  ;;  %v2955_v18 = vshll.u32 %v11509_v31, %v2952_v42 }
 0x348   : > { %v2818_v43 = vsel %vm10561_vm14, %v10179_v58, %v2815_v20  ;;  %v2958_v27 = vshll.u32 %v11510_v39, %v2952_v42  ;;  %vm3053_vm2 = vcmp.gt.s32.totalorder %v10598_v36, 0  ;;  %v2961_v45 = vshll.u32 %v11511_v4, %v2952_v42 }
 0x349   : > { %7748 = vcosq.f32 %v2818_v43  ;;  %v2902_v37 = vclz %v7308_v17  ;;  %v2956_v35 = vshrl.u32 %v11510_v39, %v2953_v26  ;;  %v2959_v47 = vshrl.u32 %v11511_v4, %v2953_v26 }
 0x34a   : > { %7750 = vsinq.f32 %v2818_v43  ;;  %v2962_v1 = vshrl.u32 %v11512_v46, %v2953_v26  ;;  %v2964_v30 = vshll.u32 %v11512_v46, %v2952_v42  ;;  %v2965_v32 = vshrl.u32 %v11513_v41, %v2953_v26 }
 0x34b   : > { %v7309_v60 = vadd.s32 4294967294, %v2902_v37  ;;  %vm2829_vm3 = vcmp.eq.s32.totalorder %v10588_v13, 2  ;;  %vm6166_vm5 = vcmp.eq.s32.totalorder %v10591_v59, 2  ;;  %v2957_v10 = vor.u32 %v2956_v35, %v2955_v18 }
 0x34c   : > { %v2960_v50 = vor.u32 %v2959_v47, %v2958_v27  ;;  %v2967_v57 = vshll.u32 %v11513_v41, %v2952_v42  ;;  %vm2826_vm6 = vcmp.eq.s32.totalorder %v10588_v13, 0  ;;  %vm6163_vm7 = vcmp.eq.s32.totalorder %v10591_v59, 0 }
 0x34d   : > { %vm7310_vm4 = vcmp.lt.s32.totalorder %v7309_v60, 0  ;;  %v2963_v21 = vor.u32 %v2962_v1, %v2961_v45  ;;  %v2966_v19 = vor.u32 %v2965_v32, %v2964_v30  ;;  %v2968_v61 = vshrl.u32 %v11514_v24, %v2953_v26 }
 0x34e   : > { %v2905_v25 = vsel %vm7310_vm4, 0, %v7309_v60  ;;  %vm2825_vm8 = vcmp.lt.s32.totalorder %v10588_v13, 2  ;;  %vm6162_vm9 = vcmp.lt.s32.totalorder %v10591_v59, 2  ;;  %v2954_v16 = vshrl.u32 %v11509_v31, %v2953_v26 }
 0x34f   : > { %v2906_v7 = vsub.s32 32, %v2905_v25  ;;  %v2907_v38 = vshll.u32 %v10573_v8, %v2905_v25  ;;  %v2910_v51 = vsub.s32 4294967266, %v2905_v25  ;;  %vm2822_vm10 = vweird.f32 %v10179_v58 }
 0x350   : > { %v2969_v29 = vor.u32 %v2968_v61, %v2967_v57  ;;  %vm2970_vm11 = vcmp.lt.s32.totalorder %v2951_v0, 1  ;;  %vm2972_vm12 = vcmp.lt.s32.totalorder %v2951_v0, 3  ;;  %vm2973_vm13 = vcmp.lt.s32.totalorder %v2951_v0, 4 }
 0x351   : > { %v2908_v5 = vshrl.u32 %v2890_v9, %v2906_v7  ;;  %v2911_v54 = vadd.s32 127, %v2910_v51  ;;  %v2974_v62 = vsel %vm2970_vm11, %v2954_v16, %v2957_v10  ;;  %v2975_v56 = vsel %vm2973_vm13, %v2963_v21, 2102212464 }
 0x352   : > { %vm2971_vm14 = vcmp.lt.s32.totalorder %v2951_v0, 2  ;;  %v2976_v34 = vsel %vm2972_vm12, %v2960_v50, %v2975_v56  ;;  %v2978_v8 = vsel %vm2970_vm11, %v2957_v10, %v2960_v50  ;;  %v2979_v2 = vsel %vm2973_vm13, %v2966_v19, 920167782 }
 0x353   : > { %v7749_v3 = vpop.eup %7748  ;;  %v2909_v14 = vor.u32 %v2908_v5, %v2907_v38  ;;  %v2912_v33 = vshll.u32 %v2911_v54, 23  ;;  %v2980_v42 = vsel %vm2972_vm12, %v2963_v21, %v2979_v2  ;;  %v2982_v20 = vsel %vm2970_vm11, %v2960_v50, %v2963_v21 }
 0x354   : > { %v7751_v17 = vpop.eup %7750  ;;  %v2830_v48 = vxor.u32 2147483648, %v7749_v3  ;;  %v2977_v43 = vsel %vm2971_vm14, %v2974_v62, %v2976_v34  ;;  %v2983_v9 = vsel %vm2973_vm13, %v2969_v29, 1326507024  ;;  %v10641_v26 = vshll.u32 %v3050_v28, 8 }
 0x355   : > { %v2827_v37 = vxor.u32 2147483648, %v7751_v17  ;;  %v2913_v55 = vor.u32 4788187, %v2912_v33  ;;  %v2981_v18 = vsel %vm2971_vm14, %v2978_v8, %v2980_v42  ;;  %v2984_v60 = vsel %vm2972_vm12, %v2966_v19, %v2983_v9 }
 0x356   : > { %v2831_v35 = vsel %vm2829_vm3, %v2830_v48, %v7751_v17  ;;  %v6168_v27 = vsel %vm6166_vm5, %v2830_v48, %v7751_v17  ;;  %v2985_v47 = vsel %vm2971_vm14, %v2982_v20, %v2984_v60  ;;  %v3054_v28 = vsel %vm3053_vm2, %v10598_v36, 0 }
 0x357   : > { %v2828_v45 = vsel %vm2826_vm6, %v7749_v3, %v2827_v37  ;;  %v2914_v1 = vand.u32 2147483647, %v2913_v55  ;;  %v2916_v30 = vcvt.s32.f32 %v2909_v14  ;;  %v6165_v32 = vsel %vm6163_vm7, %v7749_v3, %v2827_v37 }
 0x358   : > { %v2832_v10 = vsel %vm2825_vm8, %v2828_v45, %v2831_v35  ;;  %v6169_v0 = vsel %vm6162_vm9, %v6165_v32, %v6168_v27  ;;  %v10662_v50 = vmul.u32.u64.low %v10605_v49, %v2985_v47  ;;  %v10663_v57 = vmul.u32.u64.high %v10605_v49, %v2985_v47, %v10662_v50 }
 0x359   : > { %v2833_v36 = vsel %vm2822_vm10, nan, %v2832_v10  ;;  %v2917_v25 = vmul.f32 %v2916_v30, %v2914_v1  ;;  %v6170_v21 = vsel %vm2822_vm10, nan, %v6169_v0  ;;  %v3056_v19 = vand.u32 31, %v3054_v28 }
 0x35a   : > { %v2927_v61 = vadd.s32 3, %v10613_v11  ;;  %3792 = vst [vmem:[%s8347_s4 + $0x160] sm:$0xff] %v2833_v36  ;;  %v10672_v13 = vand.u32 3, %v10613_v11  ;;  %7120 = vst [vmem:[%s8347_s4 + $0x170] sm:$0xff] %v6170_v21  ;;  %v10676_v59 = vmul.u32.u64.low %v10605_v49, %v2981_v18  ;;  %v10677_v7 = vmul.u32.u64.high %v10605_v49, %v2981_v18, %v10676_v59 }
 0x35b   : > { %v2918_v38 = vxor.u32 2147483648, %v2917_v25  ;;  %v2993_v51 = vmul.u32 %v10605_v49, %v2977_v43  ;;  %v3055_v16 = vshrl.u32 %v3054_v28, 5  ;;  %v3057_v29 = vsub.s32 32, %v3056_v19 }
 0x35c   : > { %vm2995_vm15 = vc.u32 %v10663_v57, %v10676_v59  ;;  %v3059_v58 = vshll.u32 %v11509_v31, %v3056_v19  ;;  %v3062_v5 = vshll.u32 %v11510_v39, %v3056_v19  ;;  %v3065_v11 = vshll.u32 %v11511_v4, %v3056_v19 }
 0x35d   : > { %v2919_v54 = vsel %vm2836_vm0, %v2918_v38, %v2917_v25  ;;  %v3060_v62 = vshrl.u32 %v11510_v39, %v3057_v29  ;;  %v3063_v56 = vshrl.u32 %v11511_v4, %v3057_v29  ;;  %v3068_v49 = vshll.u32 %v11512_v46, %v3056_v19 }
 0x35e   : > { %v2922_v34 = vsel %vm10577_vm1, %v10317_v15, %v2919_v54  ;;  %v2996_v8 = vadd.s32 1, %v10677_v7  ;;  %v3066_v2 = vshrl.u32 %v11512_v46, %v3057_v29  ;;  %v3069_v3 = vshrl.u32 %v11513_v41, %v3057_v29 }
 0x35f   : > { %7752 = vcosq.f32 %v2922_v34  ;;  %v3061_v14 = vor.u32 %v3060_v62, %v3059_v58  ;;  %v3064_v33 = vor.u32 %v3063_v56, %v3062_v5  ;;  %vm3074_vm0 = vcmp.lt.s32.totalorder %v3055_v16, 1 }
 0x360   : > { %7754 = vsinq.f32 %v2922_v34  ;;  %v2997_v42 = vsel %vm2995_vm15, %v2996_v8, %v10677_v7  ;;  %v3067_v20 = vor.u32 %v3066_v2, %v3065_v11  ;;  %v3070_v17 = vor.u32 %v3069_v3, %v3068_v49 }
 0x361   : > { %v2998_v40 = vadd.s32 %v2997_v42, %v2993_v51  ;;  %v3071_v48 = vshll.u32 %v11513_v41, %v3056_v19  ;;  %v3072_v43 = vshrl.u32 %v11514_v24, %v3057_v29  ;;  %vm3077_vm1 = vcmp.lt.s32.totalorder %v3055_v16, 4 }
 0x362   : > { %vm3075_vm2 = vcmp.lt.s32.totalorder %v3055_v16, 2  ;;  %vm3076_vm3 = vcmp.lt.s32.totalorder %v3055_v16, 3  ;;  %v3082_v9 = vsel %vm3074_vm0, %v3061_v14, %v3064_v33  ;;  %v3083_v37 = vsel %vm3077_vm1, %v3070_v17, 920167782 }
 0x363   : > { %v2999_v55 = vadd.s32 536870912, %v2998_v40  ;;  %v3073_v18 = vor.u32 %v3072_v43, %v3071_v48  ;;  %v3079_v60 = vsel %vm3077_vm1, %v3067_v20, 2102212464  ;;  %v3084_v35 = vsel %vm3076_vm3, %v3067_v20, %v3083_v37  ;;  %v11577_v37 = vld [vmem:[#allocation11_spill] sm:$0xff] }
 0x364   : > { %v2928_v27 = vand.u32 3, %v2927_v61  ;;  %v3058_v47 = vshrl.u32 %v11509_v31, %v3057_v29  ;;  %v3085_v28 = vsel %vm3075_vm2, %v3082_v9, %v3084_v35  ;;  %v3086_v45 = vsel %vm3074_vm0, %v3064_v33, %v3067_v20 }
 0x365   : > { %v3000_v1 = vshrl.u32 %v2999_v55, 30  ;;  %v3087_v30 = vsel %vm3077_vm1, %v3073_v18, 1326507024  ;;  %v10709_v32 = vmul.u32.u64.low %v10641_v26, %v3085_v28  ;;  %v10710_v10 = vmul.u32.u64.high %v10641_v26, %v3085_v28, %v10709_v32 }
 0x366   : > { %v3078_v0 = vsel %vm3074_vm0, %v3058_v47, %v3061_v14  ;;  %v3080_v50 = vsel %vm3076_vm3, %v3064_v33, %v3079_v60  ;;  %v3088_v36 = vsel %vm3076_vm3, %v3070_v17, %v3087_v30  ;;  %v3149_v25 = vand.u32 2139095040, %v10609_v52 }
 0x367   : > { %vm2926_vm4 = vweird.f32 %v10317_v15  ;;  %v3001_v21 = vshll.u32 %v3000_v1, 30  ;;  %v3089_v19 = vsel %vm3075_vm2, %v3086_v45, %v3088_v36  ;;  %v405_v61 = vmul.f32 %v8030_v23, %v10571_v12 }
 0x368   : > { %vm6265_vm5 = vcmp.lt.s32.totalorder %v10672_v13, 2  ;;  %v10723_v7 = vmul.u32.u64.low %v10641_v26, %v3089_v19  ;;  %v10724_v38 = vmul.u32.u64.high %v10641_v26, %v3089_v19, %v10723_v7  ;;  %v3146_v51 = vand.u32 2147483647, %v10609_v52 }
 0x369   : > { %v7753_v29 = vpop.eup %7752  ;;  %vm6266_vm6 = vcmp.eq.s32.totalorder %v10672_v13, 0  ;;  %v3002_v58 = vsub.s32 %v2998_v40, %v3001_v21  ;;  %v3081_v5 = vsel %vm3075_vm2, %v3078_v0, %v3080_v50  ;;  %v3150_v11 = vshrl.u32 %v3149_v25, 23 }
 0x36a   : > { %v7755_v54 = vpop.eup %7754  ;;  %vm2929_vm7 = vcmp.lt.s32.totalorder %v2928_v27, 2  ;;  %v2934_v62 = vxor.u32 2147483648, %v7753_v29  ;;  %vm6269_vm8 = vcmp.eq.s32.totalorder %v10672_v13, 2  ;;  %v3100_v12 = vadd.s32 1, %v10710_v10 }
 0x36b   : > { %vm2930_vm9 = vcmp.eq.s32.totalorder %v2928_v27, 0  ;;  %v2931_v56 = vxor.u32 2147483648, %v7755_v54  ;;  %vm2933_vm10 = vcmp.eq.s32.totalorder %v2928_v27, 2  ;;  %v3004_v49 = vsub.s32 0, %v3002_v58 }
 0x36c   : > { %v2935_v34 = vsel %vm2933_vm10, %v2934_v62, %v7755_v54  ;;  %v6271_v8 = vsel %vm6269_vm8, %v2934_v62, %v7755_v54  ;;  %v3097_v2 = vmul.u32 %v10641_v26, %v3081_v5  ;;  %vm3099_vm11 = vc.u32 %v10724_v38, %v10709_v32 }
 0x36d   : > { %v2932_v16 = vsel %vm2930_vm9, %v7753_v29, %v2931_v56  ;;  %v6268_v3 = vsel %vm6266_vm6, %v7753_v29, %v2931_v56  ;;  %v7312_v14 = vmin.u32 %v3004_v49, %v3002_v58  ;;  %v7319_v33 = vadd.s32 4294967169, %v3150_v11 }
 0x36e   : > { %v2936_v42 = vsel %vm2929_vm7, %v2932_v16, %v2935_v34  ;;  %v6272_v20 = vsel %vm6265_vm5, %v6268_v3, %v6271_v8  ;;  %v3024_v17 = vsub.s32 4, %v3000_v1  ;;  %v3101_v40 = vsel %vm3099_vm11, %v3100_v12, %v10710_v10 }
 0x36f   : > { %v2937_v26 = vsel %vm2926_vm4, nan, %v2936_v42  ;;  %v6273_v48 = vsel %vm2926_vm4, nan, %v6272_v20  ;;  %v3006_v43 = vclz %v7312_v14  ;;  %v3102_v9 = vadd.s32 %v3101_v40, %v3097_v2 }
 0x370   : > { %3793 = vst [vmem:[%s8347_s4 + $0x168] sm:$0xff] %v2937_v26  ;;  %7121 = vst [vmem:[%s8347_s4 + $0x178] sm:$0xff] %v6273_v48  ;;  %v10747_v55 = vadd.f32 %v405_v61, %v11577_v37  ;;  %vm2940_vm12 = vcmp.lt.s32.totalorder %v10509_v53, 0  ;;  %v3156_v18 = vadd.s32 1, %v7319_v33  ;;  %v3153_v27 = vand.u32 8388607, %v3146_v51 }
 0x371   : > { %v7313_v13 = vadd.s32 4294967294, %v3006_v43  ;;  %v3025_v60 = vsel %vm2940_vm12, %v3024_v17, %v3000_v1  ;;  %v3103_v35 = vadd.s32 536870912, %v3102_v9  ;;  %vm10756_vm13 = vcmp.le.f32.partialorder %v2938_v6, 0.7853982 }
 0x372   : > { %vm3157_vm15 = vcmp.gt.s32.totalorder %v3156_v18, 0  ;;  %v3253_v30 = vand.u32 2139095040, %v10747_v55  ;;  %v2994_v1 = vadd.s32 %v10676_v59, %v10663_v57  ;;  %v3027_v50 = vsel %vm10756_vm13, 0, %v3025_v60 }
 0x373   : > { %vm7314_vm14 = vcmp.lt.s32.totalorder %v7313_v13, 0  ;;  %v3104_v28 = vshrl.u32 %v3103_v35, 30  ;;  %v3158_v45 = vsel %vm3157_vm15, %v3156_v18, 0  ;;  %v3154_v6 = vor.u32 8388608, %v3153_v27 }
 0x374   : > { %v3009_v47 = vsel %vm7314_vm14, 0, %v7313_v13  ;;  %v3160_v25 = vand.u32 31, %v3158_v45  ;;  %v3031_v29 = vadd.s32 3, %v3027_v50  ;;  %v3254_v54 = vshrl.u32 %v3253_v30, 23 }
 0x375   : > { %v3010_v10 = vsub.s32 32, %v3009_v47  ;;  %v3014_v0 = vsub.s32 4294967266, %v3009_v47  ;;  %v3105_v36 = vshll.u32 %v3104_v28, 30  ;;  %v3011_v21 = vshll.u32 %v3002_v58, %v3009_v47 }
 0x376   : > { %v3128_v7 = vsub.s32 4, %v3104_v28  ;;  %v3161_v11 = vsub.s32 32, %v3160_v25  ;;  %vm10769_vm0 = vcmp.le.f32.partialorder %v3042_v63, 0.7853982  ;;  %vm3044_vm1 = vcmp.lt.s32.totalorder %v10551_v44, 0 }
 0x377   : > { %v3012_v19 = vshrl.u32 %v2994_v1, %v3010_v10  ;;  %v3015_v61 = vadd.s32 127, %v3014_v0  ;;  %v10765_v5 = vsub.s32 %v3102_v9, %v3105_v36  ;;  %v10775_v58 = vand.u32 3, %v3027_v50 }
 0x378   : > { %v10777_v56 = vshrl.u32 %v3158_v45, 5  ;;  %v3250_v49 = vand.u32 2147483647, %v10747_v55  ;;  %v3098_v8 = vadd.s32 %v10709_v32, %v10724_v38  ;;  %v3129_v63 = vsel %vm3044_vm1, %v3128_v7, %v3104_v28 }
 0x379   : > { %v3013_v62 = vor.u32 %v3012_v19, %v3011_v21  ;;  %v3016_v12 = vshll.u32 %v3015_v61, 23  ;;  %v3108_v59 = vsub.s32 0, %v10765_v5  ;;  %v3164_v2 = vshrl.u32 %v11510_v39, %v3161_v11 }
 0x37a   : > { %v10785_v16 = vand.u32 3, %v3031_v29  ;;  %v10788_v14 = vshll.u32 %v3154_v6, 8  ;;  %v7323_v33 = vadd.s32 4294967169, %v3254_v54  ;;  %v3163_v17 = vshll.u32 %v11509_v31, %v3160_v25 }
 0x37b   : > { %v3017_v34 = vor.u32 4788187, %v3016_v12  ;;  %v7316_v3 = vmin.u32 %v3108_v59, %v10765_v5  ;;  %v3020_v20 = vcvt.s32.f32 %v3013_v62  ;;  %v3167_v40 = vshrl.u32 %v11511_v4, %v3161_v11 }
 0x37c   : > { %v10794_v32 = vsel %vm10769_vm0, 0, %v3129_v63  ;;  %v3166_v38 = vshll.u32 %v11510_v39, %v3160_v25  ;;  %vm3178_vm2 = vcmp.lt.s32.totalorder %v10777_v56, 1  ;;  %v3165_v43 = vor.u32 %v3164_v2, %v3163_v17 }
 0x37d   : > { %v3018_v42 = vand.u32 2147483647, %v3017_v34  ;;  %v3110_v26 = vclz %v7316_v3  ;;  %v3169_v9 = vshll.u32 %v11511_v4, %v3160_v25  ;;  %v3170_v37 = vshrl.u32 %v11512_v46, %v3161_v11 }
 0x37e   : > { %vm3179_vm3 = vcmp.lt.s32.totalorder %v10777_v56, 2  ;;  %v3172_v18 = vshll.u32 %v11512_v46, %v3160_v25  ;;  %v3173_v60 = vshrl.u32 %v11513_v41, %v3161_v11  ;;  %v3176_v35 = vshrl.u32 %v11514_v24, %v3161_v11 }
 0x37f   : > { %v3021_v48 = vmul.f32 %v3020_v20, %v3018_v42  ;;  %v7317_v13 = vadd.s32 4294967294, %v3110_v26  ;;  %v3168_v47 = vor.u32 %v3167_v40, %v3166_v38  ;;  %v3171_v28 = vor.u32 %v3170_v37, %v3169_v9 }
 0x380   : > { %v3175_v45 = vshll.u32 %v11513_v41, %v3160_v25  ;;  %v3162_v30 = vshrl.u32 %v11509_v31, %v3161_v11  ;;  %v3174_v1 = vor.u32 %v3173_v60, %v3172_v18  ;;  %vm3180_vm5 = vcmp.lt.s32.totalorder %v10777_v56, 3 }
 0x381   : > { %v3022_v27 = vxor.u32 2147483648, %v3021_v48  ;;  %vm7318_vm4 = vcmp.lt.s32.totalorder %v7317_v13, 0  ;;  %vm3181_vm6 = vcmp.lt.s32.totalorder %v10777_v56, 4  ;;  %v3186_v61 = vsel %vm3178_vm2, %v3165_v43, %v3168_v47 }
 0x382   : > { %v3113_v0 = vsel %vm7318_vm4, 0, %v7317_v13  ;;  %v3177_v50 = vor.u32 %v3176_v35, %v3175_v45  ;;  %v3183_v25 = vsel %vm3181_vm6, %v3171_v28, 2102212464  ;;  %v3187_v7 = vsel %vm3181_vm6, %v3174_v1, 920167782 }
 0x383   : > { %v3023_v10 = vsel %vm2940_vm12, %v3022_v27, %v3021_v48  ;;  %v3114_v6 = vsub.s32 32, %v3113_v0  ;;  %v3118_v21 = vsub.s32 4294967266, %v3113_v0  ;;  %v3115_v19 = vshll.u32 %v10765_v5, %v3113_v0 }
 0x384   : > { %v3026_v36 = vsel %vm10756_vm13, %v10509_v53, %v3023_v10  ;;  %v3190_v15 = vsel %vm3178_vm2, %v3168_v47, %v3171_v28  ;;  %v3182_v54 = vsel %vm3178_vm2, %v3162_v30, %v3165_v43  ;;  %v3184_v62 = vsel %vm3180_vm5, %v3168_v47, %v3183_v25 }
 0x385   : > { %7756 = vcosq.f32 %v3026_v36  ;;  %v3116_v29 = vshrl.u32 %v3098_v8, %v3114_v6  ;;  %v3119_v11 = vadd.s32 127, %v3118_v21  ;;  %v3188_v5 = vsel %vm3180_vm5, %v3171_v28, %v3187_v7 }
 0x386   : > { %7758 = vsinq.f32 %v3026_v36  ;;  %v3191_v12 = vsel %vm3181_vm6, %v3177_v50, 1326507024  ;;  %v3189_v8 = vsel %vm3179_vm3, %v3186_v61, %v3188_v5  ;;  %v3260_v20 = vadd.s32 1, %v7323_v33 }
 0x387   : > { %v3117_v59 = vor.u32 %v3116_v29, %v3115_v19  ;;  %v3120_v34 = vshll.u32 %v3119_v11, 23  ;;  %v3192_v63 = vsel %vm3180_vm5, %v3174_v1, %v3191_v12  ;;  %vm3034_vm7 = vcmp.eq.s32.totalorder %v10785_v16, 0 }
 0x388   : > { %v3193_v2 = vsel %vm3179_vm3, %v3190_v15, %v3192_v63  ;;  %v10837_v3 = vmul.u32.u64.low %v10788_v14, %v3189_v8  ;;  %v10838_v42 = vmul.u32.u64.high %v10788_v14, %v3189_v8, %v10837_v3  ;;  %vm3033_vm8 = vcmp.lt.s32.totalorder %v10785_v16, 2 }
 0x389   : > { %v3121_v17 = vor.u32 4788187, %v3120_v34  ;;  %v10843_v40 = vmul.u32.u64.low %v10788_v14, %v3193_v2  ;;  %v10844_v26 = vmul.u32.u64.high %v10788_v14, %v3193_v2, %v10843_v40  ;;  %v3135_v38 = vadd.s32 3, %v10794_v32 }
 0x38a   : > { %vm6368_vm9 = vcmp.lt.s32.totalorder %v10775_v58, 2  ;;  %v3185_v48 = vsel %vm3179_vm3, %v3182_v54, %v3184_v62  ;;  %v10853_v43 = vand.u32 8388607, %v3250_v49  ;;  %vm3261_vm10 = vcmp.gt.s32.totalorder %v3260_v20, 0 }
 0x38b   : > { %vm3030_vm11 = vweird.f32 %v10509_v53  ;;  %vm3037_vm12 = vcmp.eq.s32.totalorder %v10785_v16, 2  ;;  %v3122_v33 = vand.u32 2147483647, %v3121_v17  ;;  %v3124_v9 = vcvt.s32.f32 %v3117_v59  ;;  %v361_v53 = vpop.permute.xlu1 %360 }
 0x38c   : > { %v3262_v37 = vsel %vm3261_vm10, %v3260_v20, 0  ;;  %vm6369_vm13 = vcmp.eq.s32.totalorder %v10775_v58, 0  ;;  %vm6372_vm14 = vcmp.eq.s32.totalorder %v10775_v58, 2  ;;  %v3204_v13 = vadd.s32 1, %v10838_v42 }
 0x38d   : > { %v3264_v56 = vand.u32 31, %v3262_v37  ;;  %v3125_v18 = vmul.f32 %v3124_v9, %v3122_v33  ;;  %v10861_v60 = vand.u32 3, %v10794_v32  ;;  %v3201_v35 = vmul.u32 %v10788_v14, %v3185_v48 }
 0x38e   : > { %vm3203_vm15 = vc.u32 %v10844_v26, %v10837_v3  ;;  %v10866_v47 = vand.u32 3, %v3135_v38  ;;  %v3258_v45 = vor.u32 8388608, %v10853_v43  ;;  %v10870_v36 = vshrl.u32 %v3262_v37, 5 }
 0x38f   : > { %v7757_v27 = vpop.eup %7756  ;;  %v3205_v28 = vsel %vm3203_vm15, %v3204_v13, %v10838_v42  ;;  %v3265_v30 = vsub.s32 32, %v3264_v56  ;;  %v3126_v0 = vxor.u32 2147483648, %v3125_v18  ;;  %v3267_v14 = vshll.u32 %v11509_v31, %v3264_v56 }
 0x390   : > { %v7759_v1 = vpop.eup %7758  ;;  %v3038_v10 = vxor.u32 2147483648, %v7757_v27  ;;  %v3206_v50 = vadd.s32 %v3205_v28, %v3201_v35  ;;  %v3270_v54 = vshll.u32 %v11510_v39, %v3264_v56  ;;  %v3273_v34 = vshll.u32 %v11511_v4, %v3264_v56 }
 0x391   : > { %v3035_v32 = vxor.u32 2147483648, %v7759_v1  ;;  %v3268_v6 = vshrl.u32 %v11510_v39, %v3265_v30  ;;  %v3271_v21 = vshrl.u32 %v11511_v4, %v3265_v30  ;;  %v3127_v19 = vsel %vm3044_vm1, %v3126_v0, %v3125_v18 }
 0x392   : > { %v3039_v25 = vsel %vm3037_vm12, %v3038_v10, %v7759_v1  ;;  %v6374_v61 = vsel %vm6372_vm14, %v3038_v10, %v7759_v1  ;;  %v3207_v7 = vadd.s32 536870912, %v3206_v50  ;;  %v3130_v11 = vsel %vm10769_vm0, %v10551_v44, %v3127_v19 }
 0x393   : > { %v3036_v29 = vsel %vm3034_vm7, %v7757_v27, %v3035_v32  ;;  %v6371_v15 = vsel %vm6369_vm13, %v7757_v27, %v3035_v32  ;;  %7760 = vcosq.f32 %v3130_v11  ;;  %v3269_v8 = vor.u32 %v3268_v6, %v3267_v14  ;;  %v11582_v6 = vld [vmem:[#allocation16_spill] sm:$0xff] }
 0x394   : > { %v3040_v62 = vsel %vm3033_vm8, %v3036_v29, %v3039_v25  ;;  %v6375_v5 = vsel %vm6368_vm9, %v6371_v15, %v6374_v61  ;;  %v10893_v12 = vshrl.u32 %v3207_v7, 30  ;;  %7762 = vsinq.f32 %v3130_v11 }
 0x395   : > { %v3041_v59 = vsel %vm3030_vm11, nan, %v3040_v62  ;;  %v6376_v57 = vsel %vm3030_vm11, nan, %v6375_v5  ;;  %v3272_v63 = vor.u32 %v3271_v21, %v3270_v54  ;;  %v3274_v58 = vshrl.u32 %v11512_v46, %v3265_v30 }
 0x396   : > { %3794 = vst [vmem:[%s8347_s4 + $0x180] sm:$0xff] %v3041_v59  ;;  %7122 = vst [vmem:[%s8347_s4 + $0x190] sm:$0xff] %v6376_v57  ;;  %v3209_v16 = vshll.u32 %v10893_v12, 30  ;;  %v3276_v2 = vshll.u32 %v11512_v46, %v3264_v56  ;;  %v3277_v42 = vshrl.u32 %v11513_v41, %v3265_v30  ;;  %v3279_v20 = vshll.u32 %v11513_v41, %v3264_v56 }
 0x397   : > { %v3280_v17 = vshrl.u32 %v11514_v24, %v3265_v30  ;;  %vm6475_vm0 = vcmp.eq.s32.totalorder %v10861_v60, 2  ;;  %v3275_v38 = vor.u32 %v3274_v58, %v3273_v34  ;;  %vm3138_vm1 = vcmp.eq.s32.totalorder %v10866_v47, 0 }
 0x398   : > { %v10909_v40 = vsub.s32 %v3206_v50, %v3209_v16  ;;  %vm3141_vm2 = vcmp.eq.s32.totalorder %v10866_v47, 2  ;;  %vm6472_vm3 = vcmp.eq.s32.totalorder %v10861_v60, 0  ;;  %v3278_v48 = vor.u32 %v3277_v42, %v3276_v2 }
 0x399   : > { %v3281_v43 = vor.u32 %v3280_v17, %v3279_v20  ;;  %v3298_v33 = vshll.u32 %v3258_v45, 8  ;;  %vm3137_vm4 = vcmp.lt.s32.totalorder %v10866_v47, 2  ;;  %vm6471_vm5 = vcmp.lt.s32.totalorder %v10861_v60, 2 }
 0x39a   : > { %v3212_v9 = vsub.s32 0, %v10909_v40  ;;  %vm3282_vm6 = vcmp.lt.s32.totalorder %v10870_v36, 1  ;;  %vm3285_vm7 = vcmp.lt.s32.totalorder %v10870_v36, 4  ;;  %v406_v37 = vmul.f32 %v8028_v22, %v361_v53 }
 0x39b   : > { %vm3134_vm8 = vweird.f32 %v10551_v44  ;;  %vm3284_vm9 = vcmp.lt.s32.totalorder %v10870_v36, 3  ;;  %v3287_v13 = vsel %vm3285_vm7, %v3275_v38, 2102212464  ;;  %v3290_v56 = vsel %vm3282_vm6, %v3269_v8, %v3272_v63 }
 0x39c   : > { %v3291_v18 = vsel %vm3285_vm7, %v3278_v48, 920167782  ;;  %v7320_v35 = vmin.u32 %v3212_v9, %v10909_v40  ;;  %v3266_v27 = vshrl.u32 %v11509_v31, %v3265_v30  ;;  %vm3283_vm10 = vcmp.lt.s32.totalorder %v10870_v36, 2 }
 0x39d   : > { %v3292_v28 = vsel %vm3284_vm9, %v3275_v38, %v3291_v18  ;;  %v3294_v1 = vsel %vm3282_vm6, %v3272_v63, %v3275_v38  ;;  %v3295_v10 = vsel %vm3285_vm7, %v3281_v43, 1326507024  ;;  %v407_v0 = vmul.f32 %v8030_v23, %v361_v53  ;;  %v7761_v50 = vpop.eup %7760 }
 0x39e   : > { %v3293_v45 = vsel %vm3283_vm10, %v3290_v56, %v3292_v28  ;;  %v3214_v32 = vclz %v7320_v35  ;;  %v3286_v14 = vsel %vm3282_vm6, %v3266_v27, %v3269_v8  ;;  %v3288_v30 = vsel %vm3284_vm9, %v3272_v63, %v3287_v13  ;;  %v7763_v25 = vpop.eup %7762 }
 0x39f   : > { %v10939_v21 = vadd.f32 %v406_v37, %v11582_v6  ;;  %v3142_v19 = vxor.u32 2147483648, %v7761_v50  ;;  %v3296_v61 = vsel %vm3284_vm9, %v3278_v48, %v3295_v10  ;;  %v3139_v11 = vxor.u32 2147483648, %v7763_v25  ;;  %v11583_v48 = vld [vmem:[#allocation17_spill] sm:$0xff] }
 0x3a0   : > { %v10943_v7 = vmul.u32.u64.low %v3298_v33, %v3293_v45  ;;  %v10944_v29 = vmul.u32.u64.high %v3298_v33, %v3293_v45, %v10943_v7  ;;  %v3202_v15 = vadd.s32 %v10837_v3, %v10844_v26  ;;  %v7321_v54 = vadd.s32 4294967294, %v3214_v32 }
 0x3a1   : > { %v3297_v62 = vsel %vm3283_vm10, %v3294_v1, %v3296_v61  ;;  %v3143_v5 = vsel %vm3141_vm2, %v3142_v19, %v7763_v25  ;;  %v6477_v59 = vsel %vm6475_vm0, %v3142_v19, %v7763_v25  ;;  %v3140_v16 = vsel %vm3138_vm1, %v7761_v50, %v3139_v11 }
 0x3a2   : > { %v10955_v57 = vmul.u32.u64.low %v3298_v33, %v3297_v62  ;;  %v10956_v34 = vmul.u32.u64.high %v3298_v33, %v3297_v62, %v10955_v57  ;;  %v6474_v3 = vsel %vm6472_vm3, %v7761_v50, %v3139_v11  ;;  %vm7322_vm11 = vcmp.lt.s32.totalorder %v7321_v54, 0 }
 0x3a3   : > { %v3289_v26 = vsel %vm3283_vm10, %v3286_v14, %v3288_v30  ;;  %v3144_v8 = vsel %vm3137_vm4, %v3140_v16, %v3143_v5  ;;  %v6478_v63 = vsel %vm6471_vm5, %v6474_v3, %v6477_v59  ;;  %v3217_v58 = vsel %vm7322_vm11, 0, %v7321_v54 }
 0x3a4   : > { %v3308_v2 = vadd.s32 1, %v10944_v29  ;;  %v3145_v42 = vsel %vm3134_vm8, nan, %v3144_v8  ;;  %v6479_v20 = vsel %vm3134_vm8, nan, %v6478_v63  ;;  %v3218_v17 = vsub.s32 32, %v3217_v58 }
 0x3a5   : > { %v3232_v53 = vsub.s32 4, %v10893_v12  ;;  %3795 = vst [vmem:[%s8347_s4 + $0x188] sm:$0xff] %v3145_v42  ;;  %7123 = vst [vmem:[%s8347_s4 + $0x198] sm:$0xff] %v6479_v20  ;;  %v3222_v36 = vsub.s32 4294967266, %v3217_v58  ;;  %v3305_v47 = vmul.u32 %v3298_v33, %v3289_v26  ;;  %vm3307_vm12 = vc.u32 %v10956_v34, %v10943_v7 }
 0x3a6   : > { %vm3148_vm13 = vcmp.lt.s32.totalorder %v10609_v52, 0  ;;  %v3220_v60 = vshrl.u32 %v3202_v15, %v3218_v17  ;;  %v3309_v38 = vsel %vm3307_vm12, %v3308_v2, %v10944_v29  ;;  %v10981_v43 = vadd.f32 %v407_v0, %v11583_v48  ;;  %v11001_v29 = vpop.permute.xlu0 %364 }
 0x3a7   : > { %v3219_v44 = vshll.u32 %v10909_v40, %v3217_v58  ;;  %v3223_v9 = vadd.s32 127, %v3222_v36  ;;  %v3310_v37 = vadd.s32 %v3309_v38, %v3305_v47  ;;  %v3357_v13 = vand.u32 2139095040, %v10939_v21  ;;  %v11588_v38 = vld [vmem:[#allocation14_spill] sm:$0xff] }
 0x3a8   : > { %v3233_v33 = vsel %vm3148_vm13, %v3232_v53, %v10893_v12  ;;  %v3354_v56 = vand.u32 2147483647, %v10939_v21  ;;  %vm10991_vm14 = vcmp.le.f32.partialorder %v3146_v51, 0.7853982  ;;  %v3461_v40 = vand.u32 2139095040, %v10981_v43 }
 0x3a9   : > { %v3221_v18 = vor.u32 %v3220_v60, %v3219_v44  ;;  %v3224_v35 = vshll.u32 %v3223_v9, 23  ;;  %v3311_v27 = vadd.s32 536870912, %v3310_v37  ;;  %v3358_v28 = vshrl.u32 %v3357_v13, 23 }
 0x3aa   : > { %v3235_v10 = vsel %vm10991_vm14, 0, %v3233_v33  ;;  %v3361_v50 = vand.u32 8388607, %v3354_v56  ;;  %v3458_v32 = vand.u32 2147483647, %v10981_v43  ;;  %v3462_v14 = vshrl.u32 %v3461_v40, 23 }
 0x3ab   : > { %v3225_v1 = vor.u32 4788187, %v3224_v35  ;;  %v3312_v0 = vshrl.u32 %v3311_v27, 30  ;;  %v7327_v12 = vadd.s32 4294967169, %v3358_v28  ;;  %v3228_v6 = vcvt.s32.f32 %v3221_v18 }
 0x3ac   : > { %v3239_v19 = vadd.s32 3, %v3235_v10  ;;  %v7331_v54 = vadd.s32 4294967169, %v3462_v14  ;;  %vm11007_vm0 = vcmp.le.f32.partialorder %v3250_v49, 0.7853982  ;;  %v3362_v5 = vor.u32 8388608, %v3361_v50 }
 0x3ad   : > { %v3226_v30 = vand.u32 2147483647, %v3225_v1  ;;  %v3313_v51 = vshll.u32 %v3312_v0, 30  ;;  %v3364_v25 = vadd.s32 1, %v7327_v12  ;;  %v3336_v61 = vsub.s32 4, %v3312_v0 }
 0x3ae   : > { %v11014_v3 = vand.u32 8388607, %v3458_v32  ;;  %v408_v26 = vmul.f32 %v8028_v22, %v11001_v29  ;;  %v11018_v8 = vand.u32 3, %v3239_v19  ;;  %vm3252_vm1 = vcmp.lt.s32.totalorder %v10747_v55, 0 }
 0x3af   : > { %v3229_v11 = vmul.f32 %v3228_v6, %v3226_v30  ;;  %v11003_v15 = vsub.s32 %v3310_v37, %v3313_v51  ;;  %vm3365_vm15 = vcmp.gt.s32.totalorder %v3364_v25, 0  ;;  %v11021_v49 = vand.u32 3, %v3235_v10 }
 0x3b0   : > { %v3366_v59 = vsel %vm3365_vm15, %v3364_v25, 0  ;;  %v3337_v42 = vsel %vm3252_vm1, %v3336_v61, %v3312_v0  ;;  %v11028_v20 = vadd.s32 1, %v7331_v54  ;;  %v3306_v17 = vadd.s32 %v10943_v7, %v10956_v34 }
 0x3b1   : > { %v3230_v57 = vxor.u32 2147483648, %v3229_v11  ;;  %v3316_v16 = vsub.s32 0, %v11003_v15  ;;  %v3368_v63 = vand.u32 31, %v3366_v59  ;;  %v11035_v36 = vshll.u32 %v3362_v5, 8 }
 0x3b2   : > { %v3466_v60 = vor.u32 8388608, %v11014_v3  ;;  %v11039_v48 = vadd.f32 %v408_v26, %v11588_v38  ;;  %v11043_v44 = vsel %vm11007_vm0, 0, %v3337_v42  ;;  %v3367_v9 = vshrl.u32 %v3366_v59, 5 }
 0x3b3   : > { %v3231_v58 = vsel %vm3148_vm13, %v3230_v57, %v3229_v11  ;;  %v7324_v2 = vmin.u32 %v3316_v16, %v11003_v15  ;;  %v3369_v53 = vsub.s32 32, %v3368_v63  ;;  %v3371_v37 = vshll.u32 %v11509_v31, %v3368_v63 }
 0x3b4   : > { %v3234_v22 = vsel %vm10991_vm14, %v10609_v52, %v3231_v58  ;;  %v3374_v34 = vshll.u32 %v11510_v39, %v3368_v63  ;;  %vm3469_vm2 = vcmp.gt.s32.totalorder %v11028_v20, 0  ;;  %v3377_v18 = vshll.u32 %v11511_v4, %v3368_v63 }
 0x3b5   : > { %7764 = vcosq.f32 %v3234_v22  ;;  %v3318_v47 = vclz %v7324_v2  ;;  %v3372_v7 = vshrl.u32 %v11510_v39, %v3369_v53  ;;  %v3375_v33 = vshrl.u32 %v11511_v4, %v3369_v53 }
 0x3b6   : > { %7766 = vsinq.f32 %v3234_v22  ;;  %v3378_v35 = vshrl.u32 %v11512_v46, %v3369_v53  ;;  %v3380_v27 = vshll.u32 %v11512_v46, %v3368_v63  ;;  %v3381_v28 = vshrl.u32 %v11513_v41, %v3369_v53 }
 0x3b7   : > { %v7325_v13 = vadd.s32 4294967294, %v3318_v47  ;;  %vm3245_vm3 = vcmp.eq.s32.totalorder %v11018_v8, 2  ;;  %vm6578_vm5 = vcmp.eq.s32.totalorder %v11021_v49, 2  ;;  %v3373_v45 = vor.u32 %v3372_v7, %v3371_v37 }
 0x3b8   : > { %v3376_v40 = vor.u32 %v3375_v33, %v3374_v34  ;;  %v3383_v1 = vshll.u32 %v11513_v41, %v3368_v63  ;;  %vm3242_vm6 = vcmp.eq.s32.totalorder %v11018_v8, 0  ;;  %vm6575_vm7 = vcmp.eq.s32.totalorder %v11021_v49, 0 }
 0x3b9   : > { %vm7326_vm4 = vcmp.lt.s32.totalorder %v7325_v13, 0  ;;  %v3379_v0 = vor.u32 %v3378_v35, %v3377_v18  ;;  %v3382_v12 = vor.u32 %v3381_v28, %v3380_v27  ;;  %v3384_v50 = vshrl.u32 %v11514_v24, %v3369_v53 }
 0x3ba   : > { %v3321_v10 = vsel %vm7326_vm4, 0, %v7325_v13  ;;  %vm3241_vm8 = vcmp.lt.s32.totalorder %v11018_v8, 2  ;;  %vm6574_vm9 = vcmp.lt.s32.totalorder %v11021_v49, 2  ;;  %v3370_v51 = vshrl.u32 %v11509_v31, %v3369_v53 }
 0x3bb   : > { %v3322_v14 = vsub.s32 32, %v3321_v10  ;;  %v3323_v30 = vshll.u32 %v11003_v15, %v3321_v10  ;;  %v3326_v6 = vsub.s32 4294967266, %v3321_v10  ;;  %vm3238_vm10 = vweird.f32 %v10609_v52 }
 0x3bc   : > { %v3385_v25 = vor.u32 %v3384_v50, %v3383_v1  ;;  %vm3386_vm11 = vcmp.lt.s32.totalorder %v3367_v9, 1  ;;  %vm3388_vm12 = vcmp.lt.s32.totalorder %v3367_v9, 3  ;;  %vm3389_vm13 = vcmp.lt.s32.totalorder %v3367_v9, 4 }
 0x3bd   : > { %v3324_v19 = vshrl.u32 %v3306_v17, %v3322_v14  ;;  %v3327_v61 = vadd.s32 127, %v3326_v6  ;;  %v3390_v11 = vsel %vm3386_vm11, %v3370_v51, %v3373_v45  ;;  %v3391_v54 = vsel %vm3389_vm13, %v3379_v0, 2102212464 }
 0x3be   : > { %vm3387_vm14 = vcmp.lt.s32.totalorder %v3367_v9, 2  ;;  %v3392_v5 = vsel %vm3388_vm12, %v3376_v40, %v3391_v54  ;;  %v3394_v15 = vsel %vm3386_vm11, %v3373_v45, %v3376_v40  ;;  %v3395_v59 = vsel %vm3389_vm13, %v3382_v12, 920167782 }
 0x3bf   : > { %v7765_v57 = vpop.eup %7764  ;;  %v3325_v16 = vor.u32 %v3324_v19, %v3323_v30  ;;  %v3328_v3 = vshll.u32 %v3327_v61, 23  ;;  %v3396_v26 = vsel %vm3388_vm12, %v3379_v0, %v3395_v59  ;;  %v3398_v63 = vsel %vm3386_vm11, %v3376_v40, %v3379_v0 }
 0x3c0   : > { %v7767_v58 = vpop.eup %7766  ;;  %v3246_v2 = vxor.u32 2147483648, %v7765_v57  ;;  %v3393_v42 = vsel %vm3387_vm14, %v3390_v11, %v3392_v5  ;;  %v3399_v22 = vsel %vm3389_vm13, %v3385_v25, 1326507024  ;;  %v11071_v17 = vshll.u32 %v3466_v60, 8 }
 0x3c1   : > { %v3243_v53 = vxor.u32 2147483648, %v7767_v58  ;;  %v3329_v47 = vor.u32 4788187, %v3328_v3  ;;  %v3397_v38 = vsel %vm3387_vm14, %v3394_v15, %v3396_v26  ;;  %v3400_v37 = vsel %vm3388_vm12, %v3382_v12, %v3399_v22 }
 0x3c2   : > { %v3247_v13 = vsel %vm3245_vm3, %v3246_v2, %v7767_v58  ;;  %v6580_v7 = vsel %vm6578_vm5, %v3246_v2, %v7767_v58  ;;  %v3401_v34 = vsel %vm3387_vm14, %v3398_v63, %v3400_v37  ;;  %v3470_v60 = vsel %vm3469_vm2, %v11028_v20, 0 }
 0x3c3   : > { %v3244_v33 = vsel %vm3242_vm6, %v7765_v57, %v3243_v53  ;;  %v3330_v18 = vand.u32 2147483647, %v3329_v47  ;;  %v3332_v35 = vcvt.s32.f32 %v3325_v16  ;;  %v6577_v27 = vsel %vm6575_vm7, %v7765_v57, %v3243_v53 }
 0x3c4   : > { %v3248_v28 = vsel %vm3241_vm8, %v3244_v33, %v3247_v13  ;;  %v6581_v9 = vsel %vm6574_vm9, %v6577_v27, %v6580_v7  ;;  %v11092_v45 = vmul.u32.u64.low %v11035_v36, %v3401_v34  ;;  %v11093_v40 = vmul.u32.u64.high %v11035_v36, %v3401_v34, %v11092_v45 }
 0x3c5   : > { %v3249_v20 = vsel %vm3238_vm10, nan, %v3248_v28  ;;  %v3333_v1 = vmul.f32 %v3332_v35, %v3330_v18  ;;  %v6582_v10 = vsel %vm3238_vm10, nan, %v6581_v9  ;;  %v3472_v0 = vand.u32 31, %v3470_v60 }
 0x3c6   : > { %v3343_v12 = vadd.s32 3, %v11043_v44  ;;  %3796 = vst [vmem:[%s8347_s4 + $0x1a0] sm:$0xff] %v3249_v20  ;;  %v11102_v8 = vand.u32 3, %v11043_v44  ;;  %7124 = vst [vmem:[%s8347_s4 + $0x1b0] sm:$0xff] %v6582_v10  ;;  %v11106_v49 = vmul.u32.u64.low %v11035_v36, %v3397_v38  ;;  %v11107_v50 = vmul.u32.u64.high %v11035_v36, %v3397_v38, %v11106_v49 }
 0x3c7   : > { %v3334_v14 = vxor.u32 2147483648, %v3333_v1  ;;  %v3409_v30 = vmul.u32 %v11035_v36, %v3393_v42  ;;  %v3471_v6 = vshrl.u32 %v3470_v60, 5  ;;  %v3473_v51 = vsub.s32 32, %v3472_v0 }
 0x3c8   : > { %vm3411_vm15 = vc.u32 %v11093_v40, %v11106_v49  ;;  %v3475_v52 = vshll.u32 %v11509_v31, %v3472_v0  ;;  %v3478_v25 = vshll.u32 %v11510_v39, %v3472_v0  ;;  %v3481_v44 = vshll.u32 %v11511_v4, %v3472_v0 }
 0x3c9   : > { %v3335_v19 = vsel %vm3252_vm1, %v3334_v14, %v3333_v1  ;;  %v3476_v61 = vshrl.u32 %v11510_v39, %v3473_v51  ;;  %v3479_v11 = vshrl.u32 %v11511_v4, %v3473_v51  ;;  %v3484_v36 = vshll.u32 %v11512_v46, %v3472_v0 }
 0x3ca   : > { %v3338_v54 = vsel %vm11007_vm0, %v10747_v55, %v3335_v19  ;;  %v3412_v5 = vadd.s32 1, %v11107_v50  ;;  %v3482_v15 = vshrl.u32 %v11512_v46, %v3473_v51  ;;  %v3485_v59 = vshrl.u32 %v11513_v41, %v3473_v51 }
 0x3cb   : > { %7768 = vcosq.f32 %v3338_v54  ;;  %v3477_v57 = vor.u32 %v3476_v61, %v3475_v52  ;;  %v3480_v16 = vor.u32 %v3479_v11, %v3478_v25  ;;  %vm3490_vm1 = vcmp.lt.s32.totalorder %v3471_v6, 1 }
 0x3cc   : > { %7770 = vsinq.f32 %v3338_v54  ;;  %v3413_v3 = vsel %vm3411_vm15, %v3412_v5, %v11107_v50  ;;  %v3483_v26 = vor.u32 %v3482_v15, %v3481_v44  ;;  %v3486_v63 = vor.u32 %v3485_v59, %v3484_v36 }
 0x3cd   : > { %v3414_v62 = vadd.s32 %v3413_v3, %v3409_v30  ;;  %v3487_v58 = vshll.u32 %v11513_v41, %v3472_v0  ;;  %v3488_v2 = vshrl.u32 %v11514_v24, %v3473_v51  ;;  %vm3493_vm0 = vcmp.lt.s32.totalorder %v3471_v6, 4 }
 0x3ce   : > { %vm3491_vm2 = vcmp.lt.s32.totalorder %v3471_v6, 2  ;;  %vm3492_vm3 = vcmp.lt.s32.totalorder %v3471_v6, 3  ;;  %v3498_v42 = vsel %vm3490_vm1, %v3477_v57, %v3480_v16  ;;  %v3499_v22 = vsel %vm3493_vm0, %v3486_v63, 920167782 }
 0x3cf   : > { %v3415_v53 = vadd.s32 536870912, %v3414_v62  ;;  %v3489_v47 = vor.u32 %v3488_v2, %v3487_v58  ;;  %v3495_v38 = vsel %vm3493_vm0, %v3483_v26, 2102212464  ;;  %v3500_v37 = vsel %vm3492_vm3, %v3483_v26, %v3499_v22  ;;  %v11589_v2 = vld [vmem:[#allocation15_spill] sm:$0xff] }
 0x3d0   : > { %v3344_v13 = vand.u32 3, %v3343_v12  ;;  %v3474_v7 = vshrl.u32 %v11509_v31, %v3473_v51  ;;  %v3501_v34 = vsel %vm3491_vm2, %v3498_v42, %v3500_v37  ;;  %v3502_v60 = vsel %vm3490_vm1, %v3480_v16, %v3483_v26 }
 0x3d1   : > { %v3416_v33 = vshrl.u32 %v3415_v53, 30  ;;  %v3503_v18 = vsel %vm3493_vm0, %v3489_v47, 1326507024  ;;  %v11139_v35 = vmul.u32.u64.low %v11071_v17, %v3501_v34  ;;  %v11140_v27 = vmul.u32.u64.high %v11071_v17, %v3501_v34, %v11139_v35 }
 0x3d2   : > { %v3494_v28 = vsel %vm3490_vm1, %v3474_v7, %v3477_v57  ;;  %v3496_v9 = vsel %vm3492_vm3, %v3480_v16, %v3495_v38  ;;  %v3504_v45 = vsel %vm3492_vm3, %v3486_v63, %v3503_v18  ;;  %v3565_v20 = vand.u32 2139095040, %v11039_v48 }
 0x3d3   : > { %vm3342_vm4 = vweird.f32 %v10747_v55  ;;  %v3417_v1 = vshll.u32 %v3416_v33, 30  ;;  %v3505_v10 = vsel %vm3491_vm2, %v3502_v60, %v3504_v45  ;;  %v409_v0 = vmul.f32 %v8030_v23, %v11001_v29 }
 0x3d4   : > { %vm6677_vm5 = vcmp.lt.s32.totalorder %v11102_v8, 2  ;;  %v11153_v12 = vmul.u32.u64.low %v11071_v17, %v3505_v10  ;;  %v11154_v50 = vmul.u32.u64.high %v11071_v17, %v3505_v10, %v11153_v12  ;;  %v3562_v14 = vand.u32 2147483647, %v11039_v48 }
 0x3d5   : > { %v7769_v30 = vpop.eup %7768  ;;  %vm6678_vm6 = vcmp.eq.s32.totalorder %v11102_v8, 0  ;;  %v3418_v51 = vsub.s32 %v3414_v62, %v3417_v1  ;;  %v3497_v52 = vsel %vm3491_vm2, %v3494_v28, %v3496_v9  ;;  %v3566_v25 = vshrl.u32 %v3565_v20, 23 }
 0x3d6   : > { %v7771_v44 = vpop.eup %7770  ;;  %vm3345_vm7 = vcmp.lt.s32.totalorder %v3344_v13, 2  ;;  %v3350_v19 = vxor.u32 2147483648, %v7769_v30  ;;  %vm6681_vm8 = vcmp.eq.s32.totalorder %v11102_v8, 2  ;;  %v3516_v23 = vadd.s32 1, %v11140_v27 }
 0x3d7   : > { %vm3346_vm9 = vcmp.eq.s32.totalorder %v3344_v13, 0  ;;  %v3347_v29 = vxor.u32 2147483648, %v7771_v44  ;;  %vm3349_vm10 = vcmp.eq.s32.totalorder %v3344_v13, 2  ;;  %v3420_v61 = vsub.s32 0, %v3418_v51 }
 0x3d8   : > { %v3351_v11 = vsel %vm3349_vm10, %v3350_v19, %v7771_v44  ;;  %v6683_v36 = vsel %vm6681_vm8, %v3350_v19, %v7771_v44  ;;  %v3513_v54 = vmul.u32 %v11071_v17, %v3497_v52  ;;  %vm3515_vm11 = vc.u32 %v11154_v50, %v11139_v35 }
 0x3d9   : > { %v3348_v6 = vsel %vm3346_vm9, %v7769_v30, %v3347_v29  ;;  %v6680_v5 = vsel %vm6678_vm6, %v7769_v30, %v3347_v29  ;;  %v7328_v15 = vmin.u32 %v3420_v61, %v3418_v51  ;;  %v7335_v59 = vadd.s32 4294967169, %v3566_v25 }
 0x3da   : > { %v3352_v57 = vsel %vm3345_vm7, %v3348_v6, %v3351_v11  ;;  %v6684_v16 = vsel %vm6677_vm5, %v6680_v5, %v6683_v36  ;;  %v3440_v3 = vsub.s32 4, %v3416_v33  ;;  %v3517_v26 = vsel %vm3515_vm11, %v3516_v23, %v11140_v27 }
 0x3db   : > { %v3353_v17 = vsel %vm3342_vm4, nan, %v3352_v57  ;;  %v6685_v63 = vsel %vm3342_vm4, nan, %v6684_v16  ;;  %v3422_v62 = vclz %v7328_v15  ;;  %v3518_v58 = vadd.s32 %v3517_v26, %v3513_v54 }
 0x3dc   : > { %3797 = vst [vmem:[%s8347_s4 + $0x1a8] sm:$0xff] %v3353_v17  ;;  %7125 = vst [vmem:[%s8347_s4 + $0x1b8] sm:$0xff] %v6685_v63  ;;  %v11177_v42 = vadd.f32 %v409_v0, %v11589_v2  ;;  %vm3356_vm12 = vcmp.lt.s32.totalorder %v10939_v21, 0  ;;  %v3572_v22 = vadd.s32 1, %v7335_v59  ;;  %v3569_v38 = vand.u32 8388607, %v3562_v14 }
 0x3dd   : > { %v7329_v8 = vadd.s32 4294967294, %v3422_v62  ;;  %v3441_v53 = vsel %vm3356_vm12, %v3440_v3, %v3416_v33  ;;  %v3519_v47 = vadd.s32 536870912, %v3518_v58  ;;  %vm11186_vm13 = vcmp.le.f32.partialorder %v3354_v56, 0.7853982 }
 0x3de   : > { %vm3573_vm15 = vcmp.gt.s32.totalorder %v3572_v22, 0  ;;  %v3669_v34 = vand.u32 2139095040, %v11177_v42  ;;  %v3410_v60 = vadd.s32 %v11106_v49, %v11093_v40  ;;  %v3443_v27 = vsel %vm11186_vm13, 0, %v3441_v53 }
 0x3df   : > { %vm7330_vm14 = vcmp.lt.s32.totalorder %v7329_v8, 0  ;;  %v3520_v13 = vshrl.u32 %v3519_v47, 30  ;;  %v3574_v7 = vsel %vm3573_vm15, %v3572_v22, 0  ;;  %v3570_v56 = vor.u32 8388608, %v3569_v38 }
 0x3e0   : > { %v3425_v37 = vsel %vm7330_vm14, 0, %v7329_v8  ;;  %v3576_v9 = vand.u32 31, %v3574_v7  ;;  %v3447_v0 = vadd.s32 3, %v3443_v27  ;;  %v3670_v52 = vshrl.u32 %v3669_v34, 23 }
 0x3e1   : > { %v3426_v33 = vsub.s32 32, %v3425_v37  ;;  %v3430_v18 = vsub.s32 4294967266, %v3425_v37  ;;  %v3521_v28 = vshll.u32 %v3520_v13, 30  ;;  %v3427_v45 = vshll.u32 %v3418_v51, %v3425_v37 }
 0x3e2   : > { %v3544_v10 = vsub.s32 4, %v3520_v13  ;;  %v3577_v30 = vsub.s32 32, %v3576_v9  ;;  %vm3460_vm1 = vcmp.lt.s32.totalorder %v10981_v43, 0  ;;  %vm11200_vm0 = vcmp.le.f32.partialorder %v3458_v32, 0.7853982 }
 0x3e3   : > { %v3428_v20 = vshrl.u32 %v3410_v60, %v3426_v33  ;;  %v3431_v1 = vadd.s32 127, %v3430_v18  ;;  %v11195_v12 = vsub.s32 %v3518_v58, %v3521_v28  ;;  %v11205_v51 = vand.u32 3, %v3443_v27 }
 0x3e4   : > { %v11207_v19 = vshrl.u32 %v3574_v7, 5  ;;  %v3514_v29 = vadd.s32 %v11139_v35, %v11154_v50  ;;  %v3545_v61 = vsel %vm3460_vm1, %v3544_v10, %v3520_v13  ;;  %v3580_v11 = vshrl.u32 %v11510_v39, %v3577_v30 }
 0x3e5   : > { %v3429_v25 = vor.u32 %v3428_v20, %v3427_v45  ;;  %v3432_v44 = vshll.u32 %v3431_v1, 23  ;;  %v3524_v49 = vsub.s32 0, %v11195_v12  ;;  %v11214_v36 = vand.u32 3, %v3447_v0 }
 0x3e6   : > { %v11217_v54 = vshll.u32 %v3570_v56, 8  ;;  %v7339_v6 = vadd.s32 4294967169, %v3670_v52  ;;  %v3579_v59 = vshll.u32 %v11509_v31, %v3576_v9  ;;  %v3583_v57 = vshrl.u32 %v11511_v4, %v3577_v30 }
 0x3e7   : > { %v3433_v23 = vor.u32 4788187, %v3432_v44  ;;  %v7332_v32 = vmin.u32 %v3524_v49, %v11195_v12  ;;  %v3436_v15 = vcvt.s32.f32 %v3429_v25  ;;  %v11223_v35 = vsel %vm11200_vm0, 0, %v3545_v61 }
 0x3e8   : > { %v3582_v50 = vshll.u32 %v11510_v39, %v3576_v9  ;;  %vm3594_vm2 = vcmp.lt.s32.totalorder %v11207_v19, 1  ;;  %v3581_v26 = vor.u32 %v3580_v11, %v3579_v59  ;;  %v3585_v17 = vshll.u32 %v11511_v4, %v3576_v9 }
 0x3e9   : > { %v3434_v5 = vand.u32 2147483647, %v3433_v23  ;;  %v3526_v16 = vclz %v7332_v32  ;;  %v3586_v63 = vshrl.u32 %v11512_v46, %v3577_v30  ;;  %vm3595_vm3 = vcmp.lt.s32.totalorder %v11207_v19, 2 }
 0x3ea   : > { %v3588_v58 = vshll.u32 %v11512_v46, %v3576_v9  ;;  %v3589_v2 = vshrl.u32 %v11513_v41, %v3577_v30  ;;  %v3592_v8 = vshrl.u32 %v11514_v24, %v3577_v30  ;;  %v3584_v53 = vor.u32 %v3583_v57, %v3582_v50 }
 0x3eb   : > { %v3437_v3 = vmul.f32 %v3436_v15, %v3434_v5  ;;  %v7333_v62 = vadd.s32 4294967294, %v3526_v16  ;;  %v3587_v47 = vor.u32 %v3586_v63, %v3585_v17  ;;  %v3591_v38 = vshll.u32 %v11513_v41, %v3576_v9 }
 0x3ec   : > { %v3578_v37 = vshrl.u32 %v11509_v31, %v3577_v30  ;;  %v3590_v13 = vor.u32 %v3589_v2, %v3588_v58  ;;  %vm3596_vm5 = vcmp.lt.s32.totalorder %v11207_v19, 3  ;;  %vm3597_vm6 = vcmp.lt.s32.totalorder %v11207_v19, 4 }
 0x3ed   : > { %v3438_v22 = vxor.u32 2147483648, %v3437_v3  ;;  %vm7334_vm4 = vcmp.lt.s32.totalorder %v7333_v62, 0  ;;  %v3593_v60 = vor.u32 %v3592_v8, %v3591_v38  ;;  %v3599_v28 = vsel %vm3597_vm6, %v3587_v47, 2102212464 }
 0x3ee   : > { %v3529_v34 = vsel %vm7334_vm4, 0, %v7333_v62  ;;  %v3602_v9 = vsel %vm3594_vm2, %v3581_v26, %v3584_v53  ;;  %v3603_v45 = vsel %vm3597_vm6, %v3590_v13, 920167782  ;;  %v3606_v55 = vsel %vm3594_vm2, %v3584_v53, %v3587_v47 }
 0x3ef   : > { %v3439_v7 = vsel %vm3356_vm12, %v3438_v22, %v3437_v3  ;;  %v3530_v18 = vsub.s32 32, %v3529_v34  ;;  %v3534_v27 = vsub.s32 4294967266, %v3529_v34  ;;  %v3531_v56 = vshll.u32 %v11195_v12, %v3529_v34 }
 0x3f0   : > { %v3442_v33 = vsel %vm11186_vm13, %v10939_v21, %v3439_v7  ;;  %v3598_v10 = vsel %vm3594_vm2, %v3578_v37, %v3581_v26  ;;  %v3600_v0 = vsel %vm3596_vm5, %v3584_v53, %v3599_v28  ;;  %v3604_v12 = vsel %vm3596_vm5, %v3587_v47, %v3603_v45 }
 0x3f1   : > { %7772 = vcosq.f32 %v3442_v33  ;;  %v3532_v20 = vshrl.u32 %v3514_v29, %v3530_v18  ;;  %v3535_v1 = vadd.s32 127, %v3534_v27  ;;  %v3607_v30 = vsel %vm3597_vm6, %v3593_v60, 1326507024 }
 0x3f2   : > { %7774 = vsinq.f32 %v3442_v33  ;;  %v3605_v44 = vsel %vm3595_vm3, %v3602_v9, %v3604_v12  ;;  %v3608_v49 = vsel %vm3596_vm5, %v3590_v13, %v3607_v30  ;;  %v3676_v11 = vadd.s32 1, %v7339_v6 }
 0x3f3   : > { %v3533_v52 = vor.u32 %v3532_v20, %v3531_v56  ;;  %v3536_v25 = vshll.u32 %v3535_v1, 23  ;;  %v3609_v23 = vsel %vm3595_vm3, %v3606_v55, %v3608_v49  ;;  %v3666_v59 = vand.u32 2147483647, %v11177_v42 }
 0x3f4   : > { %v11266_v29 = vmul.u32.u64.low %v11217_v54, %v3605_v44  ;;  %v11267_v61 = vmul.u32.u64.high %v11217_v54, %v3605_v44, %v11266_v29  ;;  %v11271_v5 = vmul.u32.u64.low %v11217_v54, %v3609_v23  ;;  %v11272_v15 = vmul.u32.u64.high %v11217_v54, %v3609_v23, %v11271_v5 }
 0x3f5   : > { %v3537_v32 = vor.u32 4788187, %v3536_v25  ;;  %vm3449_vm7 = vcmp.lt.s32.totalorder %v11214_v36, 2  ;;  %vm3450_vm8 = vcmp.eq.s32.totalorder %v11214_v36, 0  ;;  %v3551_v57 = vadd.s32 3, %v11223_v35 }
 0x3f6   : > { %vm6780_vm9 = vcmp.lt.s32.totalorder %v11205_v51, 2  ;;  %v3601_v16 = vsel %vm3595_vm3, %v3598_v10, %v3600_v0  ;;  %vm3677_vm10 = vcmp.gt.s32.totalorder %v3676_v11, 0  ;;  %vm3446_vm11 = vweird.f32 %v10939_v21 }
 0x3f7   : > { %vm3453_vm12 = vcmp.eq.s32.totalorder %v11214_v36, 2  ;;  %v3538_v6 = vand.u32 2147483647, %v3537_v32  ;;  %v3540_v50 = vcvt.s32.f32 %v3533_v52  ;;  %v3678_v3 = vsel %vm3677_vm10, %v3676_v11, 0 }
 0x3f8   : > { %vm6781_vm13 = vcmp.eq.s32.totalorder %v11205_v51, 0  ;;  %vm6784_vm14 = vcmp.eq.s32.totalorder %v11205_v51, 2  ;;  %v3620_v26 = vadd.s32 1, %v11267_v61  ;;  %v3680_v17 = vand.u32 31, %v3678_v3 }
 0x3f9   : > { %v3541_v63 = vmul.f32 %v3540_v50, %v3538_v6  ;;  %v3617_v62 = vmul.u32 %v11217_v54, %v3601_v16  ;;  %vm3619_vm15 = vc.u32 %v11272_v15, %v11266_v29  ;;  %v11291_v19 = vand.u32 8388607, %v3666_v59 }
 0x3fa   : > { %v11293_v2 = vand.u32 3, %v3551_v57  ;;  %v11296_v8 = vand.u32 3, %v11223_v35  ;;  %v3621_v22 = vsel %vm3619_vm15, %v3620_v26, %v11267_v61  ;;  %v3681_v53 = vsub.s32 32, %v3680_v17 }
 0x3fb   : > { %v7773_v58 = vpop.eup %7772  ;;  %v3542_v37 = vxor.u32 2147483648, %v3541_v63  ;;  %v3622_v54 = vadd.s32 %v3621_v22, %v3617_v62  ;;  %v11299_v13 = vshrl.u32 %v3678_v3, 5  ;;  %v3683_v34 = vshll.u32 %v11509_v31, %v3680_v17 }
 0x3fc   : > { %v7775_v47 = vpop.eup %7774  ;;  %v3454_v38 = vxor.u32 2147483648, %v7773_v58  ;;  %v3684_v60 = vshrl.u32 %v11510_v39, %v3681_v53  ;;  %v3687_v33 = vshrl.u32 %v11511_v4, %v3681_v53  ;;  %v3686_v20 = vshll.u32 %v11510_v39, %v3680_v17 }
 0x3fd   : > { %v3451_v7 = vxor.u32 2147483648, %v7775_v47  ;;  %v3543_v18 = vsel %vm3460_vm1, %v3542_v37, %v3541_v63  ;;  %v3623_v28 = vadd.s32 536870912, %v3622_v54  ;;  %v3689_v12 = vshll.u32 %v11511_v4, %v3680_v17 }
 0x3fe   : > { %v3455_v35 = vsel %vm3453_vm12, %v3454_v38, %v7775_v47  ;;  %v6786_v27 = vsel %vm6784_vm14, %v3454_v38, %v7775_v47  ;;  %v3546_v9 = vsel %vm11200_vm0, %v10981_v43, %v3543_v18  ;;  %v3685_v36 = vor.u32 %v3684_v60, %v3683_v34 }
 0x3ff   : > { %v3452_v56 = vsel %vm3450_vm8, %v7773_v58, %v3451_v7  ;;  %v6783_v45 = vsel %vm6781_vm13, %v7773_v58, %v3451_v7  ;;  %7776 = vcosq.f32 %v3546_v9  ;;  %v11322_v10 = vshrl.u32 %v3623_v28, 30 }
 0x400   : > { %v3456_v1 = vsel %vm3449_vm7, %v3452_v56, %v3455_v35  ;;  %v6787_v55 = vsel %vm6780_vm9, %v6783_v45, %v6786_v27  ;;  %7778 = vsinq.f32 %v3546_v9  ;;  %v3688_v30 = vor.u32 %v3687_v33, %v3686_v20 }
 0x401   : > { %v3457_v0 = vsel %vm3446_vm11, nan, %v3456_v1  ;;  %v6788_v40 = vsel %vm3446_vm11, nan, %v6787_v55  ;;  %v3625_v39 = vshll.u32 %v11322_v10, 30  ;;  %v3690_v51 = vshrl.u32 %v11512_v46, %v3681_v53 }
 0x402   : > { %3798 = vst [vmem:[%s8347_s4 + $0x1c0] sm:$0xff] %v3457_v0  ;;  %7126 = vst [vmem:[%s8347_s4 + $0x1d0] sm:$0xff] %v6788_v40  ;;  %v3692_v52 = vshll.u32 %v11512_v46, %v3680_v17  ;;  %v3693_v25 = vshrl.u32 %v11513_v41, %v3681_v53  ;;  %v3695_v44 = vshll.u32 %v11513_v41, %v3680_v17  ;;  %vm6884_vm1 = vcmp.eq.s32.totalorder %v11296_v8, 0 }
 0x403   : > { %v3696_v49 = vshrl.u32 %v11514_v24, %v3681_v53  ;;  %v11337_v21 = vsub.s32 %v3622_v54, %v3625_v39  ;;  %v3691_v23 = vor.u32 %v3690_v51, %v3689_v12  ;;  %vm6887_vm0 = vcmp.eq.s32.totalorder %v11296_v8, 2 }
 0x404   : > { %v3674_v4 = vor.u32 8388608, %v11291_v19  ;;  %v3694_v61 = vor.u32 %v3693_v25, %v3692_v52  ;;  %vm3553_vm2 = vcmp.lt.s32.totalorder %v11293_v2, 2  ;;  %vm6883_vm3 = vcmp.lt.s32.totalorder %v11296_v8, 2 }
 0x405   : > { %v3697_v11 = vor.u32 %v3696_v49, %v3695_v44  ;;  %v3628_v46 = vsub.s32 0, %v11337_v21  ;;  %vm3698_vm4 = vcmp.lt.s32.totalorder %v11299_v13, 1  ;;  %vm3701_vm5 = vcmp.lt.s32.totalorder %v11299_v13, 4 }
 0x406   : > { %vm3550_vm6 = vweird.f32 %v10981_v43  ;;  %vm3700_vm7 = vcmp.lt.s32.totalorder %v11299_v13, 3  ;;  %v3703_v41 = vsel %vm3701_vm5, %v3691_v23, 2102212464  ;;  %v3706_v24 = vsel %vm3698_vm4, %v3685_v36, %v3688_v30 }
 0x407   : > { %v3707_v32 = vsel %vm3701_vm5, %v3694_v61, 920167782  ;;  %v7336_v5 = vmin.u32 %v3628_v46, %v11337_v21  ;;  %v3682_v57 = vshrl.u32 %v11509_v31, %v3681_v53  ;;  %vm3699_vm8 = vcmp.lt.s32.totalorder %v11299_v13, 2 }
 0x408   : > { %v3708_v16 = vsel %vm3700_vm7, %v3691_v23, %v3707_v32  ;;  %v3710_v50 = vsel %vm3698_vm4, %v3688_v30, %v3691_v23  ;;  %v3711_v3 = vsel %vm3701_vm5, %v3697_v11, 1326507024  ;;  %v3714_v26 = vshll.u32 %v3674_v4, 8 }
 0x409   : > { %v3709_v6 = vsel %vm3699_vm8, %v3706_v24, %v3708_v16  ;;  %v7777_v17 = vpop.eup %7776  ;;  %vm3554_vm9 = vcmp.eq.s32.totalorder %v11293_v2, 0  ;;  %v3630_v63 = vclz %v7336_v5  ;;  %v3702_v31 = vsel %vm3698_vm4, %v3682_v57, %v3685_v36 }
 0x40a   : > { %v3704_v62 = vsel %vm3700_vm7, %v3688_v30, %v3703_v41  ;;  %v7779_v19 = vpop.eup %7778  ;;  %v3558_v58 = vxor.u32 2147483648, %v7777_v17  ;;  %v3712_v22 = vsel %vm3700_vm7, %v3694_v61, %v3711_v3  ;;  %vm3557_vm10 = vcmp.eq.s32.totalorder %v11293_v2, 2 }
 0x40b   : > { %v11367_v53 = vmul.u32.u64.low %v3714_v26, %v3709_v6  ;;  %v11368_v47 = vmul.u32.u64.high %v3714_v26, %v3709_v6, %v11367_v53  ;;  %v3555_v38 = vxor.u32 2147483648, %v7779_v19  ;;  %v7337_v37 = vadd.s32 4294967294, %v3630_v63 }
 0x40c   : > { %v3713_v54 = vsel %vm3699_vm8, %v3710_v50, %v3712_v22  ;;  %v3559_v7 = vsel %vm3557_vm10, %v3558_v58, %v7779_v19  ;;  %v6889_v34 = vsel %vm6887_vm0, %v3558_v58, %v7779_v19  ;;  %v3705_v27 = vsel %vm3699_vm8, %v3702_v31, %v3704_v62 }
 0x40d   : > { %v11375_v60 = vmul.u32.u64.low %v3714_v26, %v3713_v54  ;;  %v11376_v33 = vmul.u32.u64.high %v3714_v26, %v3713_v54, %v11375_v60  ;;  %v3556_v35 = vsel %vm3554_vm9, %v7777_v17, %v3555_v38  ;;  %v6886_v18 = vsel %vm6884_vm1, %v7777_v17, %v3555_v38 }
 0x40e   : > { %vm7338_vm11 = vcmp.lt.s32.totalorder %v7337_v37, 0  ;;  %v3560_v28 = vsel %vm3553_vm2, %v3556_v35, %v3559_v7  ;;  %v6890_v56 = vsel %vm6883_vm3, %v6886_v18, %v6889_v34  ;;  %v3724_v45 = vadd.s32 1, %v11368_v47 }
 0x40f   : > { %v3633_v9 = vsel %vm7338_vm11, 0, %v7337_v37  ;;  %v3561_v20 = vsel %vm3550_vm6, nan, %v3560_v28  ;;  %v6891_v1 = vsel %vm3550_vm6, nan, %v6890_v56  ;;  %v3618_v55 = vadd.s32 %v11266_v29, %v11272_v15 }
 0x410   : > { %v3634_v13 = vsub.s32 32, %v3633_v9  ;;  %3799 = vst [vmem:[%s8347_s4 + $0x1c8] sm:$0xff] %v3561_v20  ;;  %7127 = vst [vmem:[%s8347_s4 + $0x1d8] sm:$0xff] %v6891_v1  ;;  %v3638_v2 = vsub.s32 4294967266, %v3633_v9  ;;  %v3721_v0 = vmul.u32 %v3714_v26, %v3705_v27  ;;  %vm3723_vm12 = vc.u32 %v11376_v33, %v11367_v53 }
 0x411   : > { %v3725_v40 = vsel %vm3723_vm12, %v3724_v45, %v11368_v47  ;;  %v3635_v12 = vshll.u32 %v11337_v21, %v3633_v9  ;;  %v3648_v49 = vsub.s32 4, %v11322_v10  ;;  %vm3564_vm13 = vcmp.lt.s32.totalorder %v11039_v48, 0 }
 0x412   : > { %v3636_v8 = vshrl.u32 %v3618_v55, %v3634_v13  ;;  %v3639_v39 = vadd.s32 127, %v3638_v2  ;;  %v3726_v36 = vadd.s32 %v3725_v40, %v3721_v0  ;;  %vm3563_vm14 = vcmp.le.f32.partialorder %v3562_v14, 0.7853982 }
 0x413   : > { %v3649_v11 = vsel %vm3564_vm13, %v3648_v49, %v11322_v10  ;;  %v3722_v50 = vadd.s32 %v11367_v53, %v11376_v33  ;;  %vm3654_vm6 = vweird.f32 %v11039_v48  ;;  %vm3668_vm7 = vcmp.lt.s32.totalorder %v11177_v42, 0 }
 0x414   : > { %v3637_v30 = vor.u32 %v3636_v8, %v3635_v12  ;;  %v3640_v43 = vshll.u32 %v3639_v39, 23  ;;  %v3727_v51 = vadd.s32 536870912, %v3726_v36  ;;  %v3651_v32 = vsel %vm3563_vm14, 0, %v3649_v11 }
 0x415   : > { %v3655_v16 = vadd.s32 3, %v3651_v32  ;;  %v6985_v31 = vand.u32 3, %v3651_v32  ;;  %vm3667_vm8 = vcmp.le.f32.partialorder %v3666_v59, 0.7853982 }
 0x416   : > { %v3641_v52 = vor.u32 4788187, %v3640_v43  ;;  %v11400_v25 = vshrl.u32 %v3727_v51, 30  ;;  %v3644_v15 = vcvt.s32.f32 %v3637_v30 }
 0x417   : > { %v3656_v10 = vand.u32 3, %v3655_v16  ;;  %vm6990_vm3 = vcmp.eq.s32.totalorder %v6985_v31, 2  ;;  %vm6986_vm4 = vcmp.lt.s32.totalorder %v6985_v31, 2  ;;  %vm6987_vm5 = vcmp.eq.s32.totalorder %v6985_v31, 0 }
 0x418   : > { %v3642_v29 = vand.u32 2147483647, %v3641_v52  ;;  %v3729_v44 = vshll.u32 %v11400_v25, 30  ;;  %v3752_v56 = vsub.s32 4, %v11400_v25 }
 0x419   : > { %vm3657_vm1 = vcmp.lt.s32.totalorder %v3656_v10, 2  ;;  %vm3658_vm0 = vcmp.eq.s32.totalorder %v3656_v10, 0  ;;  %vm3661_vm2 = vcmp.eq.s32.totalorder %v3656_v10, 2 }
 0x41a   : > { %v3645_v23 = vmul.f32 %v3644_v15, %v3642_v29  ;;  %v3730_v4 = vsub.s32 %v3726_v36, %v3729_v44 }
 0x41c   : > { %v3646_v61 = vxor.u32 2147483648, %v3645_v23  ;;  %v3732_v21 = vsub.s32 0, %v3730_v4 }
 0x41e   : > { %v3647_v46 = vsel %vm3564_vm13, %v3646_v61, %v3645_v23  ;;  %v7340_v41 = vmin.u32 %v3732_v21, %v3730_v4 }
 0x41f   : > { %v3650_v24 = vsel %vm3563_vm14, %v11039_v48, %v3647_v46  ;;  %v3753_v48 = vsel %vm3668_vm7, %v3752_v56, %v11400_v25 }
 0x420   : > { %7780 = vcosq.f32 %v3650_v24  ;;  %v3734_v5 = vclz %v7340_v41  ;;  %v3755_v55 = vsel %vm3667_vm8, 0, %v3753_v48 }
 0x421   : > { %7782 = vsinq.f32 %v3650_v24  ;;  %v3759_v13 = vadd.s32 3, %v3755_v55  ;;  %v7088_v0 = vand.u32 3, %v3755_v55 }
 0x422   : > { %v7341_v57 = vadd.s32 4294967294, %v3734_v5 }
 0x423   : > { %v3760_v2 = vand.u32 3, %v3759_v13  ;;  %vm7093_vm10 = vcmp.eq.s32.totalorder %v7088_v0, 2  ;;  %vm7090_vm12 = vcmp.eq.s32.totalorder %v7088_v0, 0  ;;  %vm7089_vm14 = vcmp.lt.s32.totalorder %v7088_v0, 2 }
 0x424   : > { %vm7342_vm15 = vcmp.lt.s32.totalorder %v7341_v57, 0 }
 0x425   : > { %v3737_v6 = vsel %vm7342_vm15, 0, %v7341_v57  ;;  %vm3765_vm9 = vcmp.eq.s32.totalorder %v3760_v2, 2  ;;  %vm3762_vm11 = vcmp.eq.s32.totalorder %v3760_v2, 0  ;;  %vm3761_vm13 = vcmp.lt.s32.totalorder %v3760_v2, 2 }
 0x426   : > { %v3738_v3 = vsub.s32 32, %v3737_v6  ;;  %v3742_v26 = vsub.s32 4294967266, %v3737_v6  ;;  %v3739_v17 = vshll.u32 %v3730_v4, %v3737_v6  ;;  %vm3758_vm15 = vweird.f32 %v11177_v42 }
 0x428   : > { %v3740_v63 = vshrl.u32 %v3722_v50, %v3738_v3  ;;  %v3743_v14 = vadd.s32 127, %v3742_v26 }
 0x42a   : > { %v7781_v62 = vpop.eup %7780  ;;  %v3741_v19 = vor.u32 %v3740_v63, %v3739_v17  ;;  %v3744_v58 = vshll.u32 %v3743_v14, 23 }
 0x42b   : > { %v7783_v22 = vpop.eup %7782  ;;  %v3662_v47 = vxor.u32 2147483648, %v7781_v62 }
 0x42c   : > { %v3659_v38 = vxor.u32 2147483648, %v7783_v22  ;;  %v3745_v37 = vor.u32 4788187, %v3744_v58  ;;  %v3748_v60 = vcvt.s32.f32 %v3741_v19 }
 0x42d   : > { %v3663_v53 = vsel %vm3661_vm2, %v3662_v47, %v7783_v22  ;;  %v6992_v54 = vsel %vm6990_vm3, %v3662_v47, %v7783_v22 }
 0x42e   : > { %v3660_v7 = vsel %vm3658_vm0, %v7781_v62, %v3659_v38  ;;  %v3746_v34 = vand.u32 2147483647, %v3745_v37  ;;  %v6989_v33 = vsel %vm6987_vm5, %v7781_v62, %v3659_v38 }
 0x42f   : > { %v3664_v35 = vsel %vm3657_vm1, %v3660_v7, %v3663_v53  ;;  %v6993_v18 = vsel %vm6986_vm4, %v6989_v33, %v6992_v54 }
 0x430   : > { %v3665_v27 = vsel %vm3654_vm6, nan, %v3664_v35  ;;  %v3749_v28 = vmul.f32 %v3748_v60, %v3746_v34  ;;  %v6994_v9 = vsel %vm3654_vm6, nan, %v6993_v18 }
 0x431   : > { %3800 = vst [vmem:[%s8347_s4 + $0x1e0] sm:$0xff] %v3665_v27  ;;  %7128 = vst [vmem:[%s8347_s4 + $0x1f0] sm:$0xff] %v6994_v9 }
 0x432   : > { %v3750_v45 = vxor.u32 2147483648, %v3749_v28 }
 0x434   : > { %v3751_v20 = vsel %vm3668_vm7, %v3750_v45, %v3749_v28 }
 0x435   : > { %v3754_v1 = vsel %vm3667_vm8, %v11177_v42, %v3751_v20 }
 0x436   : > { %7784 = vcosq.f32 %v3754_v1 }
 0x437   : > { %7786 = vsinq.f32 %v3754_v1 }
 0x440   : > { %v7785_v8 = vpop.eup %7784 }
 0x441   : > { %v7787_v40 = vpop.eup %7786  ;;  %v3766_v12 = vxor.u32 2147483648, %v7785_v8 }
 0x442   : > { %v3763_v39 = vxor.u32 2147483648, %v7787_v40 }
 0x443   : > { %v3767_v59 = vsel %vm3765_vm9, %v3766_v12, %v7787_v40  ;;  %v7095_v36 = vsel %vm7093_vm10, %v3766_v12, %v7787_v40 }
 0x444   : > { %v3764_v30 = vsel %vm3762_vm11, %v7785_v8, %v3763_v39  ;;  %v7092_v43 = vsel %vm7090_vm12, %v7785_v8, %v3763_v39 }
 0x445   : > { %v3768_v51 = vsel %vm3761_vm13, %v3764_v30, %v3767_v59  ;;  %v7096_v52 = vsel %vm7089_vm14, %v7092_v43, %v7095_v36 }
 0x446   : > { %v3769_v25 = vsel %vm3758_vm15, nan, %v3768_v51  ;;  %v7097_v29 = vsel %vm3758_vm15, nan, %v7096_v52 }
 0x447   : > { %3801 = vst [vmem:[%s8347_s4 + $0x1e8] sm:$0xff] %v3769_v25  ;;  %7129 = vst [vmem:[%s8347_s4 + $0x1f8] sm:$0xff] %v7097_v29 }
 0x448   : > { %7801 = shalt.err (!%p7798_p3)
}
 0x449   : > { %s7802_s23 = scalar_lea.hbm %s11425_s13, 8192  ;;  %s7806_s26 = scalar_lea.hbm %s11477_s2, 16384 }
 0x44a   : > { %p7803_p4 = scmp.ne.s32.totalorder %s11425_s13, %s7802_s23  ;;  %p7807_p9 = scmp.lt.u32.totalorder %s11425_s13, %s11477_s2 }
 0x44b   : > { %p7808_p10 = scmp.lt.u32.totalorder %s7806_s26, %s7802_s23  ;;  %p7810_p12 = scmp.lt.u32.totalorder %s7802_s23, %s11425_s13 }
 0x44c   : > { %p7804_p7 = pnand %p7803_p4, %p7916_p5 }
 0x44d   : > { %p7809_p11 = por %p7808_p10, %p7807_p9 }
 0x44e   : > { %p7805_p8 = pneg %p7804_p7 }
 0x44f   : > { %p7811_p13 = por %p7810_p12, %p7809_p11 }
 0x451   : > { %p7812_p0 = pnand %p7811_p13, %p7805_p8 }
 0x453   : > { %7815 = shalt.err (!%p7812_p0)
}
 0x454   : > { %s7861_s29 = smov 512   ;;  %s7862_s30 = smov 32  }
 0x455   : > { %7607 = dma.vmem_to_hbm [thread:$0]  (%p7916_p5), %s11427_s6, 8192, %s11425_s13, %s11434_s14, %s7861_s29, %s7861_s29, %s7862_s30  }
 0x456 PF: > { %p7613_p1 = scmp.ge.s32.totalorder %s7850_s12, 2  ;;  %s7160_s3 = sand.u32 1, %s7838_s9  }
 0x457   : > { %s7161_s4 = scalar_lea.sflag [#allocation3], %s7160_s3 }
 0x458   : > { %p7610_p2 = pnand %p7613_p1, %p7920_p6 }
 0x45a   : > { %7833 = dma.done.wait (!%p7610_p2), %s7161_s4, 8192  }
 0x45b   : > { %7835 = vsyncadd (!%p7610_p2), %s7161_s4, 4294959104  ;;  %p12_p3 = scmp.ge.s32.totalorder %s7903_s15, 4   ;;  %s11594_s9 = smov %s7842_s10 }
 0x45c   : > { %s11595_s10 = smov %s7846_s11  ;;  %s11596_s11 = smov %s7914_s18 }
 0x45d   : > { %s11597_s12 = smov %s7903_s15  ;;  %14 = sbr.rel (!%p12_p3) target bundleno = 3 (0x3), region = 64 }
 0x464   :  { %7166 = vsyncpa [#allocation3], 1 }
 0x465   :  { %7168 = vsyncpa [#allocation3 + $0x1], 1 }

</bundles_post_ra>
